<compile_context>
chip_gen: v6e
topology: v6e:2x2x1
jax: 0.10.0
libtpu: 0.0.40
codegen_flags: <defaults>
</compile_context>

<pallas_src>
import numpy as np
import jax
import jax.numpy as jnp
from jax.experimental import pallas as pl
from jax.experimental.pallas import tpu as pltpu


def _round_up(x, m):
    return ((x + m - 1) // m) * m


def _sublane_multiple(dtype):
    # f32 -> 8, bf16 -> 16, int8/fp8 -> 32 (packed sublanes).
    return max(8, 32 // jnp.dtype(dtype).itemsize)


def _vmem_capacity_bytes():
    # Generation-aware physical VMEM (v5e/v6e 128 MiB, v7x 64 MiB per TC).
    try:
        return int(pltpu.get_tpu_info().vmem_capacity_bytes)
    except Exception:
        return 64 * 1024 * 1024  # conservative fallback (v7x per-TC size)


def _dimension_semantics():
    # On multi-TensorCore chips (v7x: 2 TCs) explicitly shard the row grid
    # across cores; on single-TC chips (v5e/v6e) plain "parallel" is the
    # safe no-op tag.
    try:
        info = pltpu.get_tpu_info()
        n_cores = None
        for attr in ("num_cores", "num_tensorcores", "tensorcores_per_chip"):
            val = getattr(info, attr, None)
            if val:
                n_cores = int(val)
                break
        if n_cores is not None and n_cores > 1:
            return (pltpu.CORE_PARALLEL,)
    except Exception:
        pass
    return ("parallel",)


def _time_encode_kernel(t_ref, wb_ref, o_ref):
    # t_ref: (TN, 1) f32; wb_ref: (2, Dp) f32 (row 0 = w, row 1 = b);
    # o_ref: (TN, Dp) out_dtype (Dp = D padded to a multiple of 128).
    t = t_ref[...]              # (TN, 1)
    w = wb_ref[0:1, :]          # (1, Dp)
    b = wb_ref[1:2, :]          # (1, Dp)
    # Broadcasted affine (outer product) on the VPU, cos on the EUP.
    # Math in f32; cast only on the (lane-dense, unmasked) store.
    o_ref[...] = jnp.cos(t * w + b).astype(o_ref.dtype)
    # TODO(synk): training-mode dropout (pltpu.prng_random_bits mask) not
    # implemented; inference-mode dropout is identity, matching eval().


def time_encode(t, w, b, *, out_dtype=jnp.float32, tile_n=None,
                vmem_budget_bytes=None):
    """t: (N,) float32; w: (D,) float32 (Linear weight[:, 0]); b: (D,) float32.

    out_dtype=jnp.bfloat16 halves HBM write traffic (recommended on the
    write-bound v5e/v6e generations when downstream accepts bf16).
    """
    N = t.shape[0]
    D = w.shape[0]

    out_bytes = jnp.dtype(out_dtype).itemsize
    sub = _sublane_multiple(out_dtype)
    lanes_d = _round_up(D, 128)          # lane-dense feature dim

    vmem_cap = _vmem_capacity_bytes()
    if vmem_budget_bytes is None:
        vmem_budget_bytes = 24 * 1024 * 1024
    vmem_budget_bytes = min(int(vmem_budget_bytes), vmem_cap // 2)

    # Double-buffered per-row VMEM cost:
    #   output tile:  2 * lanes_d * out_bytes
    #   t tile (TN,1) padded to 128 lanes in VMEM: 2 * 128 * 4
    bytes_per_row = 2 * lanes_d * out_bytes + 2 * 128 * 4

    if tile_n is None:
        tile_n = vmem_budget_bytes // bytes_per_row
        # >=1k rows already hits 85%+ of HBM roofline; a bigger tile only
        # wastes VMEM on the lane-padded t buffer and on tail padding.
        tile_n = min(tile_n, 2048)
    # Clamp to the (padded) problem size and round to the dtype-dependent
    # sublane multiple so stores stay unmasked.
    tile_n = min(int(tile_n), _round_up(N, sub))
    tile_n = max(sub, (tile_n // sub) * sub)

    # Ragged N: pad rows up to a multiple of tile_n, slice the result back.
    grid_n = pl.cdiv(N, tile_n)
    n_pad = grid_n * tile_n

    t2 = t.reshape(N, 1).astype(jnp.float32)
    if n_pad != N:
        t2 = jnp.pad(t2, ((0, n_pad - N), (0, 0)))

    w32 = w.astype(jnp.float32)
    b32 = b.astype(jnp.float32)
    if lanes_d != D:
        # Zero-pad the feature dim; padded lanes produce cos(0)=1 and are
        # sliced off below.
        w32 = jnp.pad(w32, (0, lanes_d - D))
        b32 = jnp.pad(b32, (0, lanes_d - D))
    wb = jnp.stack([w32, b32], axis=0)   # (2, lanes_d)

    # Scoped-VMEM limit sized for the chosen tile (+ headroom), clamped to
    # the physical capacity of the current generation.
    needed_vmem = tile_n * bytes_per_row + 2 * 8 * lanes_d * 4
    vmem_limit = min(needed_vmem + (8 << 20), vmem_cap)

    cost = pl.CostEstimate(
        flops=2 * n_pad * lanes_d,            # one mul + one add per element
        transcendentals=n_pad * lanes_d,      # cos
        bytes_accessed=n_pad * 4 + 2 * lanes_d * 4 + n_pad * lanes_d * out_bytes,
    )

    out = pl.pallas_call(
        _time_encode_kernel,
        out_shape=jax.ShapeDtypeStruct((n_pad, lanes_d), out_dtype),
        grid_spec=pltpu.PrefetchScalarGridSpec(
            num_scalar_prefetch=0,
            grid=(grid_n,),
            in_specs=[
                pl.BlockSpec((tile_n, 1), lambda i: (i, 0)),
                pl.BlockSpec((2, lanes_d), lambda i: (0, 0)),
            ],
            out_specs=pl.BlockSpec((tile_n, lanes_d), lambda i: (i, 0)),
        ),
        compiler_params=pltpu.CompilerParams(
            dimension_semantics=_dimension_semantics(),
            vmem_limit_bytes=int(vmem_limit),
        ),
        cost_estimate=cost,
    )(t2, wb)

    if n_pad != N or lanes_d != D:
        out = out[:N, :D]
    return out


def make_params(dimension):
    # Deterministic init exactly as in the PyTorch __init__:
    #   weight = 1 / 10 ** linspace(0, 9, dimension), bias = 0
    w_np = (1.0 / 10 ** np.linspace(0, 9, dimension)).astype(np.float32)
    b_np = np.zeros((dimension,), dtype=np.float32)
    return jnp.asarray(w_np), jnp.asarray(b_np)


if __name__ == "__main__":
    dimension = 100   # classic TimeEncode dim (NOT a multiple of 128 -> lane-pad path)
    N = 200           # number of timestamps (ragged: not a tile multiple)

    key = jax.random.PRNGKey(0)
    t = jax.random.uniform(key, (N,), dtype=jnp.float32) * 1000.0

    w, b = make_params(dimension)

    # Reference in plain JAX (inference-mode dropout == identity).
    ref = jnp.cos(t[:, None] * w[None, :] + b[None, :])

    # f32 output (matches the PyTorch module's dtype).
    out = jax.block_until_ready(time_encode(t, w, b))
    np.testing.assert_allclose(np.asarray(out), np.asarray(ref), rtol=1e-5, atol=2e-5)

    # bf16 output path (halves HBM write traffic on the write-bound v5e/v6e);
    # dtype-dependent tolerance.
    out_bf16 = jax.block_until_ready(time_encode(t, w, b, out_dtype=jnp.bfloat16))
    np.testing.assert_allclose(np.asarray(out_bf16.astype(jnp.float32)),
                               np.asarray(ref), rtol=2e-2, atol=2e-2)

    print("KERNEL_OK")
</pallas_src>

<mosaic_0001>
module attributes {stable_mosaic.version = 11 : i64} {
  func.func @_time_encode_kernel(%arg0: i32, %arg1: memref<200x1xf32, #tpu.memory_space<vmem>>, %arg2: memref<2x128xf32, #tpu.memory_space<vmem>>, %arg3: memref<200x128xf32, #tpu.memory_space<vmem>>) attributes {dimension_semantics = [#tpu.dimension_semantics<parallel>], iteration_bounds = array<i64: 1>, scalar_prefetch = 0 : i64, scratch_operands = 0 : i64, tpu.core_type = #tpu.core_type<tc>, window_params = [{transform_indices = @transform_0, window_bounds = array<i64: 200, 1>}, {pipeline_mode = #tpu.pipeline_mode<synchronous>, transform_indices = @transform_1, window_bounds = array<i64: 2, 128>}, {transform_indices = @transform_2, window_bounds = array<i64: 200, 128>}]} {
    %c0 = arith.constant 0 : index
    %c0_0 = arith.constant 0 : index
    %0 = vector.load %arg1[%c0, %c0_0] : memref<200x1xf32, #tpu.memory_space<vmem>>, vector<200x1xf32>
    %c0_1 = arith.constant 0 : index
    %c0_2 = arith.constant 0 : index
    %1 = vector.load %arg2[%c0_1, %c0_2] : memref<2x128xf32, #tpu.memory_space<vmem>>, vector<1x128xf32>
    %c1 = arith.constant 1 : index
    %c0_3 = arith.constant 0 : index
    %2 = vector.load %arg2[%c1, %c0_3] : memref<2x128xf32, #tpu.memory_space<vmem>>, vector<1x128xf32>
    %3 = vector.broadcast %0 : vector<200x1xf32> to vector<200x128xf32>
    %4 = vector.broadcast %1 : vector<1x128xf32> to vector<200x128xf32>
    %5 = arith.mulf %3, %4 : vector<200x128xf32>
    %6 = vector.broadcast %2 : vector<1x128xf32> to vector<200x128xf32>
    %7 = arith.addf %5, %6 : vector<200x128xf32>
    %8 = math.cos %7 : vector<200x128xf32>
    %c0_4 = arith.constant 0 : index
    %c0_5 = arith.constant 0 : index
    %9 = vector.load %arg3[%c0_4, %c0_5] : memref<200x128xf32, #tpu.memory_space<vmem>>, vector<200x128xf32>
    tpu.vector_store %arg3[%c0_4, %c0_5], %8 {strides = array<i32>} : memref<200x128xf32, #tpu.memory_space<vmem>>, vector<200x128xf32>,
    return
  }
  func.func @transform_0(%arg0: i32) -> (i32, i32) {
    %c0_i32 = arith.constant 0 : i32
    %c0_i32_0 = arith.constant 0 : i32
    return %arg0, %c0_i32 : i32, i32
  }
  func.func @transform_1(%arg0: i32) -> (i32, i32) {
    %c0_i32 = arith.constant 0 : i32
    %c0_i32_0 = arith.constant 0 : i32
    %c0_i32_1 = arith.constant 0 : i32
    return %c0_i32, %c0_i32_0 : i32, i32
  }
  func.func @transform_2(%arg0: i32) -> (i32, i32) {
    %c0_i32 = arith.constant 0 : i32
    %c0_i32_0 = arith.constant 0 : i32
    return %arg0, %c0_i32 : i32, i32
  }
}

</mosaic_0001>

<bundles_post_ra>
// kernel: tpu_custom_call.1
= control target key start
LH: loop header
LB: loop body
LE: loop exit
PB: predicated region body
PF: predicated region fallthrough
CT: control target
= control target key end

     0   :  { %v3182_v2 = vmov 0   ;;  %s5218_s0 = inlined_call_operand.vmem [shape: f32[200,1], index: 0, kind: input, shape index: {}]   ;;  %s5219_s1 = inlined_call_operand.vmem [shape: f32[2,128], index: 1, kind: input, shape index: {}]   ;;  %s5220_s2 = inlined_call_operand.hbm [shape: f32[200,128], index: 2, kind: output, shape index: {}]  }
   0x1   :  { %v14_v0 = vld [vmem:[%s5218_s0 + $0x10] sm:$0xff]  ;;  %v12_v1 = vld [vmem:[%s5218_s0] sm:$0xff]  ;;  %3051 = vset.pattern.permute.xlu1 %v3182_v2  ;;  %3050 = vset.pattern.permute.xlu0 %v3182_v2  ;;  %v15_v3 = vld [vmem:[%s5218_s0 + $0x18] sm:$0xff] }
   0x2   :  { %51 = vperm.xlu1 %3051, %v14_v0   ;;  %41 = vperm.xlu0 %3050, %v12_v1   ;;  %v13_v4 = vld [vmem:[%s5218_s0 + $0x8] sm:$0xff]  ;;  %v16_v6 = vld [vmem:[%s5218_s0 + $0x20] sm:$0xff] }
   0x3   :  { %v17_v5 = vld [vmem:[%s5218_s0 + $0x28] sm:$0xff] }
   0x6   :  { %56 = vperm.xlu1 %3051, %v15_v3   ;;  %46 = vperm.xlu0 %3050, %v13_v4  }
   0x7   :  { %7 = vsyncpa [#allocation3], 0  ;;  %v19_v7 = vld [vmem:[%s5218_s0 + $0x38] sm:$0xff]  ;;  %v18_v8 = vld [vmem:[%s5218_s0 + $0x30] sm:$0xff]  ;;  %v3183_v0 = vmov 683565275  }
   0x8   :  { %v21_v9 = vld [vmem:[%s5218_s0 + $0x48] sm:$0xff]  ;;  %v20_v10 = vld [vmem:[%s5218_s0 + $0x40] sm:$0xff]  ;;  %v23_v11 = vld [vmem:[%s5218_s0 + $0x58] sm:$0xff]  ;;  %v3184_v2 = vmov 2475754826  }
   0x9   :  { %v22_v12 = vld [vmem:[%s5218_s0 + $0x50] sm:$0xff]  ;;  %v25_v13 = vld [vmem:[%s5218_s0 + $0x68] sm:$0xff]  ;;  %v24_v14 = vld [vmem:[%s5218_s0 + $0x60] sm:$0xff]  ;;  %v3185_v4 = vmov 2131351028  }
   0xa   :  { %66 = vperm.xlu1 %3051, %v17_v5   ;;  %61 = vperm.xlu0 %3050, %v16_v6   ;;  %v27_v15 = vld [vmem:[%s5218_s0 + $0x78] sm:$0xff]  ;;  %v26_v16 = vld [vmem:[%s5218_s0 + $0x70] sm:$0xff]  ;;  %v29_v17 = vld [vmem:[%s5218_s0 + $0x88] sm:$0xff]  ;;  %v3186_v6 = vmov 2102212464  }
   0xb   :  { %v28_v18 = vld [vmem:[%s5218_s0 + $0x80] sm:$0xff]  ;;  %v31_v19 = vld [vmem:[%s5218_s0 + $0x98] sm:$0xff]  ;;  %v30_v20 = vld [vmem:[%s5218_s0 + $0x90] sm:$0xff] }
   0xc   :  { %v33_v21 = vld [vmem:[%s5218_s0 + $0xa8] sm:$0xff]  ;;  %v32_v22 = vld [vmem:[%s5218_s0 + $0xa0] sm:$0xff]  ;;  %v35_v23 = vld [vmem:[%s5218_s0 + $0xb8] sm:$0xff] }
   0xd   :  { %v34_v24 = vld [vmem:[%s5218_s0 + $0xb0] sm:$0xff]  ;;  %v36_v25 = vld [vmem:[%s5218_s0 + $0xc0] sm:$0xff] }
   0xe   :  { %76 = vperm.xlu1 %3051, %v19_v7   ;;  %71 = vperm.xlu0 %3050, %v18_v8   ;;  %v3285_v26 = vld [vmem:[%s5219_s1] ss:$0 sm:$0xff]  ;;  %v3290_v27 = vld [vmem:[%s5219_s1 + $0x1] ss:$0 sm:$0xff]  ;;  %v3187_v8 = vmov 920167782  }
  0x12   :  { %86 = vperm.xlu1 %3051, %v21_v9   ;;  %81 = vperm.xlu0 %3050, %v20_v10  }
  0x16   :  { %96 = vperm.xlu1 %3051, %v23_v11   ;;  %91 = vperm.xlu0 %3050, %v22_v12  }
  0x1a   :  { %106 = vperm.xlu1 %3051, %v25_v13   ;;  %101 = vperm.xlu0 %3050, %v24_v14  }
  0x1e   :  { %116 = vperm.xlu1 %3051, %v27_v15   ;;  %111 = vperm.xlu0 %3050, %v26_v16  }
  0x22   :  { %126 = vperm.xlu1 %3051, %v29_v17   ;;  %121 = vperm.xlu0 %3050, %v28_v18   ;;  %v3188_v17 = vmov 1326507024  }
  0x26   :  { %136 = vperm.xlu1 %3051, %v31_v19   ;;  %131 = vperm.xlu0 %3050, %v30_v20  }
  0x2a   :  { %146 = vperm.xlu1 %3051, %v33_v21   ;;  %141 = vperm.xlu0 %3050, %v32_v22  }
  0x2e   :  { %156 = vperm.xlu1 %3051, %v35_v23   ;;  %151 = vperm.xlu0 %3050, %v34_v24  }
  0x32   :  { %161 = vperm.xlu0 %3050, %v36_v25  }
  0x7d   :  { %v52_v28 = vpop.permute.xlu1 %51  ;;  %v42_v29 = vpop.permute.xlu0 %41 }
  0x7e   :  { %v170_v30 = vmul.f32 %v3285_v26, %v52_v28  ;;  %v168_v31 = vmul.f32 %v3285_v26, %v42_v29 }
  0x80   :  { %v3295_v32 = vadd.f32 %v3290_v27, %v170_v30  ;;  %v3298_v33 = vadd.f32 %v3290_v27, %v168_v31 }
  0x81   :  { %v57_v34 = vpop.permute.xlu1 %56  ;;  %v47_v52 = vpop.permute.xlu0 %46 }
  0x82   :  { %v428_v35 = vand.u32 2147483647, %v3295_v32  ;;  %v431_v36 = vand.u32 2139095040, %v3295_v32  ;;  %v222_v37 = vand.u32 2147483647, %v3298_v33  ;;  %v225_v38 = vand.u32 2139095040, %v3298_v33 }
  0x83   :  { %v171_v41 = vmul.f32 %v3285_v26, %v57_v34  ;;  %v3316_v58 = vmul.f32 %v3285_v26, %v47_v52  ;;  %vm430_vm13 = vcmp.lt.s32.totalorder %v3295_v32, 0 }
  0x84   :  { %v432_v39 = vshrl.u32 %v431_v36, 23  ;;  %v435_v40 = vand.u32 8388607, %v428_v35  ;;  %v226_v42 = vshrl.u32 %v225_v38, 23  ;;  %v229_v43 = vand.u32 8388607, %v222_v37 }
  0x85   :  { %v3310_v45 = vadd.f32 %v3290_v27, %v171_v41 }
  0x86   :  { %v2848_v44 = vadd.s32 4294967169, %v432_v39  ;;  %v2840_v46 = vadd.s32 4294967169, %v226_v42  ;;  %v436_v47 = vor.u32 8388608, %v435_v40  ;;  %v230_v49 = vor.u32 8388608, %v229_v43 }
  0x87   :  { %v534_v51 = vand.u32 2139095040, %v3310_v45  ;;  %v531_v62 = vand.u32 2147483647, %v3310_v45 }
  0x88   :  { %v438_v48 = vadd.s32 1, %v2848_v44  ;;  %v232_v50 = vadd.s32 1, %v2840_v46  ;;  %v3313_v56 = vshll.u32 %v436_v47, 8  ;;  %v3320_v61 = vshll.u32 %v230_v49, 8 }
  0x89   :  { %v535_v54 = vshrl.u32 %v534_v51, 23 }
  0x8a   :  { %vm439_vm0 = vcmp.gt.s32.totalorder %v438_v48, 0  ;;  %vm233_vm1 = vcmp.gt.s32.totalorder %v232_v50, 0 }
  0x8b   :  { %v440_v53 = vsel %vm439_vm0, %v438_v48, 0  ;;  %v234_v57 = vsel %vm233_vm1, %v232_v50, 0  ;;  %v3330_v11 = vadd.s32 4294967169, %v535_v54 }
  0x8c   :  { %v442_v55 = vand.u32 31, %v440_v53  ;;  %v441_v59 = vshrl.u32 %v440_v53, 5  ;;  %v3318_v60 = vand.u32 31, %v234_v57  ;;  %v3328_v10 = vshrl.u32 %v234_v57, 5 }
  0x8e   :  { %v443_v63 = vsub.s32 32, %v442_v55  ;;  %v445_v1 = vshll.u32 %v3183_v0, %v442_v55  ;;  %v448_v3 = vshll.u32 %v3184_v2, %v442_v55  ;;  %v451_v5 = vshll.u32 %v3185_v4, %v442_v55 }
  0x8f   :  { %v454_v7 = vshll.u32 %v3186_v6, %v442_v55  ;;  %v457_v9 = vshll.u32 %v3187_v8, %v442_v55  ;;  %vm460_vm2 = vcmp.lt.s32.totalorder %v441_v59, 1  ;;  %vm461_vm3 = vcmp.lt.s32.totalorder %v441_v59, 2 }
  0x90   :  { %v444_v12 = vshrl.u32 %v3183_v0, %v443_v63  ;;  %v446_v13 = vshrl.u32 %v3184_v2, %v443_v63  ;;  %v449_v14 = vshrl.u32 %v3185_v4, %v443_v63  ;;  %v452_v15 = vshrl.u32 %v3186_v6, %v443_v63 }
  0x91   :  { %v455_v16 = vshrl.u32 %v3187_v8, %v443_v63  ;;  %v458_v18 = vshrl.u32 %v3188_v17, %v443_v63  ;;  %v237_v22 = vsub.s32 32, %v3318_v60  ;;  %vm462_vm4 = vcmp.lt.s32.totalorder %v441_v59, 3 }
  0x92   :  { %v447_v19 = vor.u32 %v446_v13, %v445_v1  ;;  %v450_v20 = vor.u32 %v449_v14, %v448_v3  ;;  %v453_v21 = vor.u32 %v452_v15, %v451_v5  ;;  %vm463_vm5 = vcmp.lt.s32.totalorder %v441_v59, 4 }
  0x93   :  { %v456_v23 = vor.u32 %v455_v16, %v454_v7  ;;  %v459_v24 = vor.u32 %v458_v18, %v457_v9  ;;  %v239_v38 = vshll.u32 %v3183_v0, %v3318_v60  ;;  %v240_v41 = vshrl.u32 %v3184_v2, %v237_v22 }
  0x94   :  { %v464_v25 = vsel %vm460_vm2, %v444_v12, %v447_v19  ;;  %v465_v28 = vsel %vm463_vm5, %v453_v21, 2102212464  ;;  %v468_v29 = vsel %vm460_vm2, %v447_v19, %v450_v20  ;;  %v472_v30 = vsel %vm460_vm2, %v450_v20, %v453_v21 }
  0x95   :  { %v466_v31 = vsel %vm462_vm4, %v450_v20, %v465_v28  ;;  %v469_v34 = vsel %vm463_vm5, %v456_v23, 920167782  ;;  %v473_v36 = vsel %vm463_vm5, %v459_v24, 1326507024  ;;  %v242_v42 = vshll.u32 %v3184_v2, %v3318_v60 }
  0x96   :  { %v470_v39 = vsel %vm462_vm4, %v453_v21, %v469_v34  ;;  %v474_v40 = vsel %vm462_vm4, %v456_v23, %v473_v36  ;;  %v467_v43 = vsel %vm461_vm3, %v464_v25, %v466_v31  ;;  %v243_v47 = vshrl.u32 %v3185_v4, %v237_v22 }
  0x97   :  { %v471_v44 = vsel %vm461_vm3, %v468_v29, %v470_v39  ;;  %v475_v46 = vsel %vm461_vm3, %v472_v30, %v474_v40  ;;  %v241_v52 = vor.u32 %v240_v41, %v239_v38  ;;  %v245_v54 = vshll.u32 %v3185_v4, %v3318_v60 }
  0x98   :  { %v3349_v48 = vmul.u32.u64.low %v3313_v56, %v475_v46  ;;  %v3350_v49 = vmul.u32.u64.high %v3313_v56, %v475_v46, %v3349_v48  ;;  %v3353_v50 = vmul.u32.u64.low %v3313_v56, %v471_v44  ;;  %v3354_v51 = vmul.u32.u64.high %v3313_v56, %v471_v44, %v3353_v50 }
  0x99   :  { %v244_v53 = vor.u32 %v243_v47, %v242_v42  ;;  %v246_v55 = vshrl.u32 %v3186_v6, %v237_v22  ;;  %v238_v57 = vshrl.u32 %v3183_v0, %v237_v22  ;;  %v248_v59 = vshll.u32 %v3186_v6, %v3318_v60 }
  0x9a   :  { %v249_v63 = vshrl.u32 %v3187_v8, %v237_v22  ;;  %v252_v1 = vshrl.u32 %v3188_v17, %v237_v22  ;;  %v483_v3 = vmul.u32 %v3313_v56, %v467_v43  ;;  %v251_v7 = vshll.u32 %v3187_v8, %v3318_v60 }
  0x9b   :  { %v247_v5 = vor.u32 %v246_v55, %v245_v54  ;;  %vm254_vm6 = vcmp.lt.s32.totalorder %v3328_v10, 1  ;;  %vm485_vm7 = vc.u32 %v3350_v49, %v3353_v50  ;;  %v486_v9 = vadd.s32 1, %v3354_v51 }
  0x9c   :  { %v250_v12 = vor.u32 %v249_v63, %v248_v59  ;;  %vm255_vm8 = vcmp.lt.s32.totalorder %v3328_v10, 2  ;;  %v253_v13 = vor.u32 %v252_v1, %v251_v7  ;;  %vm256_vm9 = vcmp.lt.s32.totalorder %v3328_v10, 3 }
  0x9d   :  { %vm257_vm10 = vcmp.lt.s32.totalorder %v3328_v10, 4  ;;  %v262_v14 = vsel %vm254_vm6, %v241_v52, %v244_v53  ;;  %v487_v56 = vsel %vm485_vm7, %v486_v9, %v3354_v51  ;;  %v266_v60 = vsel %vm254_vm6, %v244_v53, %v247_v5 }
  0x9e   :  { %v259_v15 = vsel %vm257_vm10, %v247_v5, 2102212464  ;;  %v263_v16 = vsel %vm257_vm10, %v250_v12, 920167782  ;;  %v488_v18 = vadd.s32 %v487_v56, %v483_v3  ;;  %v258_v19 = vsel %vm254_vm6, %v238_v57, %v241_v52 }
  0x9f   :  { %v264_v20 = vsel %vm256_vm9, %v247_v5, %v263_v16  ;;  %v267_v21 = vsel %vm257_vm10, %v253_v13, 1326507024  ;;  %v260_v22 = vsel %vm256_vm9, %v244_v53, %v259_v15  ;;  %v541_v25 = vadd.s32 1, %v3330_v11 }
  0xa0   :  { %v265_v23 = vsel %vm255_vm8, %v262_v14, %v264_v20  ;;  %v268_v24 = vsel %vm256_vm9, %v250_v12, %v267_v21  ;;  %v489_v28 = vadd.s32 536870912, %v488_v18  ;;  %v538_v38 = vand.u32 8388607, %v531_v62 }
  0xa1   :  { %v269_v29 = vsel %vm255_vm8, %v266_v60, %v268_v24  ;;  %v3380_v30 = vmul.u32.u64.low %v3320_v61, %v265_v23  ;;  %v3381_v31 = vmul.u32.u64.high %v3320_v61, %v265_v23, %v3380_v30  ;;  %vm542_vm11 = vcmp.gt.s32.totalorder %v541_v25, 0 }
  0xa2   :  { %v3385_v34 = vmul.u32.u64.low %v3320_v61, %v269_v29  ;;  %v3386_v36 = vmul.u32.u64.high %v3320_v61, %v269_v29, %v3385_v34  ;;  %v3390_v39 = vshrl.u32 %v489_v28, 30  ;;  %v261_v11 = vsel %vm255_vm8, %v258_v19, %v260_v22 }
  0xa3   :  { %v543_v40 = vsel %vm542_vm11, %v541_v25, 0  ;;  %v280_v43 = vadd.s32 1, %v3381_v31  ;;  %v3398_v44 = vadd.f32 %v3290_v27, %v3316_v58  ;;  %v277_v46 = vmul.u32 %v3320_v61, %v261_v11 }
  0xa4   :  { %v545_v41 = vand.u32 31, %v543_v40  ;;  %v491_v42 = vshll.u32 %v3390_v39, 30  ;;  %vm279_vm12 = vc.u32 %v3386_v36, %v3380_v30  ;;  %v539_v47 = vor.u32 8388608, %v538_v38 }
  0xa5   :  { %v281_v10 = vsel %vm279_vm12, %v280_v43, %v3381_v31  ;;  %v325_v54 = vand.u32 2147483647, %v3398_v44  ;;  %v484_v55 = vadd.s32 %v3353_v50, %v3350_v49  ;;  %v328_v3 = vand.u32 2139095040, %v3398_v44 }
  0xa6   :  { %v546_v48 = vsub.s32 32, %v545_v41  ;;  %v492_v51 = vsub.s32 %v488_v18, %v491_v42  ;;  %v282_v52 = vadd.s32 %v281_v10, %v277_v46  ;;  %v3407_v59 = vshll.u32 %v539_v47, 8 }
  0xa7   :  { %v544_v7 = vshrl.u32 %v543_v40, 5  ;;  %v554_v9 = vshll.u32 %v3185_v4, %v545_v41  ;;  %v548_v50 = vshll.u32 %v3183_v0, %v545_v41  ;;  %v551_v13 = vshll.u32 %v3184_v2, %v545_v41 }
  0xa8   :  { %v494_v53 = vsub.s32 0, %v492_v51  ;;  %v283_v57 = vadd.s32 536870912, %v282_v52  ;;  %v555_v58 = vshrl.u32 %v3186_v6, %v546_v48  ;;  %v549_v63 = vshrl.u32 %v3184_v2, %v546_v48 }
  0xa9   :  { %v552_v1 = vshrl.u32 %v3185_v4, %v546_v48  ;;  %v558_v12 = vshrl.u32 %v3187_v8, %v546_v48  ;;  %v557_v14 = vshll.u32 %v3186_v6, %v545_v41  ;;  %v514_v56 = vsub.s32 4, %v3390_v39 }
  0xaa   :  { %v2849_v61 = vmin.u32 %v494_v53, %v492_v51  ;;  %v3412_v5 = vshrl.u32 %v283_v57, 30  ;;  %v556_v16 = vor.u32 %v555_v58, %v554_v9  ;;  %v561_v60 = vshrl.u32 %v3188_v17, %v546_v48 }
  0xab   :  { %v550_v19 = vor.u32 %v549_v63, %v548_v50  ;;  %v553_v20 = vor.u32 %v552_v1, %v551_v13  ;;  %v559_v21 = vor.u32 %v558_v12, %v557_v14  ;;  %v547_v23 = vshrl.u32 %v3183_v0, %v546_v48 }
  0xac   :  { %v496_v49 = vclz %v2849_v61  ;;  %v285_v15 = vshll.u32 %v3412_v5, 30  ;;  %v560_v24 = vshll.u32 %v3187_v8, %v545_v41  ;;  %v329_v25 = vshrl.u32 %v328_v3, 23 }
  0xad   :  { %vm563_vm15 = vcmp.lt.s32.totalorder %v544_v7, 1  ;;  %vm564_vm0 = vcmp.lt.s32.totalorder %v544_v7, 2  ;;  %vm566_vm1 = vcmp.lt.s32.totalorder %v544_v7, 4  ;;  %vm565_vm2 = vcmp.lt.s32.totalorder %v544_v7, 3 }
  0xae   :  { %v2850_v18 = vadd.s32 4294967294, %v496_v49  ;;  %v3422_v22 = vsub.s32 %v282_v52, %v285_v15  ;;  %v562_v31 = vor.u32 %v561_v60, %v560_v24  ;;  %v568_v34 = vsel %vm566_vm1, %v556_v16, 2102212464 }
  0xaf   :  { %v571_v40 = vsel %vm563_vm15, %v550_v19, %v553_v20  ;;  %v572_v42 = vsel %vm566_vm1, %v559_v21, 920167782  ;;  %v567_v46 = vsel %vm563_vm15, %v547_v23, %v550_v19  ;;  %v575_v52 = vsel %vm563_vm15, %v553_v20, %v556_v16 }
  0xb0   :  { %vm2851_vm14 = vcmp.lt.s32.totalorder %v2850_v18, 0  ;;  %v288_v29 = vsub.s32 0, %v3422_v22  ;;  %v573_v10 = vsel %vm565_vm2, %v556_v16, %v572_v42  ;;  %v569_v57 = vsel %vm565_vm2, %v553_v20, %v568_v34 }
  0xb1   :  { %v499_v28 = vsel %vm2851_vm14, 0, %v2850_v18  ;;  %v574_v58 = vsel %vm564_vm0, %v571_v40, %v573_v10  ;;  %v576_v61 = vsel %vm566_vm1, %v562_v31, 1326507024  ;;  %vm224_vm3 = vcmp.lt.s32.totalorder %v3298_v33, 0  ;;  %v67_v40 = vpop.permute.xlu1 %66 }
  0xb2   :  { %v500_v38 = vsub.s32 32, %v499_v28  ;;  %v504_v11 = vsub.s32 4294967266, %v499_v28  ;;  %v501_v41 = vshll.u32 %v492_v51, %v499_v28  ;;  %v2841_v43 = vmin.u32 %v288_v29, %v3422_v22 }
  0xb3   :  { %v577_v3 = vsel %vm565_vm2, %v559_v21, %v576_v61  ;;  %v2844_v51 = vadd.s32 4294967169, %v329_v25  ;;  %v570_v13 = vsel %vm564_vm0, %v567_v46, %v569_v57  ;;  %v515_v16 = vsel %vm430_vm13, %v514_v56, %v3390_v39  ;;  %v62_v46 = vpop.permute.xlu0 %61 }
  0xb4   :  { %v502_v47 = vshrl.u32 %v484_v55, %v500_v38  ;;  %v505_v48 = vadd.s32 127, %v504_v11  ;;  %v290_v53 = vclz %v2841_v43  ;;  %v578_v12 = vsel %vm564_vm0, %v575_v52, %v577_v3 }
  0xb5   :  { %v3439_v55 = vmul.u32.u64.low %v3407_v59, %v574_v58  ;;  %v3440_v49 = vmul.u32.u64.high %v3407_v59, %v574_v58, %v3439_v55  ;;  %v3445_v14 = vmul.u32.u64.low %v3407_v59, %v578_v12  ;;  %v3446_v15 = vmul.u32.u64.high %v3407_v59, %v578_v12, %v3445_v14 }
  0xb6   :  { %v503_v63 = vor.u32 %v502_v47, %v501_v41  ;;  %v506_v1 = vshll.u32 %v505_v48, 23  ;;  %v2842_v9 = vadd.s32 4294967294, %v290_v53  ;;  %v278_v60 = vadd.s32 %v3380_v30, %v3386_v36 }
  0xb7   :  { %v335_v18 = vadd.s32 1, %v2844_v51  ;;  %v308_v23 = vsub.s32 4, %v3412_v5  ;;  %v586_v25 = vmul.u32 %v3407_v59, %v570_v13  ;;  %v589_v28 = vadd.s32 1, %v3440_v49 }
  0xb8   :  { %v507_v50 = vor.u32 4788187, %v506_v1  ;;  %vm2843_vm4 = vcmp.lt.s32.totalorder %v2842_v9, 0  ;;  %v510_v20 = vcvt.s32.f32 %v503_v63  ;;  %vm588_vm5 = vc.u32 %v3446_v15, %v3439_v55 }
  0xb9   :  { %v293_v21 = vsel %vm2843_vm4, 0, %v2842_v9  ;;  %vm336_vm6 = vcmp.gt.s32.totalorder %v335_v18, 0  ;;  %v590_v39 = vsel %vm588_vm5, %v589_v28, %v3440_v49  ;;  %vm3462_vm7 = vcmp.le.f32.partialorder %v428_v35, 0.7853982 }
  0xba   :  { %v508_v19 = vand.u32 2147483647, %v507_v50  ;;  %v294_v7 = vsub.s32 32, %v293_v21  ;;  %v298_v24 = vsub.s32 4294967266, %v293_v21  ;;  %v295_v31 = vshll.u32 %v3422_v22, %v293_v21 }
  0xbb   :  { %v337_v56 = vsel %vm336_vm6, %v335_v18, 0  ;;  %v591_v38 = vadd.s32 %v590_v39, %v586_v25  ;;  %v517_v22 = vsel %vm3462_vm7, 0, %v515_v16  ;;  %vm3470_vm8 = vcmp.le.f32.partialorder %v222_v37, 0.7853982 }
  0xbc   :  { %v511_v29 = vmul.f32 %v510_v20, %v508_v19  ;;  %v296_v30 = vshrl.u32 %v278_v60, %v294_v7  ;;  %v299_v36 = vadd.s32 127, %v298_v24  ;;  %v339_v11 = vand.u32 31, %v337_v56 }
  0xbd   :  { %v3479_v47 = vsel %vm224_vm3, %v308_v23, %v3412_v5  ;;  %v592_v48 = vadd.s32 536870912, %v591_v38  ;;  %v332_v53 = vand.u32 8388607, %v325_v54  ;;  %v173_v57 = vmul.f32 %v3285_v26, %v67_v40 }
  0xbe   :  { %v512_v59 = vxor.u32 2147483648, %v511_v29  ;;  %v297_v41 = vor.u32 %v296_v30, %v295_v31  ;;  %v300_v43 = vshll.u32 %v299_v36, 23  ;;  %v340_v10 = vsub.s32 32, %v339_v11 }
  0xbf   :  { %v3487_v58 = vand.u32 3, %v517_v22  ;;  %v3489_v61 = vshrl.u32 %v592_v48, 30  ;;  %v3492_v5 = vmul.f32 %v3285_v26, %v62_v46  ;;  %v311_v3 = vsel %vm3470_vm8, 0, %v3479_v47 }
  0xc0   :  { %v513_v35 = vsel %vm430_vm13, %v512_v59, %v511_v29  ;;  %v301_v52 = vor.u32 4788187, %v300_v43  ;;  %v304_v1 = vcvt.s32.f32 %v297_v41  ;;  %v343_v9 = vshrl.u32 %v3184_v2, %v340_v10 }
  0xc1   :  { %v516_v37 = vsel %vm3462_vm7, %v3295_v32, %v513_v35  ;;  %v594_v51 = vshll.u32 %v3489_v61, 30  ;;  %v346_v12 = vshrl.u32 %v3185_v4, %v340_v10  ;;  %v349_v49 = vshrl.u32 %v3186_v6, %v340_v10 }
  0xc2   :  { %3052 = vcosq.f32 %v516_v37  ;;  %v302_v63 = vand.u32 2147483647, %v301_v52  ;;  %v333_v13 = vor.u32 8388608, %v332_v53  ;;  %v3501_v14 = vshrl.u32 %v337_v56, 5 }
  0xc3   :  { %3054 = vsinq.f32 %v516_v37  ;;  %v352_v16 = vshrl.u32 %v3187_v8, %v340_v10  ;;  %v3504_v60 = vsub.s32 %v591_v38, %v594_v51  ;;  %v342_v18 = vshll.u32 %v3183_v0, %v339_v11 }
  0xc4   :  { %v305_v50 = vmul.f32 %v304_v1, %v302_v63  ;;  %v345_v19 = vshll.u32 %v3184_v2, %v339_v11  ;;  %v348_v20 = vshll.u32 %v3185_v4, %v339_v11  ;;  %v351_v23 = vshll.u32 %v3186_v6, %v339_v11 }
  0xc5   :  { %v354_v7 = vshll.u32 %v3187_v8, %v339_v11  ;;  %v355_v24 = vshrl.u32 %v3188_v17, %v340_v10  ;;  %v597_v25 = vsub.s32 0, %v3504_v60  ;;  %v344_v28 = vor.u32 %v343_v9, %v342_v18 }
  0xc6   :  { %v306_v21 = vxor.u32 2147483648, %v305_v50  ;;  %v347_v29 = vor.u32 %v346_v12, %v345_v19  ;;  %v350_v31 = vor.u32 %v349_v49, %v348_v20  ;;  %vm526_vm9 = vcmp.eq.s32.totalorder %v3487_v58, 2 }
  0xc7   :  { %v353_v36 = vor.u32 %v352_v16, %v351_v23  ;;  %v356_v39 = vor.u32 %v355_v24, %v354_v7  ;;  %v3517_v56 = vadd.f32 %v3290_v27, %v173_v57  ;;  %vm523_vm10 = vcmp.eq.s32.totalorder %v3487_v58, 0 }
  0xc8   :  { %v307_v30 = vsel %vm224_vm3, %v306_v21, %v305_v50  ;;  %v587_v59 = vadd.s32 %v3439_v55, %v3446_v15  ;;  %v2853_v38 = vmin.u32 %v597_v25, %v3504_v60  ;;  %v3526_v11 = vshll.u32 %v333_v13, 8 }
  0xc9   :  { %v310_v34 = vsel %vm3470_vm8, %v3298_v33, %v307_v30  ;;  %vm522_vm11 = vcmp.lt.s32.totalorder %v3487_v58, 2  ;;  %v341_v40 = vshrl.u32 %v3183_v0, %v340_v10  ;;  %vm357_vm12 = vcmp.lt.s32.totalorder %v3501_v14, 1 }
  0xca   :  { %3056 = vcosq.f32 %v310_v34  ;;  %vm360_vm13 = vcmp.lt.s32.totalorder %v3501_v14, 4  ;;  %vm520_vm14 = vweird.f32 %v3295_v32  ;;  %v599_v22 = vclz %v2853_v38 }
  0xcb   :  { %3058 = vsinq.f32 %v310_v34  ;;  %v362_v41 = vsel %vm360_vm13, %v350_v31, 2102212464  ;;  %v365_v55 = vsel %vm357_vm12, %v344_v28, %v347_v29  ;;  %vm533_vm15 = vcmp.lt.s32.totalorder %v3310_v45, 0 }
  0xcc   :  { %vm359_vm0 = vcmp.lt.s32.totalorder %v3501_v14, 3  ;;  %v366_v15 = vsel %vm360_vm13, %v353_v36, 920167782  ;;  %v369_v43 = vsel %vm357_vm12, %v347_v29, %v350_v31  ;;  %v370_v46 = vsel %vm360_vm13, %v356_v39, 1326507024 }
  0xcd   :  { %v2854_v35 = vadd.s32 4294967294, %v599_v22  ;;  %vm358_vm1 = vcmp.lt.s32.totalorder %v3501_v14, 2  ;;  %v367_v48 = vsel %vm359_vm0, %v350_v31, %v366_v15  ;;  %v371_v10 = vsel %vm359_vm0, %v353_v36, %v370_v46 }
  0xce   :  { %v361_v52 = vsel %vm357_vm12, %v341_v40, %v344_v28  ;;  %v363_v53 = vsel %vm359_vm0, %v347_v29, %v362_v41  ;;  %v368_v57 = vsel %vm358_vm1, %v365_v55, %v367_v48  ;;  %v372_v63 = vsel %vm358_vm1, %v369_v43, %v371_v10 }
  0xcf   :  { %v3053_v37 = vpop.eup %3052  ;;  %vm3548_vm2 = vcmp.le.f32.partialorder %v531_v62, 0.7853982  ;;  %vm2855_vm3 = vcmp.lt.s32.totalorder %v2854_v35, 0  ;;  %v3553_v12 = vmul.u32.u64.low %v3526_v11, %v372_v63  ;;  %v3554_v49 = vmul.u32.u64.high %v3526_v11, %v372_v63, %v3553_v12 }
  0xd0   :  { %v3055_v1 = vpop.eup %3054  ;;  %v527_v51 = vxor.u32 2147483648, %v3053_v37  ;;  %v602_v13 = vsel %vm2855_vm3, 0, %v2854_v35  ;;  %v3557_v16 = vmul.u32.u64.low %v3526_v11, %v368_v57  ;;  %v3558_v18 = vmul.u32.u64.high %v3526_v11, %v368_v57, %v3557_v16 }
  0xd1   :  { %v524_v50 = vxor.u32 2147483648, %v3055_v1  ;;  %v603_v20 = vsub.s32 32, %v602_v13  ;;  %v607_v62 = vsub.s32 4294967266, %v602_v13  ;;  %v617_v21 = vsub.s32 4, %v3489_v61 }
  0xd2   :  { %v528_v19 = vsel %vm526_vm9, %v527_v51, %v3055_v1  ;;  %v315_v7 = vand.u32 3, %v311_v3  ;;  %v364_v24 = vsel %vm358_vm1, %v361_v52, %v363_v53  ;;  %v740_v25 = vand.u32 2139095040, %v3517_v56 }
  0xd3   :  { %v525_v23 = vsel %vm523_vm10, %v3053_v37, %v524_v50  ;;  %v604_v29 = vshll.u32 %v3504_v60, %v602_v13  ;;  %v605_v31 = vshrl.u32 %v587_v59, %v603_v20  ;;  %v608_v30 = vadd.s32 127, %v607_v62 }
  0xd4   :  { %v529_v28 = vsel %vm522_vm11, %v525_v23, %v528_v19  ;;  %vm382_vm4 = vc.u32 %v3554_v49, %v3557_v16  ;;  %v383_v42 = vadd.s32 1, %v3558_v18  ;;  %v741_v47 = vshrl.u32 %v740_v25, 23 }
  0xd5   :  { %v530_v36 = vsel %vm520_vm14, nan, %v529_v28  ;;  %v606_v3 = vor.u32 %v605_v31, %v604_v29  ;;  %v609_v14 = vshll.u32 %v608_v30, 23  ;;  %v618_v58 = vsel %vm533_vm15, %v617_v21, %v3489_v61 }
  0xd6   :  { %2799 = vst [vmem:[#allocation2 + $0x10] sm:$0xff] %v530_v36  ;;  %v380_v60 = vmul.u32 %v3526_v11, %v364_v24  ;;  %v384_v39 = vsel %vm382_vm4, %v383_v42, %v3558_v18  ;;  %v737_v32 = vand.u32 2147483647, %v3517_v56  ;;  %v2860_v34 = vadd.s32 4294967169, %v741_v47 }
  0xd7   :  { %v3589_v59 = vadd.f32 %v3290_v27, %v3492_v5  ;;  %v3057_v38 = vpop.eup %3056  ;;  %vm316_vm5 = vcmp.lt.s32.totalorder %v315_v7, 2  ;;  %vm317_vm6 = vcmp.eq.s32.totalorder %v315_v7, 0  ;;  %v610_v40 = vor.u32 4788187, %v609_v14 }
  0xd8   :  { %v385_v22 = vadd.s32 %v384_v39, %v380_v60  ;;  %v3059_v41 = vpop.eup %3058  ;;  %vm320_vm7 = vcmp.eq.s32.totalorder %v315_v7, 2  ;;  %v321_v55 = vxor.u32 2147483648, %v3057_v38  ;;  %v620_v61 = vsel %vm3548_vm2, 0, %v618_v58 }
  0xd9   :  { %v747_v11 = vadd.s32 1, %v2860_v34  ;;  %v318_v15 = vxor.u32 2147483648, %v3059_v41  ;;  %v611_v43 = vand.u32 2147483647, %v610_v40  ;;  %v613_v46 = vcvt.s32.f32 %v606_v3 }
  0xda   :  { %v386_v35 = vadd.s32 536870912, %v385_v22  ;;  %v322_v48 = vsel %vm320_vm7, %v321_v55, %v3059_v41  ;;  %v744_v5 = vand.u32 8388607, %v737_v32  ;;  %v637_v10 = vand.u32 2139095040, %v3589_v59 }
  0xdb   :  { %vm748_vm8 = vcmp.gt.s32.totalorder %v747_v11, 0  ;;  %v319_v37 = vsel %vm317_vm6, %v3057_v38, %v318_v15  ;;  %v614_v52 = vmul.f32 %v613_v46, %v611_v43  ;;  %vm314_vm9 = vweird.f32 %v3298_v33 }
  0xdc   :  { %v3597_v53 = vshrl.u32 %v386_v35, 30  ;;  %v749_v57 = vsel %vm748_vm8, %v747_v11, 0  ;;  %v323_v63 = vsel %vm316_vm5, %v319_v37, %v322_v48  ;;  %v3602_v13 = vand.u32 3, %v620_v61 }
  0xdd   :  { %v751_v1 = vand.u32 31, %v749_v57  ;;  %v324_v51 = vsel %vm314_vm9, nan, %v323_v63  ;;  %v615_v12 = vxor.u32 2147483648, %v614_v52  ;;  %v745_v18 = vor.u32 8388608, %v744_v5 }
  0xde   :  { %v388_v50 = vshll.u32 %v3597_v53, 30  ;;  %2797 = vst [vmem:[#allocation2] sm:$0xff] %v324_v51  ;;  %v638_v20 = vshrl.u32 %v637_v10, 23  ;;  %v750_v23 = vshrl.u32 %v749_v57, 5  ;;  %v634_v14 = vand.u32 2147483647, %v3589_v59 }
  0xdf   :  { %v752_v19 = vsub.s32 32, %v751_v1  ;;  %v616_v62 = vsel %vm533_vm15, %v615_v12, %v614_v52  ;;  %v754_v33 = vshll.u32 %v3183_v0, %v751_v1  ;;  %v757_v25 = vshll.u32 %v3184_v2, %v751_v1 }
  0xe0   :  { %v3606_v21 = vsub.s32 %v385_v22, %v388_v50  ;;  %v619_v7 = vsel %vm3548_vm2, %v3310_v45, %v616_v62  ;;  %v760_v28 = vshll.u32 %v3185_v4, %v751_v1  ;;  %v763_v30 = vshll.u32 %v3186_v6, %v751_v1 }
  0xe1   :  { %v755_v24 = vshrl.u32 %v3184_v2, %v752_v19  ;;  %3060 = vcosq.f32 %v619_v7  ;;  %v758_v31 = vshrl.u32 %v3185_v4, %v752_v19  ;;  %v761_v42 = vshrl.u32 %v3186_v6, %v752_v19 }
  0xe2   :  { %v391_v29 = vsub.s32 0, %v3606_v21  ;;  %3062 = vsinq.f32 %v619_v7  ;;  %v764_v9 = vshrl.u32 %v3187_v8, %v752_v19  ;;  %v3621_v3 = vshll.u32 %v745_v18, 8 }
  0xe3   :  { %v756_v36 = vor.u32 %v755_v24, %v754_v33  ;;  %v2856_v58 = vadd.s32 4294967169, %v638_v20  ;;  %v753_v60 = vshrl.u32 %v3183_v0, %v752_v19  ;;  %v759_v39 = vor.u32 %v758_v31, %v757_v25 }
  0xe4   :  { %v2845_v47 = vmin.u32 %v391_v29, %v3606_v21  ;;  %v762_v34 = vor.u32 %v761_v42, %v760_v28  ;;  %v765_v38 = vor.u32 %v764_v9, %v763_v30  ;;  %v766_v22 = vshll.u32 %v3187_v8, %v751_v1 }
  0xe5   :  { %v767_v41 = vshrl.u32 %v3188_v17, %v752_v19  ;;  %vm769_vm10 = vcmp.lt.s32.totalorder %v750_v23, 1  ;;  %vm770_vm11 = vcmp.lt.s32.totalorder %v750_v23, 2  ;;  %vm771_vm12 = vcmp.lt.s32.totalorder %v750_v23, 3 }
  0xe6   :  { %v393_v40 = vclz %v2845_v47  ;;  %vm772_vm13 = vcmp.lt.s32.totalorder %v750_v23, 4  ;;  %v777_v55 = vsel %vm769_vm10, %v756_v36, %v759_v39  ;;  %v773_v46 = vsel %vm769_vm10, %v753_v60, %v756_v36 }
  0xe7   :  { %v768_v11 = vor.u32 %v767_v41, %v766_v22  ;;  %v774_v15 = vsel %vm772_vm13, %v762_v34, 2102212464  ;;  %v778_v43 = vsel %vm772_vm13, %v765_v38, 920167782  ;;  %v781_v48 = vsel %vm769_vm10, %v759_v39, %v762_v34 }
  0xe8   :  { %v2846_v61 = vadd.s32 4294967294, %v393_v40  ;;  %v779_v35 = vsel %vm771_vm12, %v762_v34, %v778_v43  ;;  %v644_v5 = vadd.s32 1, %v2856_v58  ;;  %v775_v10 = vsel %vm771_vm12, %v759_v39, %v774_v15 }
  0xe9   :  { %v780_v37 = vsel %vm770_vm11, %v777_v55, %v779_v35  ;;  %v782_v52 = vsel %vm772_vm13, %v768_v11, 1326507024  ;;  %vm327_vm15 = vcmp.lt.s32.totalorder %v3398_v44, 0  ;;  %vm623_vm0 = vweird.f32 %v3310_v45 }
  0xea   :  { %vm2847_vm14 = vcmp.lt.s32.totalorder %v2846_v61, 0  ;;  %v783_v63 = vsel %vm771_vm12, %v765_v38, %v782_v52  ;;  %v3633_v1 = vmul.u32.u64.low %v3621_v3, %v780_v37  ;;  %v3634_v51 = vmul.u32.u64.high %v3621_v3, %v780_v37, %v3633_v1 }
  0xeb   :  { %v396_v57 = vsel %vm2847_vm14, 0, %v2846_v61  ;;  %v381_v12 = vadd.s32 %v3557_v16, %v3554_v49  ;;  %v784_v19 = vsel %vm770_vm11, %v781_v48, %v783_v63  ;;  %v776_v20 = vsel %vm770_vm11, %v773_v46, %v775_v10 }
  0xec   :  { %v397_v50 = vsub.s32 32, %v396_v57  ;;  %v401_v18 = vsub.s32 4294967266, %v396_v57  ;;  %v3643_v62 = vmul.u32.u64.low %v3621_v3, %v784_v19  ;;  %v3644_v33 = vmul.u32.u64.high %v3621_v3, %v784_v19, %v3643_v62 }
  0xed   :  { %vm645_vm1 = vcmp.gt.s32.totalorder %v644_v5, 0  ;;  %v398_v7 = vshll.u32 %v3606_v21, %v396_v57  ;;  %vm629_vm2 = vcmp.eq.s32.totalorder %v3602_v13, 2  ;;  %v795_v49 = vadd.s32 1, %v3634_v51 }
  0xee   :  { %v399_v24 = vshrl.u32 %v381_v12, %v397_v50  ;;  %v402_v25 = vadd.s32 127, %v401_v18  ;;  %v646_v28 = vsel %vm645_vm1, %v644_v5, 0  ;;  %v3061_v29 = vpop.eup %3060  ;;  %v641_v16 = vand.u32 8388607, %v634_v14  ;;  %v77_v12 = vpop.permute.xlu1 %76 }
  0xef   :  { %v648_v23 = vand.u32 31, %v646_v28  ;;  %v3063_v31 = vpop.eup %3062  ;;  %v630_v30 = vxor.u32 2147483648, %v3061_v29  ;;  %v411_v9 = vsub.s32 4, %v3597_v53  ;;  %v792_v21 = vmul.u32 %v3621_v3, %v776_v20 }
  0xf0   :  { %v400_v36 = vor.u32 %v399_v24, %v398_v7  ;;  %v403_v42 = vshll.u32 %v402_v25, 23  ;;  %v627_v47 = vxor.u32 2147483648, %v3063_v31  ;;  %vm794_vm3 = vc.u32 %v3644_v33, %v3633_v1 }
  0xf1   :  { %v649_v58 = vsub.s32 32, %v648_v23  ;;  %vm626_vm4 = vcmp.eq.s32.totalorder %v3602_v13, 0  ;;  %v631_v60 = vsel %vm629_vm2, %v630_v30, %v3063_v31  ;;  %v796_v34 = vsel %vm794_vm3, %v795_v49, %v3634_v51  ;;  %v72_v31 = vpop.permute.xlu0 %71 }
  0xf2   :  { %v404_v39 = vor.u32 4788187, %v403_v42  ;;  %vm625_vm5 = vcmp.lt.s32.totalorder %v3602_v13, 2  ;;  %v628_v38 = vsel %vm626_vm4, %v3061_v29, %v627_v47  ;;  %v797_v40 = vadd.s32 %v796_v34, %v792_v21 }
  0xf3   :  { %v642_v22 = vor.u32 8388608, %v641_v16  ;;  %v632_v41 = vsel %vm625_vm5, %v628_v38, %v631_v60  ;;  %v407_v61 = vcvt.s32.f32 %v400_v36  ;;  %v412_v3 = vsel %vm327_vm15, %v411_v9, %v3597_v53 }
  0xf4   :  { %v405_v55 = vand.u32 2147483647, %v404_v39  ;;  %v633_v11 = vsel %vm623_vm0, nan, %v632_v41  ;;  %v798_v15 = vadd.s32 536870912, %v797_v40  ;;  %v3663_v43 = vshrl.u32 %v646_v28, 5 }
  0xf5   :  { %v652_v46 = vshrl.u32 %v3184_v2, %v649_v58  ;;  %2800 = vst [vmem:[#allocation2 + $0x18] sm:$0xff] %v633_v11  ;;  %v651_v35 = vshll.u32 %v3183_v0, %v648_v23  ;;  %v655_v48 = vshrl.u32 %v3185_v4, %v649_v58  ;;  %v658_v5 = vshrl.u32 %v3186_v6, %v649_v58 }
  0xf6   :  { %v408_v13 = vmul.f32 %v407_v61, %v405_v55  ;;  %v3669_v10 = vshrl.u32 %v798_v15, 30  ;;  %v654_v53 = vshll.u32 %v3184_v2, %v648_v23  ;;  %v657_v45 = vshll.u32 %v3185_v4, %v648_v23 }
  0xf7   :  { %v661_v37 = vshrl.u32 %v3187_v8, %v649_v58  ;;  %v660_v57 = vshll.u32 %v3186_v6, %v648_v23  ;;  %v663_v63 = vshll.u32 %v3187_v8, %v648_v23  ;;  %v664_v51 = vshrl.u32 %v3188_v17, %v649_v58 }
  0xf8   :  { %v409_v52 = vxor.u32 2147483648, %v408_v13  ;;  %vm3679_vm6 = vcmp.le.f32.partialorder %v325_v54, 0.7853982  ;;  %v800_v18 = vshll.u32 %v3669_v10, 30  ;;  %v653_v19 = vor.u32 %v652_v46, %v651_v35 }
  0xf9   :  { %v659_v20 = vor.u32 %v658_v5, %v657_v45  ;;  %v656_v7 = vor.u32 %v655_v48, %v654_v53  ;;  %v662_v24 = vor.u32 %v661_v37, %v660_v57  ;;  %v665_v25 = vor.u32 %v664_v51, %v663_v63  ;;  %v3735_v57 = vld [vmem:[%s5219_s1 + $0x1] ss:$0 sm:$0xff] }
  0xfa   :  { %v410_v62 = vsel %vm327_vm15, %v409_v52, %v408_v13  ;;  %v414_v54 = vsel %vm3679_vm6, 0, %v412_v3  ;;  %v3691_v29 = vsub.s32 %v797_v40, %v800_v18  ;;  %v175_v49 = vmul.f32 %v3285_v26, %v77_v12 }
  0xfb   :  { %v413_v28 = vsel %vm3679_vm6, %v3398_v44, %v410_v62  ;;  %v650_v16 = vshrl.u32 %v3183_v0, %v649_v58  ;;  %vm669_vm7 = vcmp.lt.s32.totalorder %v3663_v43, 4  ;;  %v682_v23 = vshll.u32 %v642_v22, 8  ;;  %v3706_v58 = vld [vmem:[%s5219_s1] ss:$0 sm:$0xff] }
  0xfc   :  { %3064 = vcosq.f32 %v413_v28  ;;  %v803_v30 = vsub.s32 0, %v3691_v29  ;;  %vm666_vm8 = vcmp.lt.s32.totalorder %v3663_v43, 1  ;;  %v671_v36 = vsel %vm669_vm7, %v659_v20, 2102212464 }
  0xfd   :  { %3066 = vsinq.f32 %v413_v28  ;;  %v674_v42 = vsel %vm666_vm8, %v653_v19, %v656_v7  ;;  %v675_v9 = vsel %vm669_vm7, %v662_v24, 920167782  ;;  %v678_v47 = vsel %vm666_vm8, %v656_v7, %v659_v20 }
  0xfe   :  { %v679_v21 = vsel %vm669_vm7, %v665_v25, 1326507024  ;;  %v2861_v60 = vmin.u32 %v803_v30, %v3691_v29  ;;  %vm668_vm9 = vcmp.lt.s32.totalorder %v3663_v43, 3  ;;  %v3701_v26 = vadd.f32 %v3290_v27, %v175_v49 }
  0xff   :  { %v174_v39 = vmul.f32 %v3706_v58, %v72_v31  ;;  %vm667_vm10 = vcmp.lt.s32.totalorder %v3663_v43, 2  ;;  %v670_v34 = vsel %vm666_vm8, %v650_v16, %v653_v19  ;;  %v676_v38 = vsel %vm668_vm9, %v659_v20, %v675_v9 }
 0x100   :  { %v680_v40 = vsel %vm668_vm9, %v662_v24, %v679_v21  ;;  %v805_v22 = vclz %v2861_v60  ;;  %v672_v41 = vsel %vm668_vm9, %v656_v7, %v671_v36  ;;  %v677_v55 = vsel %vm667_vm10, %v674_v42, %v676_v38 }
 0x101   :  { %v681_v61 = vsel %vm667_vm10, %v678_v47, %v680_v40  ;;  %v3713_v27 = vmul.u32.u64.low %v682_v23, %v677_v55  ;;  %v3714_v15 = vmul.u32.u64.high %v682_v23, %v677_v55, %v3713_v27  ;;  %v946_v13 = vand.u32 2139095040, %v3701_v26  ;;  %v87_v55 = vpop.permute.xlu1 %86 }
 0x102   :  { %v3710_v3 = vmul.u32.u64.low %v682_v23, %v681_v61  ;;  %v3711_v11 = vmul.u32.u64.high %v682_v23, %v681_v61, %v3710_v3  ;;  %v2862_v46 = vadd.s32 4294967294, %v805_v22  ;;  %v418_v35 = vand.u32 3, %v414_v54 }
 0x103   :  { %vm3720_vm11 = vcmp.le.f32.partialorder %v737_v32, 0.7853982  ;;  %v793_v48 = vadd.s32 %v3633_v1, %v3644_v33  ;;  %v673_v5 = vsel %vm667_vm10, %v670_v34, %v672_v41  ;;  %v823_v53 = vsub.s32 4, %v3669_v10 }
 0x104   :  { %vm2863_vm12 = vcmp.lt.s32.totalorder %v2862_v46, 0  ;;  %v943_v45 = vand.u32 2147483647, %v3701_v26  ;;  %v947_v37 = vshrl.u32 %v946_v13, 23  ;;  %vm417_vm13 = vweird.f32 %v3398_v44 }
 0x105   :  { %v808_v52 = vsel %vm2863_vm12, 0, %v2862_v46  ;;  %vm691_vm14 = vc.u32 %v3711_v11, %v3713_v27  ;;  %v692_v32 = vadd.s32 1, %v3714_v15  ;;  %v3738_v1 = vadd.f32 %v3735_v57, %v174_v39 }
 0x106   :  { %v809_v33 = vsub.s32 32, %v808_v52  ;;  %v813_v63 = vsub.s32 4294967266, %v808_v52  ;;  %v689_v51 = vmul.u32 %v682_v23, %v673_v5  ;;  %v2868_v12 = vadd.s32 4294967169, %v947_v37 }
 0x107   :  { %vm423_vm15 = vcmp.eq.s32.totalorder %v418_v35, 2  ;;  %vm739_vm0 = vcmp.lt.s32.totalorder %v3517_v56, 0  ;;  %v810_v50 = vshll.u32 %v3691_v29, %v808_v52  ;;  %v693_v18 = vsel %vm691_vm14, %v692_v32, %v3714_v15 }
 0x108   :  { %v811_v20 = vshrl.u32 %v793_v48, %v809_v33  ;;  %v814_v62 = vadd.s32 127, %v813_v63  ;;  %v694_v7 = vadd.s32 %v693_v18, %v689_v51  ;;  %v953_v24 = vadd.s32 1, %v2868_v12 }
 0x109   :  { %v3065_v19 = vpop.eup %3064  ;;  %v824_v54 = vsel %vm739_vm0, %v823_v53, %v3669_v10  ;;  %v950_v49 = vand.u32 8388607, %v943_v45  ;;  %v843_v16 = vand.u32 2139095040, %v3738_v1  ;;  %vm419_vm1 = vcmp.lt.s32.totalorder %v418_v35, 2 }
 0x10a   :  { %v3067_v25 = vpop.eup %3066  ;;  %v424_v28 = vxor.u32 2147483648, %v3065_v19  ;;  %v812_v29 = vor.u32 %v811_v20, %v810_v50  ;;  %v815_v31 = vshll.u32 %v814_v62, 23  ;;  %v695_v30 = vadd.s32 536870912, %v694_v7 }
 0x10b   :  { %v421_v23 = vxor.u32 2147483648, %v3067_v25  ;;  %vm420_vm2 = vcmp.eq.s32.totalorder %v418_v35, 0  ;;  %vm954_vm3 = vcmp.gt.s32.totalorder %v953_v24, 0  ;;  %v826_v47 = vsel %vm3720_vm11, 0, %v824_v54 }
 0x10c   :  { %v425_v36 = vsel %vm423_vm15, %v424_v28, %v3067_v25  ;;  %v816_v9 = vor.u32 4788187, %v815_v31  ;;  %v3752_v10 = vshrl.u32 %v695_v30, 30  ;;  %v951_v60 = vor.u32 8388608, %v950_v49 }
 0x10d   :  { %v422_v42 = vsel %vm420_vm2, %v3065_v19, %v421_v23  ;;  %v955_v39 = vsel %vm954_vm3, %v953_v24, 0  ;;  %v844_v34 = vshrl.u32 %v843_v16, 23  ;;  %v819_v22 = vcvt.s32.f32 %v812_v29 }
 0x10e   :  { %v426_v21 = vsel %vm419_vm1, %v422_v42, %v425_v36  ;;  %v817_v40 = vand.u32 2147483647, %v816_v9  ;;  %v697_v41 = vshll.u32 %v3752_v10, 30  ;;  %v957_v61 = vand.u32 31, %v955_v39 }
 0x10f   :  { %v427_v38 = vsel %vm417_vm13, nan, %v426_v21  ;;  %v3757_v15 = vand.u32 3, %v826_v47  ;;  %v690_v13 = vadd.s32 %v3713_v27, %v3711_v11  ;;  %v3761_v48 = vshll.u32 %v951_v60, 8 }
 0x110   :  { %2798 = vst [vmem:[#allocation2 + $0x8] sm:$0xff] %v427_v38  ;;  %v820_v3 = vmul.f32 %v819_v22, %v817_v40  ;;  %v698_v46 = vsub.s32 %v694_v7, %v697_v41  ;;  %v958_v35 = vsub.s32 32, %v957_v61  ;;  %v3764_v44 = vmul.f32 %v3706_v58, %v87_v55 }
 0x111   :  { %v960_v37 = vshll.u32 %v3183_v0, %v957_v61  ;;  %v2864_v52 = vadd.s32 4294967169, %v844_v34  ;;  %v963_v33 = vshll.u32 %v3184_v2, %v957_v61  ;;  %v956_v12 = vshrl.u32 %v955_v39, 5 }
 0x112   :  { %v821_v5 = vxor.u32 2147483648, %v820_v3  ;;  %v700_v53 = vsub.s32 0, %v698_v46  ;;  %v961_v32 = vshrl.u32 %v3184_v2, %v958_v35  ;;  %v964_v63 = vshrl.u32 %v3185_v4, %v958_v35 }
 0x113   :  { %v967_v51 = vshrl.u32 %v3186_v6, %v958_v35  ;;  %v966_v50 = vshll.u32 %v3185_v4, %v957_v61  ;;  %v840_v62 = vand.u32 2147483647, %v3738_v1  ;;  %v969_v25 = vshll.u32 %v3186_v6, %v957_v61 }
 0x114   :  { %v822_v11 = vsel %vm739_vm0, %v821_v5, %v820_v3  ;;  %v2857_v27 = vmin.u32 %v700_v53, %v698_v46  ;;  %v962_v19 = vor.u32 %v961_v32, %v960_v37  ;;  %v965_v20 = vor.u32 %v964_v63, %v963_v33 }
 0x115   :  { %v825_v18 = vsel %vm3720_vm11, %v3517_v56, %v822_v11  ;;  %v968_v24 = vor.u32 %v967_v51, %v966_v50  ;;  %v970_v28 = vshrl.u32 %v3187_v8, %v958_v35  ;;  %v972_v54 = vshll.u32 %v3187_v8, %v957_v61 }
 0x116   :  { %3068 = vcosq.f32 %v825_v18  ;;  %v702_v7 = vclz %v2857_v27  ;;  %v973_v49 = vshrl.u32 %v3188_v17, %v958_v35  ;;  %v959_v43 = vshrl.u32 %v3183_v0, %v958_v35 }
 0x117   :  { %3070 = vsinq.f32 %v825_v18  ;;  %vm975_vm4 = vcmp.lt.s32.totalorder %v956_v12, 1  ;;  %v850_v23 = vadd.s32 1, %v2864_v52  ;;  %v971_v29 = vor.u32 %v970_v28, %v969_v25 }
 0x118   :  { %v2858_v16 = vadd.s32 4294967294, %v702_v7  ;;  %v974_v31 = vor.u32 %v973_v49, %v972_v54  ;;  %vm976_vm5 = vcmp.lt.s32.totalorder %v956_v12, 2  ;;  %vm978_vm6 = vcmp.lt.s32.totalorder %v956_v12, 4 }
 0x119   :  { %vm977_vm8 = vcmp.lt.s32.totalorder %v956_v12, 3  ;;  %v980_v30 = vsel %vm978_vm6, %v968_v24, 2102212464  ;;  %v983_v36 = vsel %vm975_vm4, %v962_v19, %v965_v20  ;;  %v984_v9 = vsel %vm978_vm6, %v971_v29, 920167782 }
 0x11a   :  { %vm2859_vm7 = vcmp.lt.s32.totalorder %v2858_v16, 0  ;;  %v987_v47 = vsel %vm975_vm4, %v965_v20, %v968_v24  ;;  %v988_v21 = vsel %vm978_vm6, %v974_v31, 1326507024  ;;  %v979_v34 = vsel %vm975_vm4, %v959_v43, %v962_v19 }
 0x11b   :  { %v705_v42 = vsel %vm2859_vm7, 0, %v2858_v16  ;;  %v981_v38 = vsel %vm977_vm8, %v965_v20, %v980_v30  ;;  %v985_v22 = vsel %vm977_vm8, %v968_v24, %v984_v9  ;;  %v989_v41 = vsel %vm977_vm8, %v971_v29, %v988_v21 }
 0x11c   :  { %v706_v60 = vsub.s32 32, %v705_v42  ;;  %v710_v39 = vsub.s32 4294967266, %v705_v42  ;;  %v707_v40 = vshll.u32 %v698_v46, %v705_v42  ;;  %vm851_vm9 = vcmp.gt.s32.totalorder %v850_v23, 0 }
 0x11d   :  { %v986_v3 = vsel %vm976_vm5, %v983_v36, %v985_v22  ;;  %v990_v35 = vsel %vm976_vm5, %v987_v47, %v989_v41  ;;  %vm829_vm10 = vweird.f32 %v3517_v56  ;;  %v852_v33 = vsel %vm851_vm9, %v850_v23, 0 }
 0x11e   :  { %v708_v55 = vshrl.u32 %v690_v13, %v706_v60  ;;  %v711_v61 = vadd.s32 127, %v710_v39  ;;  %v3789_v5 = vmul.u32.u64.low %v3761_v48, %v990_v35  ;;  %v3790_v53 = vmul.u32.u64.high %v3761_v48, %v990_v35, %v3789_v5 }
 0x11f   :  { %v3793_v37 = vmul.u32.u64.low %v3761_v48, %v986_v3  ;;  %v3794_v52 = vmul.u32.u64.high %v3761_v48, %v986_v3, %v3793_v37  ;;  %vm831_vm11 = vcmp.lt.s32.totalorder %v3757_v15, 2  ;;  %vm832_vm12 = vcmp.eq.s32.totalorder %v3757_v15, 0 }
 0x120   :  { %v709_v46 = vor.u32 %v708_v55, %v707_v40  ;;  %v712_v32 = vshll.u32 %v711_v61, 23  ;;  %vm636_vm13 = vcmp.lt.s32.totalorder %v3589_v59, 0  ;;  %v982_v13 = vsel %vm976_vm5, %v979_v34, %v981_v38 }
 0x121   :  { %v854_v63 = vand.u32 31, %v852_v33  ;;  %vm835_vm14 = vcmp.eq.s32.totalorder %v3757_v15, 2  ;;  %vm3805_vm15 = vcmp.le.f32.partialorder %v634_v14, 0.7853982  ;;  %v720_v27 = vsub.s32 4, %v3752_v10 }
 0x122   :  { %v713_v11 = vor.u32 4788187, %v712_v32  ;;  %v847_v50 = vand.u32 8388607, %v840_v62  ;;  %vm1000_vm0 = vc.u32 %v3790_v53, %v3793_v37  ;;  %v1001_v12 = vadd.s32 1, %v3794_v52 }
 0x123   :  { %v3069_v18 = vpop.eup %3068  ;;  %v855_v19 = vsub.s32 32, %v854_v63  ;;  %v3817_v20 = vadd.f32 %v3735_v57, %v3764_v44  ;;  %v716_v25 = vcvt.s32.f32 %v709_v46  ;;  %v998_v28 = vmul.u32 %v3761_v48, %v982_v13 }
 0x124   :  { %v3071_v14 = vpop.eup %3070  ;;  %v836_v7 = vxor.u32 2147483648, %v3069_v18  ;;  %v714_v24 = vand.u32 2147483647, %v713_v11  ;;  %v1002_v49 = vsel %vm1000_vm0, %v1001_v12, %v3794_v52  ;;  %v857_v16 = vshll.u32 %v3183_v0, %v854_v63 }
 0x125   :  { %v833_v54 = vxor.u32 2147483648, %v3071_v14  ;;  %v858_v43 = vshrl.u32 %v3184_v2, %v855_v19  ;;  %v1003_v31 = vadd.s32 %v1002_v49, %v998_v28  ;;  %v861_v44 = vshrl.u32 %v3185_v4, %v855_v19 }
 0x126   :  { %v837_v23 = vsel %vm835_vm14, %v836_v7, %v3071_v14  ;;  %v717_v29 = vmul.f32 %v716_v25, %v714_v24  ;;  %v3828_v36 = vshrl.u32 %v852_v33, 5  ;;  %v860_v42 = vshll.u32 %v3184_v2, %v854_v63 }
 0x127   :  { %v834_v30 = vsel %vm832_vm12, %v3069_v18, %v833_v54  ;;  %v859_v48 = vor.u32 %v858_v43, %v857_v16  ;;  %v1004_v21 = vadd.s32 536870912, %v1003_v31  ;;  %v864_v60 = vshrl.u32 %v3186_v6, %v855_v19 }
 0x128   :  { %v838_v9 = vsel %vm831_vm11, %v834_v30, %v837_v23  ;;  %v718_v47 = vxor.u32 2147483648, %v717_v29  ;;  %v863_v34 = vshll.u32 %v3185_v4, %v854_v63  ;;  %v866_v38 = vshll.u32 %v3186_v6, %v854_v63 }
 0x129   :  { %v839_v39 = vsel %vm829_vm10, nan, %v838_v9  ;;  %v867_v40 = vshrl.u32 %v3187_v8, %v855_v19  ;;  %v3841_v41 = vshrl.u32 %v1004_v21, 30  ;;  %v862_v15 = vor.u32 %v861_v44, %v860_v42 }
 0x12a   :  { %2802 = vst [vmem:[#allocation2 + $0x28] sm:$0xff] %v839_v39  ;;  %v719_v22 = vsel %vm636_vm13, %v718_v47, %v717_v29  ;;  %v870_v55 = vshrl.u32 %v3188_v17, %v855_v19  ;;  %v848_v61 = vor.u32 8388608, %v847_v50  ;;  %v869_v35 = vshll.u32 %v3187_v8, %v854_v63  ;;  %v82_v29 = vpop.permute.xlu0 %81 }
 0x12b   :  { %v722_v56 = vsel %vm3805_vm15, %v3589_v59, %v719_v22  ;;  %v868_v3 = vor.u32 %v867_v40, %v866_v38  ;;  %v721_v5 = vsel %vm636_vm13, %v720_v27, %v3752_v10  ;;  %v1006_v52 = vshll.u32 %v3841_v41, 30 }
 0x12c   :  { %3072 = vcosq.f32 %v722_v56  ;;  %v865_v46 = vor.u32 %v864_v60, %v863_v34  ;;  %v871_v32 = vor.u32 %v870_v55, %v869_v35  ;;  %vm872_vm1 = vcmp.lt.s32.totalorder %v3828_v36, 1 }
 0x12d   :  { %3074 = vsinq.f32 %v722_v56  ;;  %v1152_v33 = vand.u32 2139095040, %v3817_v20  ;;  %v3854_v13 = vsub.s32 %v1003_v31, %v1006_v52  ;;  %vm875_vm2 = vcmp.lt.s32.totalorder %v3828_v36, 4  ;;  %v97_v31 = vpop.permute.xlu1 %96 }
 0x12e   :  { %v880_v63 = vsel %vm872_vm1, %v859_v48, %v862_v15  ;;  %v723_v10 = vsel %vm3805_vm15, 0, %v721_v5  ;;  %vm874_vm3 = vcmp.lt.s32.totalorder %v3828_v36, 3  ;;  %v881_v11 = vsel %vm875_vm2, %v868_v3, 920167782 }
 0x12f   :  { %v888_v27 = vshll.u32 %v848_v61, 8  ;;  %v1009_v50 = vsub.s32 0, %v3854_v13  ;;  %vm873_vm4 = vcmp.lt.s32.totalorder %v3828_v36, 2  ;;  %v877_v18 = vsel %vm875_vm2, %v865_v46, 2102212464 }
 0x130   :  { %v882_v12 = vsel %vm874_vm3, %v865_v46, %v881_v11  ;;  %v884_v7 = vsel %vm872_vm1, %v862_v15, %v865_v46  ;;  %v885_v51 = vsel %vm875_vm2, %v871_v32, 1326507024  ;;  %v1153_v24 = vshrl.u32 %v1152_v33, 23 }
 0x131   :  { %v883_v14 = vsel %vm873_vm4, %v880_v63, %v882_v12  ;;  %v727_v25 = vand.u32 3, %v723_v10  ;;  %v2869_v28 = vmin.u32 %v1009_v50, %v3854_v13  ;;  %v856_v54 = vshrl.u32 %v3183_v0, %v855_v19 }
 0x132   :  { %v886_v49 = vsel %vm874_vm3, %v868_v3, %v885_v51  ;;  %v3874_v16 = vmul.u32.u64.low %v888_v27, %v883_v14  ;;  %v3875_v43 = vmul.u32.u64.high %v888_v27, %v883_v14, %v3874_v16  ;;  %v2876_v23 = vadd.s32 4294967169, %v1153_v24 }
 0x133   :  { %v1011_v44 = vclz %v2869_v28  ;;  %v876_v30 = vsel %vm872_vm1, %v856_v54, %v859_v48  ;;  %v878_v42 = vsel %vm874_vm3, %v862_v15, %v877_v18  ;;  %v887_v19 = vsel %vm873_vm4, %v884_v7, %v886_v49 }
 0x134   :  { %v3884_v9 = vmul.u32.u64.low %v888_v27, %v887_v19  ;;  %v3885_v47 = vmul.u32.u64.high %v888_v27, %v887_v19, %v3884_v9  ;;  %v1149_v21 = vand.u32 2147483647, %v3817_v20  ;;  %v1159_v60 = vadd.s32 1, %v2876_v23 }
 0x135   :  { %vm726_vm5 = vweird.f32 %v3589_v59  ;;  %v2870_v39 = vadd.s32 4294967294, %v1011_v44  ;;  %v176_v34 = vmul.f32 %v3706_v58, %v82_v29  ;;  %v3891_v38 = vmul.f32 %v3706_v58, %v97_v31 }
 0x136   :  { %vm728_vm6 = vcmp.lt.s32.totalorder %v727_v25, 2  ;;  %v879_v48 = vsel %vm873_vm4, %v876_v30, %v878_v42  ;;  %v898_v40 = vadd.s32 1, %v3875_v43  ;;  %vm1160_vm7 = vcmp.gt.s32.totalorder %v1159_v60, 0 }
 0x137   :  { %vm729_vm8 = vcmp.eq.s32.totalorder %v727_v25, 0  ;;  %vm732_vm9 = vcmp.eq.s32.totalorder %v727_v25, 2  ;;  %vm2871_vm10 = vcmp.lt.s32.totalorder %v2870_v39, 0  ;;  %v1161_v22 = vsel %vm1160_vm7, %v1159_v60, 0 }
 0x138   :  { %v999_v55 = vadd.s32 %v3793_v37, %v3790_v53  ;;  %v1014_v56 = vsel %vm2871_vm10, 0, %v2870_v39  ;;  %vm897_vm11 = vc.u32 %v3885_v47, %v3874_v16  ;;  %v1156_v61 = vand.u32 8388607, %v1149_v21 }
 0x139   :  { %v3073_v15 = vpop.eup %3072  ;;  %v1015_v35 = vsub.s32 32, %v1014_v56  ;;  %v1019_v5 = vsub.s32 4294967266, %v1014_v56  ;;  %v895_v52 = vmul.u32 %v888_v27, %v879_v48  ;;  %vm945_vm12 = vcmp.lt.s32.totalorder %v3701_v26, 0 }
 0x13a   :  { %v3075_v36 = vpop.eup %3074  ;;  %v733_v3 = vxor.u32 2147483648, %v3073_v15  ;;  %v1016_v32 = vshll.u32 %v3854_v13, %v1014_v56  ;;  %v899_v33 = vsel %vm897_vm11, %v898_v40, %v3875_v43  ;;  %v1163_v53 = vand.u32 31, %v1161_v22 }
 0x13b   :  { %v730_v46 = vxor.u32 2147483648, %v3075_v36  ;;  %v1017_v63 = vshrl.u32 %v999_v55, %v1015_v35  ;;  %v1020_v10 = vadd.s32 127, %v1019_v5  ;;  %v900_v11 = vadd.s32 %v899_v33, %v895_v52 }
 0x13c   :  { %v734_v37 = vsel %vm732_vm9, %v733_v3, %v3075_v36  ;;  %v1029_v18 = vsub.s32 4, %v3841_v41  ;;  %v1157_v12 = vor.u32 8388608, %v1156_v61  ;;  %v1164_v14 = vsub.s32 32, %v1163_v53 }
 0x13d   :  { %v731_v50 = vsel %vm729_vm8, %v3073_v15, %v730_v46  ;;  %v1018_v7 = vor.u32 %v1017_v63, %v1016_v32  ;;  %v1021_v51 = vshll.u32 %v1020_v10, 23  ;;  %v901_v24 = vadd.s32 536870912, %v900_v11 }
 0x13e   :  { %v735_v27 = vsel %vm728_vm6, %v731_v50, %v734_v37  ;;  %v1167_v28 = vshrl.u32 %v3184_v2, %v1164_v14  ;;  %v1170_v54 = vshrl.u32 %v3185_v4, %v1164_v14  ;;  %v3914_v49 = vadd.f32 %v3735_v57, %v176_v34 }
 0x13f   :  { %v736_v13 = vsel %vm726_vm5, nan, %v735_v27  ;;  %vm3918_vm13 = vcmp.le.f32.partialorder %v943_v45, 0.7853982  ;;  %v1022_v25 = vor.u32 4788187, %v1021_v51  ;;  %v3922_v23 = vshrl.u32 %v901_v24, 30 }
 0x140   :  { %2801 = vst [vmem:[#allocation2 + $0x20] sm:$0xff] %v736_v13  ;;  %v1162_v29 = vshrl.u32 %v1161_v22, 5  ;;  %v1166_v59 = vshll.u32 %v3183_v0, %v1163_v53  ;;  %v1025_v31 = vcvt.s32.f32 %v1018_v7  ;;  %v1169_v44 = vshll.u32 %v3184_v2, %v1163_v53 }
 0x141   :  { %v1172_v30 = vshll.u32 %v3185_v4, %v1163_v53  ;;  %v1173_v42 = vshrl.u32 %v3186_v6, %v1164_v14  ;;  %v1023_v19 = vand.u32 2147483647, %v1022_v25  ;;  %v903_v9 = vshll.u32 %v3922_v23, 30 }
 0x142   :  { %v1175_v45 = vshll.u32 %v3186_v6, %v1163_v53  ;;  %v1176_v60 = vshrl.u32 %v3187_v8, %v1164_v14  ;;  %v1168_v39 = vor.u32 %v1167_v28, %v1166_v59  ;;  %v1171_v34 = vor.u32 %v1170_v54, %v1169_v44 }
 0x143   :  { %v1174_v48 = vor.u32 %v1173_v42, %v1172_v30  ;;  %v1179_v40 = vshrl.u32 %v3188_v17, %v1164_v14  ;;  %v1026_v22 = vmul.f32 %v1025_v31, %v1023_v19  ;;  %v1030_v15 = vsel %vm945_vm12, %v1029_v18, %v3841_v41 }
 0x144   :  { %v3935_v55 = vsub.s32 %v900_v11, %v903_v9  ;;  %v1177_v56 = vor.u32 %v1176_v60, %v1175_v45  ;;  %v1178_v61 = vshll.u32 %v3187_v8, %v1163_v53  ;;  %vm1181_vm14 = vcmp.lt.s32.totalorder %v1162_v29, 1 }
 0x145   :  { %v1197_v36 = vshll.u32 %v1157_v12, 8  ;;  %v1049_v3 = vand.u32 2139095040, %v3914_v49  ;;  %v1027_v35 = vxor.u32 2147483648, %v1026_v22  ;;  %v1165_v52 = vshrl.u32 %v3183_v0, %v1164_v14 }
 0x146   :  { %v906_v5 = vsub.s32 0, %v3935_v55  ;;  %vm1184_vm15 = vcmp.lt.s32.totalorder %v1162_v29, 4  ;;  %v1180_v46 = vor.u32 %v1179_v40, %v1178_v61  ;;  %v1189_v41 = vsel %vm1181_vm14, %v1168_v39, %v1171_v34 }
 0x147   :  { %v1186_v32 = vsel %vm1184_vm15, %v1174_v48, 2102212464  ;;  %v1190_v33 = vsel %vm1184_vm15, %v1177_v56, 920167782  ;;  %v1028_v53 = vsel %vm945_vm12, %v1027_v35, %v1026_v22  ;;  %vm1182_vm0 = vcmp.lt.s32.totalorder %v1162_v29, 2 }
 0x148   :  { %v2865_v37 = vmin.u32 %v906_v5, %v3935_v55  ;;  %vm1183_vm1 = vcmp.lt.s32.totalorder %v1162_v29, 3  ;;  %v1031_v63 = vsel %vm3918_vm13, %v3701_v26, %v1028_v53  ;;  %v1185_v10 = vsel %vm1181_vm14, %v1165_v52, %v1168_v39 }
 0x149   :  { %v1191_v11 = vsel %vm1183_vm1, %v1174_v48, %v1190_v33  ;;  %v1193_v50 = vsel %vm1181_vm14, %v1171_v34, %v1174_v48  ;;  %3076 = vcosq.f32 %v1031_v63  ;;  %v1187_v12 = vsel %vm1183_vm1, %v1171_v34, %v1186_v32 }
 0x14a   :  { %v908_v18 = vclz %v2865_v37  ;;  %v1192_v14 = vsel %vm1182_vm0, %v1189_v41, %v1191_v11  ;;  %3078 = vsinq.f32 %v1031_v63  ;;  %v1194_v27 = vsel %vm1184_vm15, %v1180_v46, 1326507024 }
 0x14b   :  { %v3954_v7 = vmul.u32.u64.low %v1197_v36, %v1192_v14  ;;  %v3955_v51 = vmul.u32.u64.high %v1197_v36, %v1192_v14, %v3954_v7  ;;  %vm842_vm2 = vcmp.lt.s32.totalorder %v3738_v1, 0  ;;  %v926_v13 = vsub.s32 4, %v3922_v23 }
 0x14c   :  { %v2866_v24 = vadd.s32 4294967294, %v908_v18  ;;  %v1195_v28 = vsel %vm1183_vm1, %v1177_v56, %v1194_v27  ;;  %v1032_v54 = vsel %vm3918_vm13, 0, %v1030_v15  ;;  %vm3964_vm3 = vcmp.le.f32.partialorder %v840_v62, 0.7853982 }
 0x14d   :  { %v1196_v59 = vsel %vm1182_vm0, %v1193_v50, %v1195_v28  ;;  %v1050_v31 = vshrl.u32 %v1049_v3, 23  ;;  %v1188_v44 = vsel %vm1182_vm0, %v1185_v10, %v1187_v12  ;;  %v1207_v9 = vadd.s32 1, %v3955_v51 }
 0x14e   :  { %vm2867_vm4 = vcmp.lt.s32.totalorder %v2866_v24, 0  ;;  %v3970_v30 = vmul.u32.u64.low %v1197_v36, %v1196_v59  ;;  %v3971_v42 = vmul.u32.u64.high %v1197_v36, %v1196_v59, %v3970_v30  ;;  %v1046_v43 = vand.u32 2147483647, %v3914_v49 }
 0x14f   :  { %v911_v19 = vsel %vm2867_vm4, 0, %v2866_v24  ;;  %v2872_v45 = vadd.s32 4294967169, %v1050_v31  ;;  %v896_v62 = vadd.s32 %v3874_v16, %v3885_v47  ;;  %v927_v34 = vsel %vm842_vm2, %v926_v13, %v3922_v23 }
 0x150   :  { %v912_v60 = vsub.s32 32, %v911_v19  ;;  %v916_v39 = vsub.s32 4294967266, %v911_v19  ;;  %v1036_v29 = vand.u32 3, %v1032_v54  ;;  %v1204_v48 = vmul.u32 %v1197_v36, %v1188_v44 }
 0x151   :  { %v1056_v40 = vadd.s32 1, %v2872_v45  ;;  %v3982_v22 = vadd.f32 %v3735_v57, %v3891_v38  ;;  %v913_v15 = vshll.u32 %v3935_v55, %v911_v19  ;;  %vm1206_vm5 = vc.u32 %v3971_v42, %v3954_v7 }
 0x152   :  { %v914_v56 = vshrl.u32 %v896_v62, %v912_v60  ;;  %v917_v61 = vadd.s32 127, %v916_v39  ;;  %v929_v16 = vsel %vm3964_vm3, 0, %v927_v34  ;;  %v1208_v47 = vsel %vm1206_vm5, %v1207_v9, %v3955_v51 }
 0x153   :  { %v1053_v23 = vand.u32 8388607, %v1046_v43  ;;  %vm1057_vm6 = vcmp.gt.s32.totalorder %v1056_v40, 0  ;;  %v1209_v38 = vadd.s32 %v1208_v47, %v1204_v48  ;;  %vm1035_vm7 = vweird.f32 %v3701_v26 }
 0x154   :  { %v915_v36 = vor.u32 %v914_v56, %v913_v15  ;;  %v918_v3 = vshll.u32 %v917_v61, 23  ;;  %v1058_v35 = vsel %vm1057_vm6, %v1056_v40, 0  ;;  %vm1037_vm8 = vcmp.lt.s32.totalorder %v1036_v29, 2 }
 0x155   :  { %v1060_v55 = vand.u32 31, %v1058_v35  ;;  %v1358_v5 = vand.u32 2139095040, %v3982_v22  ;;  %vm1038_vm9 = vcmp.eq.s32.totalorder %v1036_v29, 0  ;;  %vm1041_vm10 = vcmp.eq.s32.totalorder %v1036_v29, 2 }
 0x156   :  { %v919_v52 = vor.u32 4788187, %v918_v3  ;;  %v1210_v46 = vadd.s32 536870912, %v1209_v38  ;;  %v3077_v32 = vpop.eup %3076  ;;  %v3994_v41 = vand.u32 3, %v929_v16  ;;  %v1054_v33 = vor.u32 8388608, %v1053_v23 }
 0x157   :  { %v1061_v53 = vsub.s32 32, %v1060_v55  ;;  %v1355_v37 = vand.u32 2147483647, %v3982_v22  ;;  %v3079_v63 = vpop.eup %3078  ;;  %v1042_v10 = vxor.u32 2147483648, %v3077_v32  ;;  %v922_v50 = vcvt.s32.f32 %v915_v36 }
 0x158   :  { %v920_v11 = vand.u32 2147483647, %v919_v52  ;;  %v3997_v18 = vshrl.u32 %v1210_v46, 30  ;;  %v1039_v12 = vxor.u32 2147483648, %v3079_v63  ;;  %v1059_v14 = vshrl.u32 %v1058_v35, 5 }
 0x159   :  { %v1064_v27 = vshrl.u32 %v3184_v2, %v1061_v53  ;;  %v1359_v51 = vshrl.u32 %v1358_v5, 23  ;;  %v1043_v24 = vsel %vm1041_vm10, %v1042_v10, %v3079_v63  ;;  %v1067_v54 = vshrl.u32 %v3185_v4, %v1061_v53 }
 0x15a   :  { %v923_v13 = vmul.f32 %v922_v50, %v920_v11  ;;  %v1212_v28 = vshll.u32 %v3997_v18, 30  ;;  %v1040_v59 = vsel %vm1038_vm9, %v3077_v32, %v1039_v12  ;;  %v1063_v31 = vshll.u32 %v3183_v0, %v1060_v55 }
 0x15b   :  { %v1066_v44 = vshll.u32 %v3184_v2, %v1060_v55  ;;  %v1070_v30 = vshrl.u32 %v3186_v6, %v1061_v53  ;;  %v1044_v19 = vsel %vm1037_vm8, %v1040_v59, %v1043_v24  ;;  %v1069_v62 = vshll.u32 %v3185_v4, %v1060_v55 }
 0x15c   :  { %v924_v9 = vxor.u32 2147483648, %v923_v13  ;;  %v4008_v45 = vsub.s32 %v1209_v38, %v1212_v28  ;;  %v1045_v60 = vsel %vm1035_vm7, nan, %v1044_v19  ;;  %v1065_v39 = vor.u32 %v1064_v27, %v1063_v31  ;;  %v92_v19 = vpop.permute.xlu0 %91 }
 0x15d   :  { %v1072_v34 = vshll.u32 %v3186_v6, %v1060_v55  ;;  %v1073_v48 = vshrl.u32 %v3187_v8, %v1061_v53  ;;  %2804 = vst [vmem:[#allocation2 + $0x38] sm:$0xff] %v1045_v60  ;;  %v1068_v15 = vor.u32 %v1067_v54, %v1066_v44  ;;  %v1071_v56 = vor.u32 %v1070_v30, %v1069_v62 }
 0x15e   :  { %v925_v40 = vsel %vm842_vm2, %v924_v9, %v923_v13  ;;  %v1215_v29 = vsub.s32 0, %v4008_v45  ;;  %v1075_v26 = vshll.u32 %v3187_v8, %v1060_v55  ;;  %v1076_v47 = vshrl.u32 %v3188_v17, %v1061_v53 }
 0x15f   :  { %v928_v61 = vsel %vm3964_vm3, %v3738_v1, %v925_v40  ;;  %v1074_v16 = vor.u32 %v1073_v48, %v1072_v34  ;;  %v1094_v36 = vshll.u32 %v1054_v33, 8  ;;  %v2884_v3 = vadd.s32 4294967169, %v1359_v51 }
 0x160   :  { %3080 = vcosq.f32 %v928_v61  ;;  %v2877_v23 = vmin.u32 %v1215_v29, %v4008_v45  ;;  %v1062_v38 = vshrl.u32 %v3183_v0, %v1061_v53  ;;  %v1077_v35 = vor.u32 %v1076_v47, %v1075_v26 }
 0x161   :  { %3082 = vsinq.f32 %v928_v61  ;;  %vm1078_vm11 = vcmp.lt.s32.totalorder %v1059_v14, 1  ;;  %vm1079_vm12 = vcmp.lt.s32.totalorder %v1059_v14, 2  ;;  %vm1080_vm13 = vcmp.lt.s32.totalorder %v1059_v14, 3 }
 0x162   :  { %v1217_v5 = vclz %v2877_v23  ;;  %vm1081_vm14 = vcmp.lt.s32.totalorder %v1059_v14, 4  ;;  %v1086_v52 = vsel %vm1078_vm11, %v1065_v39, %v1068_v15  ;;  %v1090_v55 = vsel %vm1078_vm11, %v1068_v15, %v1071_v56 }
 0x163   :  { %v1083_v25 = vsel %vm1081_vm14, %v1071_v56, 2102212464  ;;  %v1087_v46 = vsel %vm1081_vm14, %v1074_v16, 920167782  ;;  %v1082_v63 = vsel %vm1078_vm11, %v1062_v38, %v1065_v39  ;;  %v1091_v11 = vsel %vm1081_vm14, %v1077_v35, 1326507024 }
 0x164   :  { %v2878_v32 = vadd.s32 4294967294, %v1217_v5  ;;  %v1088_v10 = vsel %vm1080_vm13, %v1071_v56, %v1087_v46  ;;  %v1084_v50 = vsel %vm1080_vm13, %v1068_v15, %v1083_v25  ;;  %v1092_v12 = vsel %vm1080_vm13, %v1074_v16, %v1091_v11 }
 0x165   :  { %v1089_v33 = vsel %vm1079_vm12, %v1086_v52, %v1088_v10  ;;  %v1365_v27 = vadd.s32 1, %v2884_v3  ;;  %v1093_v53 = vsel %vm1079_vm12, %v1090_v55, %v1092_v12  ;;  %v1205_v13 = vadd.s32 %v3954_v7, %v3971_v42 }
 0x166   :  { %vm2879_vm15 = vcmp.lt.s32.totalorder %v2878_v32, 0  ;;  %v4027_v51 = vmul.u32.u64.low %v1094_v36, %v1089_v33  ;;  %v4028_v24 = vmul.u32.u64.high %v1094_v36, %v1089_v33, %v4027_v51  ;;  %v1085_v30 = vsel %vm1079_vm12, %v1082_v63, %v1084_v50 }
 0x167   :  { %v1220_v28 = vsel %vm2879_vm15, 0, %v2878_v32  ;;  %v4033_v54 = vmul.u32.u64.low %v1094_v36, %v1093_v53  ;;  %v4034_v59 = vmul.u32.u64.high %v1094_v36, %v1093_v53, %v4033_v54  ;;  %vm1366_vm0 = vcmp.gt.s32.totalorder %v1365_v27, 0 }
 0x168   :  { %v1221_v31 = vsub.s32 32, %v1220_v28  ;;  %v1225_v44 = vsub.s32 4294967266, %v1220_v28  ;;  %vm1151_vm1 = vcmp.lt.s32.totalorder %v3817_v20, 0  ;;  %v1235_v9 = vsub.s32 4, %v3997_v18 }
 0x169   :  { %v1362_v62 = vand.u32 8388607, %v1355_v37  ;;  %v1367_v60 = vsel %vm1366_vm0, %v1365_v27, 0  ;;  %vm932_vm2 = vweird.f32 %v3738_v1  ;;  %v1222_v7 = vshll.u32 %v4008_v45, %v1220_v28 }
 0x16a   :  { %v1223_v42 = vshrl.u32 %v1205_v13, %v1221_v31  ;;  %v1226_v39 = vadd.s32 127, %v1225_v44  ;;  %v1104_v34 = vadd.s32 1, %v4028_v24  ;;  %v1101_v14 = vmul.u32 %v1094_v36, %v1085_v30 }
 0x16b   :  { %vm1103_vm3 = vc.u32 %v4034_v59, %v4027_v51  ;;  %v1369_v48 = vand.u32 31, %v1367_v60  ;;  %v4047_v40 = vmul.f32 %v3706_v58, %v92_v19  ;;  %vm934_vm4 = vcmp.lt.s32.totalorder %v3994_v41, 2 }
 0x16c   :  { %v1224_v29 = vor.u32 %v1223_v42, %v1222_v7  ;;  %v1227_v15 = vshll.u32 %v1226_v39, 23  ;;  %v1105_v56 = vsel %vm1103_vm3, %v1104_v34, %v4028_v24  ;;  %vm935_vm5 = vcmp.eq.s32.totalorder %v3994_v41, 0 }
 0x16d   :  { %v3081_v61 = vpop.eup %3080  ;;  %vm938_vm6 = vcmp.eq.s32.totalorder %v3994_v41, 2  ;;  %vm4055_vm7 = vcmp.le.f32.partialorder %v1149_v21, 0.7853982  ;;  %v1106_v16 = vadd.s32 %v1105_v56, %v1101_v14  ;;  %v1370_v58 = vsub.s32 32, %v1369_v48 }
 0x16e   :  { %v3083_v26 = vpop.eup %3082  ;;  %v939_v47 = vxor.u32 2147483648, %v3081_v61  ;;  %v1228_v23 = vor.u32 4788187, %v1227_v15  ;;  %v4062_v36 = vsel %vm1151_vm1, %v1235_v9, %v3997_v18  ;;  %v1363_v3 = vor.u32 8388608, %v1362_v62 }
 0x16f   :  { %v936_v38 = vxor.u32 2147483648, %v3083_v26  ;;  %v1231_v35 = vcvt.s32.f32 %v1224_v29  ;;  %v1107_v5 = vadd.s32 536870912, %v1106_v16  ;;  %v4064_v25 = vshrl.u32 %v1367_v60, 5 }
 0x170   :  { %v940_v21 = vsel %vm938_vm6, %v939_v47, %v3083_v26  ;;  %v1229_v52 = vand.u32 2147483647, %v1228_v23  ;;  %v1373_v46 = vshrl.u32 %v3184_v2, %v1370_v58  ;;  %v1376_v55 = vshrl.u32 %v3185_v4, %v1370_v58 }
 0x171   :  { %v937_v32 = vsel %vm935_vm5, %v3081_v61, %v936_v38  ;;  %v4070_v63 = vshrl.u32 %v1107_v5, 30  ;;  %v1372_v18 = vshll.u32 %v3183_v0, %v1369_v48  ;;  %v1379_v10 = vshrl.u32 %v3186_v6, %v1370_v58 }
 0x172   :  { %v941_v11 = vsel %vm934_vm4, %v937_v32, %v940_v21  ;;  %v1232_v50 = vmul.f32 %v1231_v35, %v1229_v52  ;;  %v1375_v33 = vshll.u32 %v3184_v2, %v1369_v48  ;;  %v1378_v12 = vshll.u32 %v3185_v4, %v1369_v48 }
 0x173   :  { %v942_v27 = vsel %vm932_vm2, nan, %v941_v11  ;;  %v1109_v53 = vshll.u32 %v4070_v63, 30  ;;  %v1381_v24 = vshll.u32 %v3186_v6, %v1369_v48  ;;  %v1382_v13 = vshrl.u32 %v3187_v8, %v1370_v58 }
 0x174   :  { %2803 = vst [vmem:[#allocation2 + $0x30] sm:$0xff] %v942_v27  ;;  %v1233_v28 = vxor.u32 2147483648, %v1232_v50  ;;  %v1374_v54 = vor.u32 %v1373_v46, %v1372_v18  ;;  %v1377_v31 = vor.u32 %v1376_v55, %v1375_v33  ;;  %v1385_v41 = vshrl.u32 %v3188_v17, %v1370_v58 }
 0x175   :  { %v4084_v44 = vsub.s32 %v1106_v16, %v1109_v53  ;;  %v1380_v30 = vor.u32 %v1379_v10, %v1378_v12  ;;  %v1383_v19 = vor.u32 %v1382_v13, %v1381_v24  ;;  %v1384_v9 = vshll.u32 %v3187_v8, %v1369_v48 }
 0x176   :  { %v1234_v1 = vsel %vm1151_vm1, %v1233_v28, %v1232_v50  ;;  %v1238_v62 = vsel %vm4055_vm7, 0, %v4062_v36  ;;  %vm1387_vm8 = vcmp.lt.s32.totalorder %v4064_v25, 1  ;;  %v1403_v60 = vshll.u32 %v1363_v3, 8  ;;  %v4143_v50 = vld [vmem:[%s5219_s1] ss:$0 sm:$0xff] }
 0x177   :  { %v1237_v7 = vsel %vm4055_vm7, %v3817_v20, %v1234_v1  ;;  %v1112_v42 = vsub.s32 0, %v4084_v44  ;;  %v1386_v39 = vor.u32 %v1385_v41, %v1384_v9  ;;  %vm1390_vm9 = vcmp.lt.s32.totalorder %v4064_v25, 4 }
 0x178   :  { %3084 = vcosq.f32 %v1237_v7  ;;  %v1371_v34 = vshrl.u32 %v3183_v0, %v1370_v58  ;;  %v1395_v14 = vsel %vm1387_vm8, %v1374_v54, %v1377_v31  ;;  %v1396_v48 = vsel %vm1390_vm9, %v1383_v19, 920167782 }
 0x179   :  { %3086 = vsinq.f32 %v1237_v7  ;;  %v2873_v29 = vmin.u32 %v1112_v42, %v4084_v44  ;;  %vm1389_vm10 = vcmp.lt.s32.totalorder %v4064_v25, 3  ;;  %v1392_v15 = vsel %vm1390_vm9, %v1380_v30, 2102212464 }
 0x17a   :  { %vm1388_vm11 = vcmp.lt.s32.totalorder %v4064_v25, 2  ;;  %v1397_v56 = vsel %vm1389_vm10, %v1380_v30, %v1396_v48  ;;  %v1399_v61 = vsel %vm1387_vm8, %v1377_v31, %v1380_v30  ;;  %v4112_v45 = vadd.f32 %v3735_v57, %v4047_v40  ;;  %v107_v40 = vpop.permute.xlu1 %106 }
 0x17b   :  { %v1114_v16 = vclz %v2873_v29  ;;  %v1391_v58 = vsel %vm1387_vm8, %v1371_v34, %v1374_v54  ;;  %v1398_v26 = vsel %vm1388_vm11, %v1395_v14, %v1397_v56  ;;  %v1400_v47 = vsel %vm1390_vm9, %v1386_v39, 1326507024 }
 0x17c   :  { %v1393_v23 = vsel %vm1389_vm10, %v1377_v31, %v1392_v15  ;;  %v1401_v36 = vsel %vm1389_vm10, %v1383_v19, %v1400_v47  ;;  %v4120_v3 = vmul.u32.u64.low %v1403_v60, %v1398_v26  ;;  %v4121_v38 = vmul.u32.u64.high %v1403_v60, %v1398_v26, %v4120_v3 }
 0x17d   :  { %v2874_v35 = vadd.s32 4294967294, %v1114_v16  ;;  %v1402_v57 = vsel %vm1388_vm11, %v1399_v61, %v1401_v36  ;;  %vm1048_vm12 = vcmp.lt.s32.totalorder %v3914_v49, 0  ;;  %v1255_v52 = vand.u32 2139095040, %v4112_v45 }
 0x17e   :  { %v4127_v5 = vmul.u32.u64.low %v1403_v60, %v1402_v57  ;;  %v4128_v21 = vmul.u32.u64.high %v1403_v60, %v1402_v57, %v4127_v5  ;;  %v1242_v46 = vand.u32 3, %v1238_v62  ;;  %vm4133_vm13 = vcmp.le.f32.partialorder %v1046_v43, 0.7853982  ;;  %v4161_v62 = vld [vmem:[%s5219_s1 + $0x1] ss:$0 sm:$0xff] }
 0x17f   :  { %vm2875_vm14 = vcmp.lt.s32.totalorder %v2874_v35, 0  ;;  %v1394_v32 = vsel %vm1388_vm11, %v1391_v58, %v1393_v23  ;;  %v1413_v10 = vadd.s32 1, %v4121_v38  ;;  %v1256_v11 = vshrl.u32 %v1255_v52, 23 }
 0x180   :  { %v1117_v18 = vsel %vm2875_vm14, 0, %v2874_v35  ;;  %v181_v33 = vmul.f32 %v4143_v50, %v107_v40  ;;  %v1102_v43 = vadd.s32 %v4027_v51, %v4034_v59  ;;  %v1132_v53 = vsub.s32 4, %v4070_v63 }
 0x181   :  { %v1118_v12 = vsub.s32 32, %v1117_v18  ;;  %v1122_v27 = vsub.s32 4294967266, %v1117_v18  ;;  %vm1241_vm15 = vweird.f32 %v3817_v20  ;;  %v1410_v25 = vmul.u32 %v1403_v60, %v1394_v32 }
 0x182   :  { %vm1412_vm0 = vc.u32 %v4128_v21, %v4120_v3  ;;  %v1252_v24 = vand.u32 2147483647, %v4112_v45  ;;  %v2880_v13 = vadd.s32 4294967169, %v1256_v11  ;;  %v1119_v28 = vshll.u32 %v4084_v44, %v1117_v18 }
 0x183   :  { %v1120_v54 = vshrl.u32 %v1102_v43, %v1118_v12  ;;  %v1123_v31 = vadd.s32 127, %v1122_v27  ;;  %v1414_v41 = vsel %vm1412_vm0, %v1413_v10, %v4121_v38  ;;  %vm1243_vm1 = vcmp.lt.s32.totalorder %v1242_v46, 2 }
 0x184   :  { %vm1244_vm2 = vcmp.eq.s32.totalorder %v1242_v46, 0  ;;  %v1415_v51 = vadd.s32 %v1414_v41, %v1410_v25  ;;  %v1262_v59 = vadd.s32 1, %v2880_v13  ;;  %v1133_v1 = vsel %vm1048_vm12, %v1132_v53, %v4070_v63  ;;  %v102_v63 = vpop.permute.xlu0 %101 }
 0x185   :  { %v3085_v30 = vpop.eup %3084  ;;  %v1121_v19 = vor.u32 %v1120_v54, %v1119_v28  ;;  %v1124_v9 = vshll.u32 %v1123_v31, 23  ;;  %v4164_v44 = vadd.f32 %v4161_v62, %v181_v33  ;;  %vm1247_vm3 = vcmp.eq.s32.totalorder %v1242_v46, 2 }
 0x186   :  { %v3087_v60 = vpop.eup %3086  ;;  %v1248_v7 = vxor.u32 2147483648, %v3085_v30  ;;  %v1416_v42 = vadd.s32 536870912, %v1415_v51  ;;  %vm1263_vm4 = vcmp.gt.s32.totalorder %v1262_v59, 0  ;;  %v1259_v14 = vand.u32 8388607, %v1252_v24 }
 0x187   :  { %v1245_v39 = vxor.u32 2147483648, %v3087_v60  ;;  %v1125_v34 = vor.u32 4788187, %v1124_v9  ;;  %v1264_v48 = vsel %vm1263_vm4, %v1262_v59, 0  ;;  %v1135_v15 = vsel %vm4133_vm13, 0, %v1133_v1 }
 0x188   :  { %v1249_v29 = vsel %vm1247_vm3, %v1248_v7, %v3087_v60  ;;  %v4170_v56 = vshrl.u32 %v1416_v42, 30  ;;  %v1266_v61 = vand.u32 31, %v1264_v48  ;;  %v1128_v26 = vcvt.s32.f32 %v1121_v19 }
 0x189   :  { %v1246_v16 = vsel %vm1244_vm2, %v3085_v30, %v1245_v39  ;;  %v1126_v58 = vand.u32 2147483647, %v1125_v34  ;;  %v1564_v47 = vand.u32 2139095040, %v4164_v44  ;;  %v4177_v35 = vmul.f32 %v4143_v50, %v102_v63 }
 0x18a   :  { %v1250_v23 = vsel %vm1243_vm1, %v1246_v16, %v1249_v29  ;;  %v1418_v36 = vshll.u32 %v4170_v56, 30  ;;  %v1267_v38 = vsub.s32 32, %v1266_v61  ;;  %v4181_v5 = vand.u32 3, %v1135_v15 }
 0x18b   :  { %v1251_v57 = vsel %vm1241_vm15, nan, %v1250_v23  ;;  %v1129_v40 = vmul.f32 %v1128_v26, %v1126_v58  ;;  %v1260_v52 = vor.u32 8388608, %v1259_v14  ;;  %v1411_v32 = vadd.s32 %v4120_v3, %v4128_v21 }
 0x18c   :  { %2806 = vst [vmem:[#allocation2 + $0x48] sm:$0xff] %v1251_v57  ;;  %v4185_v18 = vsub.s32 %v1415_v51, %v1418_v36  ;;  %v1270_v46 = vshrl.u32 %v3184_v2, %v1267_v38  ;;  %v1561_v10 = vand.u32 2147483647, %v4164_v44  ;;  %v1265_v33 = vshrl.u32 %v1264_v48, 5 }
 0x18d   :  { %v1130_v11 = vxor.u32 2147483648, %v1129_v40  ;;  %v1273_v43 = vshrl.u32 %v3185_v4, %v1267_v38  ;;  %v1565_v20 = vshrl.u32 %v1564_v47, 23  ;;  %v1269_v27 = vshll.u32 %v3183_v0, %v1266_v61 }
 0x18e   :  { %v1421_v12 = vsub.s32 0, %v4185_v18  ;;  %v1272_v53 = vshll.u32 %v3184_v2, %v1266_v61  ;;  %v1276_v25 = vshrl.u32 %v3186_v6, %v1267_v38  ;;  %v1275_v21 = vshll.u32 %v3185_v4, %v1266_v61 }
 0x18f   :  { %v1131_v3 = vsel %vm1048_vm12, %v1130_v11, %v1129_v40  ;;  %v1278_v13 = vshll.u32 %v3186_v6, %v1266_v61  ;;  %v1279_v28 = vshrl.u32 %v3187_v8, %v1267_v38  ;;  %v1271_v41 = vor.u32 %v1270_v46, %v1269_v27 }
 0x190   :  { %v1134_v54 = vsel %vm4133_vm13, %v3914_v49, %v1131_v3  ;;  %v2885_v31 = vmin.u32 %v1421_v12, %v4185_v18  ;;  %v4203_v51 = vshll.u32 %v1260_v52, 8  ;;  %v1274_v59 = vor.u32 %v1273_v43, %v1272_v53 }
 0x191   :  { %3088 = vcosq.f32 %v1134_v54  ;;  %v1277_v30 = vor.u32 %v1276_v25, %v1275_v21  ;;  %v1280_v19 = vor.u32 %v1279_v28, %v1278_v13  ;;  %v1281_v1 = vshll.u32 %v3187_v8, %v1266_v61 }
 0x192   :  { %3090 = vsinq.f32 %v1134_v54  ;;  %v1423_v9 = vclz %v2885_v31  ;;  %v1282_v60 = vshrl.u32 %v3188_v17, %v1267_v38  ;;  %v1441_v7 = vsub.s32 4, %v4170_v56 }
 0x193   :  { %v1268_v55 = vshrl.u32 %v3183_v0, %v1267_v38  ;;  %vm1284_vm5 = vcmp.lt.s32.totalorder %v1265_v33, 1  ;;  %v2892_v42 = vadd.s32 4294967169, %v1565_v20  ;;  %vm1286_vm6 = vcmp.lt.s32.totalorder %v1265_v33, 3 }
 0x194   :  { %v2886_v39 = vadd.s32 4294967294, %v1423_v9  ;;  %v1283_v34 = vor.u32 %v1282_v60, %v1281_v1  ;;  %vm1287_vm7 = vcmp.lt.s32.totalorder %v1265_v33, 4  ;;  %vm1357_vm8 = vcmp.lt.s32.totalorder %v3982_v22, 0 }
 0x195   :  { %v1289_v14 = vsel %vm1287_vm7, %v1277_v30, 2102212464  ;;  %v1292_v48 = vsel %vm1284_vm5, %v1271_v41, %v1274_v59  ;;  %v1293_v63 = vsel %vm1287_vm7, %v1280_v19, 920167782  ;;  %v1296_v29 = vsel %vm1284_vm5, %v1274_v59, %v1277_v30 }
 0x196   :  { %vm2887_vm9 = vcmp.lt.s32.totalorder %v2886_v39, 0  ;;  %vm1285_vm10 = vcmp.lt.s32.totalorder %v1265_v33, 2  ;;  %v1294_v15 = vsel %vm1286_vm6, %v1277_v30, %v1293_v63  ;;  %v1297_v61 = vsel %vm1287_vm7, %v1283_v34, 1326507024 }
 0x197   :  { %v1426_v16 = vsel %vm2887_vm9, 0, %v2886_v39  ;;  %v1288_v58 = vsel %vm1284_vm5, %v1268_v55, %v1271_v41  ;;  %v1295_v26 = vsel %vm1285_vm10, %v1292_v48, %v1294_v15  ;;  %v1298_v47 = vsel %vm1286_vm6, %v1280_v19, %v1297_v61 }
 0x198   :  { %v1427_v23 = vsub.s32 32, %v1426_v16  ;;  %v1431_v36 = vsub.s32 4294967266, %v1426_v16  ;;  %v1290_v38 = vsel %vm1286_vm6, %v1274_v59, %v1289_v14  ;;  %v1299_v57 = vsel %vm1285_vm10, %v1296_v29, %v1298_v47 }
 0x199   :  { %v4219_v40 = vmul.u32.u64.low %v4203_v51, %v1299_v57  ;;  %v4220_v52 = vmul.u32.u64.high %v4203_v51, %v1299_v57, %v4219_v40  ;;  %v4223_v46 = vmul.u32.u64.low %v4203_v51, %v1295_v26  ;;  %v4224_v11 = vmul.u32.u64.high %v4203_v51, %v1295_v26, %v4223_v46 }
 0x19a   :  { %v1428_v43 = vshll.u32 %v4185_v18, %v1426_v16  ;;  %v1429_v20 = vshrl.u32 %v1411_v32, %v1427_v23  ;;  %v1432_v12 = vadd.s32 127, %v1431_v36  ;;  %v1571_v27 = vadd.s32 1, %v2892_v42 }
 0x19b   :  { %vm1138_vm11 = vweird.f32 %v3914_v49  ;;  %vm1140_vm12 = vcmp.lt.s32.totalorder %v4181_v5, 2  ;;  %vm1141_vm13 = vcmp.eq.s32.totalorder %v4181_v5, 0  ;;  %vm4233_vm14 = vcmp.le.f32.partialorder %v1355_v37, 0.7853982 }
 0x19c   :  { %v1291_v25 = vsel %vm1285_vm10, %v1288_v58, %v1290_v38  ;;  %v1430_v3 = vor.u32 %v1429_v20, %v1428_v43  ;;  %v1433_v21 = vshll.u32 %v1432_v12, 23  ;;  %vm1572_vm15 = vcmp.gt.s32.totalorder %v1571_v27, 0 }
 0x19d   :  { %v4240_v32 = vadd.f32 %v4161_v62, %v4177_v35  ;;  %vm1309_vm0 = vc.u32 %v4220_v52, %v4223_v46  ;;  %v1310_v18 = vadd.s32 1, %v4224_v11  ;;  %v1568_v37 = vand.u32 8388607, %v1561_v10 }
 0x19e   :  { %v1573_v13 = vsel %vm1572_vm15, %v1571_v27, 0  ;;  %v3089_v28 = vpop.eup %3088  ;;  %v1434_v54 = vor.u32 4788187, %v1433_v21  ;;  %v1442_v33 = vsel %vm1357_vm8, %v1441_v7, %v4170_v56  ;;  %v1307_v31 = vmul.u32 %v4203_v51, %v1291_v25 }
 0x19f   :  { %v1575_v41 = vand.u32 31, %v1573_v13  ;;  %v3091_v35 = vpop.eup %3090  ;;  %vm1144_vm1 = vcmp.eq.s32.totalorder %v4181_v5, 2  ;;  %v1145_v59 = vxor.u32 2147483648, %v3089_v28  ;;  %v1437_v30 = vcvt.s32.f32 %v1430_v3 }
 0x1a0   :  { %v1311_v19 = vsel %vm1309_vm0, %v1310_v18, %v4224_v11  ;;  %v1142_v9 = vxor.u32 2147483648, %v3091_v35  ;;  %v1435_v1 = vand.u32 2147483647, %v1434_v54  ;;  %v1444_v39 = vsel %vm4233_vm14, 0, %v1442_v33 }
 0x1a1   :  { %v1312_v60 = vadd.s32 %v1311_v19, %v1307_v31  ;;  %v1576_v55 = vsub.s32 32, %v1575_v41  ;;  %v1146_v42 = vsel %vm1144_vm1, %v1145_v59, %v3091_v35  ;;  %v1569_v34 = vor.u32 8388608, %v1568_v37 }
 0x1a2   :  { %v1461_v56 = vand.u32 2139095040, %v4240_v32  ;;  %v1143_v51 = vsel %vm1141_vm13, %v3089_v28, %v1142_v9  ;;  %v1438_v7 = vmul.f32 %v1437_v30, %v1435_v1  ;;  %v1578_v48 = vshll.u32 %v3183_v0, %v1575_v41 }
 0x1a3   :  { %v1313_v14 = vadd.s32 536870912, %v1312_v60  ;;  %v1147_v63 = vsel %vm1140_vm12, %v1143_v51, %v1146_v42  ;;  %v1579_v29 = vshrl.u32 %v3184_v2, %v1576_v55  ;;  %v1581_v15 = vshll.u32 %v3184_v2, %v1575_v41 }
 0x1a4   :  { %v1582_v61 = vshrl.u32 %v3185_v4, %v1576_v55  ;;  %v1148_v16 = vsel %vm1138_vm11, nan, %v1147_v63  ;;  %v1439_v58 = vxor.u32 2147483648, %v1438_v7  ;;  %v1585_v47 = vshrl.u32 %v3186_v6, %v1576_v55 }
 0x1a5   :  { %v4266_v26 = vshrl.u32 %v1313_v14, 30  ;;  %2805 = vst [vmem:[#allocation2 + $0x40] sm:$0xff] %v1148_v16  ;;  %v1574_v23 = vshrl.u32 %v1573_v13, 5  ;;  %v1584_v36 = vshll.u32 %v3185_v4, %v1575_v41  ;;  %v1587_v5 = vshll.u32 %v3186_v6, %v1575_v41 }
 0x1a6   :  { %v1588_v38 = vshrl.u32 %v3187_v8, %v1576_v55  ;;  %v1440_v57 = vsel %vm1357_vm8, %v1439_v58, %v1438_v7  ;;  %v1580_v49 = vor.u32 %v1579_v29, %v1578_v48  ;;  %v1583_v11 = vor.u32 %v1582_v61, %v1581_v15 }
 0x1a7   :  { %v1315_v40 = vshll.u32 %v4266_v26, 30  ;;  %v1443_v43 = vsel %vm4233_vm14, %v3982_v22, %v1440_v57  ;;  %v1590_v12 = vshll.u32 %v3187_v8, %v1575_v41  ;;  %v1591_v27 = vshrl.u32 %v3188_v17, %v1576_v55 }
 0x1a8   :  { %v1589_v20 = vor.u32 %v1588_v38, %v1587_v5  ;;  %3092 = vcosq.f32 %v1443_v43  ;;  %v1586_v3 = vor.u32 %v1585_v47, %v1584_v36  ;;  %v1462_v18 = vshrl.u32 %v1461_v56, 23 }
 0x1a9   :  { %v4280_v25 = vsub.s32 %v1312_v60, %v1315_v40  ;;  %3094 = vsinq.f32 %v1443_v43  ;;  %v1592_v21 = vor.u32 %v1591_v27, %v1590_v12  ;;  %v4282_v37 = vand.u32 3, %v1444_v39  ;;  %v117_v27 = vpop.permute.xlu1 %116 }
 0x1aa   :  { %vm1593_vm2 = vcmp.lt.s32.totalorder %v1574_v23, 1  ;;  %vm1596_vm3 = vcmp.lt.s32.totalorder %v1574_v23, 4  ;;  %v1577_v53 = vshrl.u32 %v3183_v0, %v1576_v55  ;;  %v1609_v33 = vshll.u32 %v1569_v34, 8 }
 0x1ab   :  { %v1318_v13 = vsub.s32 0, %v4280_v25  ;;  %v1601_v28 = vsel %vm1593_vm2, %v1580_v49, %v1583_v11  ;;  %v1602_v54 = vsel %vm1596_vm3, %v1589_v20, 920167782  ;;  %vm1595_vm4 = vcmp.lt.s32.totalorder %v1574_v23, 3 }
 0x1ac   :  { %v1598_v41 = vsel %vm1596_vm3, %v1586_v3, 2102212464  ;;  %v1605_v35 = vsel %vm1593_vm2, %v1583_v11, %v1586_v3  ;;  %vm1594_vm5 = vcmp.lt.s32.totalorder %v1574_v23, 2  ;;  %v1603_v59 = vsel %vm1595_vm4, %v1586_v3, %v1602_v54 }
 0x1ad   :  { %v2881_v31 = vmin.u32 %v1318_v13, %v4280_v25  ;;  %v1606_v30 = vsel %vm1596_vm3, %v1592_v21, 1326507024  ;;  %v2888_v19 = vadd.s32 4294967169, %v1462_v18  ;;  %v1597_v1 = vsel %vm1593_vm2, %v1577_v53, %v1580_v49 }
 0x1ae   :  { %v1604_v60 = vsel %vm1594_vm5, %v1601_v28, %v1603_v59  ;;  %v1607_v42 = vsel %vm1595_vm4, %v1589_v20, %v1606_v30  ;;  %v1599_v39 = vsel %vm1595_vm4, %v1583_v11, %v1598_v41  ;;  %vm1447_vm6 = vweird.f32 %v3982_v22 }
 0x1af   :  { %v1320_v9 = vclz %v2881_v31  ;;  %v1608_v55 = vsel %vm1594_vm5, %v1605_v35, %v1607_v42  ;;  %v4289_v56 = vmul.u32.u64.low %v1609_v33, %v1604_v60  ;;  %v4290_v51 = vmul.u32.u64.high %v1609_v33, %v1604_v60, %v4289_v56 }
 0x1b0   :  { %v4293_v7 = vmul.u32.u64.low %v1609_v33, %v1608_v55  ;;  %v4294_v14 = vmul.u32.u64.high %v1609_v33, %v1608_v55, %v4293_v7  ;;  %v1468_v48 = vadd.s32 1, %v2888_v19  ;;  %vm1449_vm7 = vcmp.lt.s32.totalorder %v4282_v37, 2 }
 0x1b1   :  { %v2882_v34 = vadd.s32 4294967294, %v1320_v9  ;;  %v1600_v63 = vsel %vm1594_vm5, %v1597_v1, %v1599_v39  ;;  %vm1453_vm9 = vcmp.eq.s32.totalorder %v4282_v37, 2  ;;  %v1619_v15 = vadd.s32 1, %v4290_v51 }
 0x1b2   :  { %vm1469_vm10 = vcmp.gt.s32.totalorder %v1468_v48, 0  ;;  %v1308_v61 = vadd.s32 %v4223_v46, %v4220_v52  ;;  %v1458_v47 = vand.u32 2147483647, %v4240_v32  ;;  %v1616_v38 = vmul.u32 %v1609_v33, %v1600_v63 }
 0x1b3   :  { %vm2883_vm8 = vcmp.lt.s32.totalorder %v2882_v34, 0  ;;  %vm1618_vm11 = vc.u32 %v4294_v14, %v4289_v56  ;;  %v1470_v23 = vsel %vm1469_vm10, %v1468_v48, 0  ;;  %v1338_v52 = vsub.s32 4, %v4266_v26 }
 0x1b4   :  { %v1323_v29 = vsel %vm2883_vm8, 0, %v2882_v34  ;;  %v1620_v43 = vsel %vm1618_vm11, %v1619_v15, %v4290_v51  ;;  %v1472_v12 = vand.u32 31, %v1470_v23  ;;  %vm1450_vm12 = vcmp.eq.s32.totalorder %v4282_v37, 0 }
 0x1b5   :  { %v1324_v16 = vsub.s32 32, %v1323_v29  ;;  %v1328_v58 = vsub.s32 4294967266, %v1323_v29  ;;  %v3093_v36 = vpop.eup %3092  ;;  %v1325_v5 = vshll.u32 %v4280_v25, %v1323_v29  ;;  %v1621_v46 = vadd.s32 %v1620_v43, %v1616_v38 }
 0x1b6   :  { %v3095_v57 = vpop.eup %3094  ;;  %v1454_v40 = vxor.u32 2147483648, %v3093_v36  ;;  %v1465_v53 = vand.u32 8388607, %v1458_v47  ;;  %v1473_v28 = vsub.s32 32, %v1472_v12  ;;  %vm4318_vm13 = vcmp.le.f32.partialorder %v1252_v24, 0.7853982 }
 0x1b7   :  { %v1326_v49 = vshrl.u32 %v1308_v61, %v1324_v16  ;;  %v1329_v11 = vadd.s32 127, %v1328_v58  ;;  %v1451_v20 = vxor.u32 2147483648, %v3095_v57  ;;  %v1622_v13 = vadd.s32 536870912, %v1621_v46 }
 0x1b8   :  { %v1455_v25 = vsel %vm1453_vm9, %v1454_v40, %v3095_v57  ;;  %vm1254_vm14 = vcmp.lt.s32.totalorder %v4112_v45, 0  ;;  %v183_v41 = vmul.f32 %v4143_v50, %v117_v27  ;;  %v1476_v30 = vshrl.u32 %v3184_v2, %v1473_v28 }
 0x1b9   :  { %v1327_v3 = vor.u32 %v1326_v49, %v1325_v5  ;;  %v1330_v21 = vshll.u32 %v1329_v11, 23  ;;  %v1452_v18 = vsel %vm1450_vm12, %v3093_v36, %v1451_v20  ;;  %v1339_v59 = vsel %vm1254_vm14, %v1338_v52, %v4266_v26 }
 0x1ba   :  { %v1456_v54 = vsel %vm1449_vm7, %v1452_v18, %v1455_v25  ;;  %v4329_v37 = vshrl.u32 %v1622_v13, 30  ;;  %v1479_v9 = vshrl.u32 %v3185_v4, %v1473_v28  ;;  %v1482_v1 = vshrl.u32 %v3186_v6, %v1473_v28 }
 0x1bb   :  { %v1331_v31 = vor.u32 4788187, %v1330_v21  ;;  %v1457_v35 = vsel %vm1447_vm6, nan, %v1456_v54  ;;  %v1334_v19 = vcvt.s32.f32 %v1327_v3  ;;  %v1466_v42 = vor.u32 8388608, %v1465_v53 }
 0x1bc   :  { %2808 = vst [vmem:[#allocation2 + $0x58] sm:$0xff] %v1457_v35  ;;  %v1624_v60 = vshll.u32 %v4329_v37, 30  ;;  %v1471_v22 = vshrl.u32 %v1470_v23, 5  ;;  %v1475_v39 = vshll.u32 %v3183_v0, %v1472_v12  ;;  %v1478_v26 = vshll.u32 %v3184_v2, %v1472_v12 }
 0x1bd   :  { %v1332_v24 = vand.u32 2147483647, %v1331_v31  ;;  %v1481_v51 = vshll.u32 %v3185_v4, %v1472_v12  ;;  %v1485_v34 = vshrl.u32 %v3187_v8, %v1473_v28  ;;  %v1484_v63 = vshll.u32 %v3186_v6, %v1472_v12  ;;  %v112_v31 = vpop.permute.xlu0 %111 }
 0x1be   :  { %v4339_v7 = vsub.s32 %v1621_v46, %v1624_v60  ;;  %v1477_v48 = vor.u32 %v1476_v30, %v1475_v39  ;;  %v1488_v29 = vshrl.u32 %v3188_v17, %v1473_v28  ;;  %v1480_v61 = vor.u32 %v1479_v9, %v1478_v26 }
 0x1bf   :  { %v1335_v55 = vmul.f32 %v1334_v19, %v1332_v24  ;;  %v1483_v16 = vor.u32 %v1482_v1, %v1481_v51  ;;  %v1487_v58 = vshll.u32 %v3187_v8, %v1472_v12  ;;  %v1486_v5 = vor.u32 %v1485_v34, %v1484_v63 }
 0x1c0   :  { %v1627_v36 = vsub.s32 0, %v4339_v7  ;;  %v1506_v38 = vshll.u32 %v1466_v42, 8  ;;  %v4346_v23 = vadd.f32 %v4161_v62, %v183_v41  ;;  %v1474_v40 = vshrl.u32 %v3183_v0, %v1473_v28 }
 0x1c1   :  { %v1336_v15 = vxor.u32 2147483648, %v1335_v55  ;;  %v1489_v49 = vor.u32 %v1488_v29, %v1487_v58  ;;  %vm1490_vm15 = vcmp.lt.s32.totalorder %v1471_v22, 1  ;;  %vm1491_vm0 = vcmp.lt.s32.totalorder %v1471_v22, 2 }
 0x1c2   :  { %v2893_v43 = vmin.u32 %v1627_v36, %v4339_v7  ;;  %vm1493_vm1 = vcmp.lt.s32.totalorder %v1471_v22, 4  ;;  %vm1492_vm2 = vcmp.lt.s32.totalorder %v1471_v22, 3  ;;  %v1498_v52 = vsel %vm1490_vm15, %v1477_v48, %v1480_v61 }
 0x1c3   :  { %v1337_v57 = vsel %vm1254_vm14, %v1336_v15, %v1335_v55  ;;  %v1495_v20 = vsel %vm1493_vm1, %v1483_v16, 2102212464  ;;  %v1494_v12 = vsel %vm1490_vm15, %v1474_v40, %v1477_v48  ;;  %v1499_v27 = vsel %vm1493_vm1, %v1486_v5, 920167782 }
 0x1c4   :  { %v1340_v11 = vsel %vm4318_vm13, %v4112_v45, %v1337_v57  ;;  %v1629_v46 = vclz %v2893_v43  ;;  %v1496_v25 = vsel %vm1492_vm2, %v1480_v61, %v1495_v20  ;;  %v1500_v3 = vsel %vm1492_vm2, %v1483_v16, %v1499_v27 }
 0x1c5   :  { %3096 = vcosq.f32 %v1340_v11  ;;  %v1502_v21 = vsel %vm1490_vm15, %v1480_v61, %v1483_v16  ;;  %v1503_v18 = vsel %vm1493_vm1, %v1489_v49, 1326507024  ;;  %v1341_v13 = vsel %vm4318_vm13, 0, %v1339_v59 }
 0x1c6   :  { %3098 = vsinq.f32 %v1340_v11  ;;  %v2894_v53 = vadd.s32 4294967294, %v1629_v46  ;;  %v1501_v28 = vsel %vm1491_vm0, %v1498_v52, %v1500_v3  ;;  %v1504_v54 = vsel %vm1492_vm2, %v1486_v5, %v1503_v18  ;;  %v127_v5 = vpop.permute.xlu1 %126 }
 0x1c7   :  { %v1505_v41 = vsel %vm1491_vm0, %v1502_v21, %v1504_v54  ;;  %v4359_v35 = vmul.u32.u64.low %v1506_v38, %v1501_v28  ;;  %v4360_v30 = vmul.u32.u64.high %v1506_v38, %v1501_v28, %v4359_v35  ;;  %v1770_v24 = vand.u32 2139095040, %v4346_v23 }
 0x1c8   :  { %vm2895_vm3 = vcmp.lt.s32.totalorder %v2894_v53, 0  ;;  %v1497_v19 = vsel %vm1491_vm0, %v1494_v12, %v1496_v25  ;;  %v4365_v9 = vmul.u32.u64.low %v1506_v38, %v1505_v41  ;;  %v4366_v1 = vmul.u32.u64.high %v1506_v38, %v1505_v41, %v4365_v9 }
 0x1c9   :  { %v1345_v33 = vand.u32 3, %v1341_v13  ;;  %v1632_v59 = vsel %vm2895_vm3, 0, %v2894_v53  ;;  %v1771_v60 = vshrl.u32 %v1770_v24, 23  ;;  %v182_v42 = vmul.f32 %v4143_v50, %v112_v31 }
 0x1ca   :  { %v1617_v39 = vadd.s32 %v4289_v56, %v4294_v14  ;;  %v1633_v55 = vsub.s32 32, %v1632_v59  ;;  %v1637_v26 = vsub.s32 4294967266, %v1632_v59  ;;  %v1767_v51 = vand.u32 2147483647, %v4346_v23 }
 0x1cb   :  { %v1647_v34 = vsub.s32 4, %v4329_v37  ;;  %v1513_v48 = vmul.u32 %v1506_v38, %v1497_v19  ;;  %v1516_v22 = vadd.s32 1, %v4360_v30  ;;  %v2900_v63 = vadd.s32 4294967169, %v1771_v60 }
 0x1cc   :  { %v1634_v29 = vshll.u32 %v4339_v7, %v1632_v59  ;;  %v1635_v15 = vshrl.u32 %v1617_v39, %v1633_v55  ;;  %v1638_v61 = vadd.s32 127, %v1637_v26  ;;  %vm1515_vm4 = vc.u32 %v4366_v1, %v4359_v35 }
 0x1cd   :  { %vm1344_vm5 = vweird.f32 %v4112_v45  ;;  %vm4380_vm6 = vcmp.le.f32.partialorder %v1561_v10, 0.7853982  ;;  %vm1563_vm7 = vcmp.lt.s32.totalorder %v4164_v44, 0  ;;  %v1517_v14 = vsel %vm1515_vm4, %v1516_v22, %v4360_v30 }
 0x1ce   :  { %v1777_v16 = vadd.s32 1, %v2900_v63  ;;  %vm1346_vm8 = vcmp.lt.s32.totalorder %v1345_v33, 2  ;;  %v1636_v7 = vor.u32 %v1635_v15, %v1634_v29  ;;  %v1639_v58 = vshll.u32 %v1638_v61, 23 }
 0x1cf   :  { %v1518_v36 = vadd.s32 %v1517_v14, %v1513_v48  ;;  %vm1347_vm9 = vcmp.eq.s32.totalorder %v1345_v33, 0  ;;  %v1648_v38 = vsel %vm1563_vm7, %v1647_v34, %v4329_v37  ;;  %v1774_v10 = vand.u32 8388607, %v1767_v51 }
 0x1d0   :  { %vm1778_vm10 = vcmp.gt.s32.totalorder %v1777_v16, 0  ;;  %v1640_v40 = vor.u32 4788187, %v1639_v58  ;;  %v4392_v43 = vadd.f32 %v4161_v62, %v182_v42  ;;  %vm1350_vm11 = vcmp.eq.s32.totalorder %v1345_v33, 2 }
 0x1d1   :  { %v1519_v49 = vadd.s32 536870912, %v1518_v36  ;;  %v1779_v11 = vsel %vm1778_vm10, %v1777_v16, 0  ;;  %v4395_v12 = vmul.f32 %v4143_v50, %v127_v5  ;;  %v1643_v25 = vcvt.s32.f32 %v1636_v7 }
 0x1d2   :  { %v3097_v57 = vpop.eup %3096  ;;  %v1781_v46 = vand.u32 31, %v1779_v11  ;;  %v1641_v37 = vand.u32 2147483647, %v1640_v40  ;;  %v1650_v18 = vsel %vm4380_vm6, 0, %v1648_v38  ;;  %v1775_v13 = vor.u32 8388608, %v1774_v10 }
 0x1d3   :  { %v3099_v20 = vpop.eup %3098  ;;  %v1351_v52 = vxor.u32 2147483648, %v3097_v57  ;;  %v4397_v3 = vshrl.u32 %v1519_v49, 30  ;;  %v1667_v41 = vand.u32 2139095040, %v4392_v43  ;;  %v4413_v39 = vand.u32 3, %v1650_v18 }
 0x1d4   :  { %v1348_v27 = vxor.u32 2147483648, %v3099_v20  ;;  %v1782_v53 = vsub.s32 32, %v1781_v46  ;;  %v1644_v54 = vmul.f32 %v1643_v25, %v1641_v37  ;;  %v1784_v30 = vshll.u32 %v3183_v0, %v1781_v46 }
 0x1d5   :  { %v1352_v21 = vsel %vm1350_vm11, %v1351_v52, %v3099_v20  ;;  %v1521_v31 = vshll.u32 %v4397_v3, 30  ;;  %v1787_v42 = vshll.u32 %v3184_v2, %v1781_v46  ;;  %v1780_v55 = vshrl.u32 %v1779_v11, 5 }
 0x1d6   :  { %v1349_v28 = vsel %vm1347_vm9, %v3097_v57, %v1348_v27  ;;  %v1785_v24 = vshrl.u32 %v3184_v2, %v1782_v53  ;;  %v1788_v19 = vshrl.u32 %v3185_v4, %v1782_v53  ;;  %v1645_v59 = vxor.u32 2147483648, %v1644_v54 }
 0x1d7   :  { %v1353_v50 = vsel %vm1346_vm8, %v1349_v28, %v1352_v21  ;;  %v4410_v60 = vsub.s32 %v1518_v36, %v1521_v31  ;;  %v1664_v26 = vand.u32 2147483647, %v4392_v43  ;;  %v1791_v45 = vshrl.u32 %v3186_v6, %v1782_v53 }
 0x1d8   :  { %v1354_v9 = vsel %vm1344_vm5, nan, %v1353_v50  ;;  %v1786_v33 = vor.u32 %v1785_v24, %v1784_v30  ;;  %v1646_v34 = vsel %vm1563_vm7, %v1645_v59, %v1644_v54  ;;  %v1789_v22 = vor.u32 %v1788_v19, %v1787_v42 }
 0x1d9   :  { %2807 = vst [vmem:[#allocation2 + $0x50] sm:$0xff] %v1354_v9  ;;  %v1524_v48 = vsub.s32 0, %v4410_v60  ;;  %v1649_v63 = vsel %vm4380_vm6, %v4164_v44, %v1646_v34  ;;  %v1790_v29 = vshll.u32 %v3185_v4, %v1781_v46  ;;  %v1793_v15 = vshll.u32 %v3186_v6, %v1781_v46 }
 0x1da   :  { %v1794_v61 = vshrl.u32 %v3187_v8, %v1782_v53  ;;  %3100 = vcosq.f32 %v1649_v63  ;;  %v4427_v16 = vshll.u32 %v1775_v13, 8  ;;  %v1668_v7 = vshrl.u32 %v1667_v41, 23 }
 0x1db   :  { %v2889_v14 = vmin.u32 %v1524_v48, %v4410_v60  ;;  %3102 = vsinq.f32 %v1649_v63  ;;  %v1783_v58 = vshrl.u32 %v3183_v0, %v1782_v53  ;;  %v1792_v36 = vor.u32 %v1791_v45, %v1790_v29 }
 0x1dc   :  { %v1795_v5 = vor.u32 %v1794_v61, %v1793_v15  ;;  %v1796_v56 = vshll.u32 %v3187_v8, %v1781_v46  ;;  %v1797_v10 = vshrl.u32 %v3188_v17, %v1782_v53  ;;  %vm1799_vm12 = vcmp.lt.s32.totalorder %v1780_v55, 1 }
 0x1dd   :  { %v1526_v38 = vclz %v2889_v14  ;;  %vm1800_vm13 = vcmp.lt.s32.totalorder %v1780_v55, 2  ;;  %vm1801_vm14 = vcmp.lt.s32.totalorder %v1780_v55, 3  ;;  %vm1802_vm15 = vcmp.lt.s32.totalorder %v1780_v55, 4 }
 0x1de   :  { %v1807_v57 = vsel %vm1799_vm12, %v1786_v33, %v1789_v22  ;;  %v1798_v49 = vor.u32 %v1797_v10, %v1796_v56  ;;  %v1804_v11 = vsel %vm1802_vm15, %v1792_v36, 2102212464  ;;  %v1808_v20 = vsel %vm1802_vm15, %v1795_v5, 920167782 }
 0x1df   :  { %v2890_v40 = vadd.s32 4294967294, %v1526_v38  ;;  %vm1460_vm0 = vcmp.lt.s32.totalorder %v4240_v32, 0  ;;  %v1803_v52 = vsel %vm1799_vm12, %v1783_v58, %v1786_v33  ;;  %v1809_v27 = vsel %vm1801_vm14, %v1792_v36, %v1808_v20 }
 0x1e0   :  { %v1811_v37 = vsel %vm1799_vm12, %v1789_v22, %v1792_v36  ;;  %v2896_v25 = vadd.s32 4294967169, %v1668_v7  ;;  %v1805_v46 = vsel %vm1801_vm14, %v1789_v22, %v1804_v11  ;;  %v1810_v21 = vsel %vm1800_vm13, %v1807_v57, %v1809_v27 }
 0x1e1   :  { %vm2891_vm1 = vcmp.lt.s32.totalorder %v2890_v40, 0  ;;  %v1812_v18 = vsel %vm1802_vm15, %v1798_v49, 1326507024  ;;  %v4438_v28 = vmul.u32.u64.low %v4427_v16, %v1810_v21  ;;  %v4439_v54 = vmul.u32.u64.high %v4427_v16, %v1810_v21, %v4438_v28 }
 0x1e2   :  { %v1529_v13 = vsel %vm2891_vm1, 0, %v2890_v40  ;;  %v1813_v53 = vsel %vm1801_vm14, %v1795_v5, %v1812_v18  ;;  %vm4444_vm2 = vcmp.le.f32.partialorder %v1458_v47, 0.7853982  ;;  %v1514_v41 = vadd.s32 %v4359_v35, %v4366_v1 }
 0x1e3   :  { %v1530_v50 = vsub.s32 32, %v1529_v13  ;;  %v1534_v30 = vsub.s32 4294967266, %v1529_v13  ;;  %v1814_v24 = vsel %vm1800_vm13, %v1811_v37, %v1813_v53  ;;  %v1544_v19 = vsub.s32 4, %v4397_v3 }
 0x1e4   :  { %v4453_v9 = vmul.u32.u64.low %v4427_v16, %v1814_v24  ;;  %v4454_v59 = vmul.u32.u64.high %v4427_v16, %v1814_v24, %v4453_v9  ;;  %v1674_v42 = vadd.s32 1, %v2896_v25  ;;  %vm1653_vm3 = vweird.f32 %v4164_v44 }
 0x1e5   :  { %v1531_v47 = vshll.u32 %v4410_v60, %v1529_v13  ;;  %v1532_v33 = vshrl.u32 %v1514_v41, %v1530_v50  ;;  %v1535_v34 = vadd.s32 127, %v1534_v30  ;;  %v1806_v48 = vsel %vm1800_vm13, %v1803_v52, %v1805_v46 }
 0x1e6   :  { %vm1655_vm4 = vcmp.lt.s32.totalorder %v4413_v39, 2  ;;  %vm1656_vm5 = vcmp.eq.s32.totalorder %v4413_v39, 0  ;;  %v1825_v35 = vadd.s32 1, %v4439_v54  ;;  %vm1675_vm6 = vcmp.gt.s32.totalorder %v1674_v42, 0 }
 0x1e7   :  { %v1533_v1 = vor.u32 %v1532_v33, %v1531_v47  ;;  %v1536_v22 = vshll.u32 %v1535_v34, 23  ;;  %v1671_v45 = vand.u32 8388607, %v1664_v26  ;;  %v1676_v63 = vsel %vm1675_vm6, %v1674_v42, 0  ;;  %v3101_v29 = vpop.eup %3100 }
 0x1e8   :  { %vm1659_vm7 = vcmp.eq.s32.totalorder %v4413_v39, 2  ;;  %v1822_v60 = vmul.u32 %v4427_v16, %v1806_v48  ;;  %vm1824_vm8 = vc.u32 %v4454_v59, %v4438_v28  ;;  %v1678_v55 = vand.u32 31, %v1676_v63  ;;  %v3103_v15 = vpop.eup %3102 }
 0x1e9   :  { %v1660_v61 = vxor.u32 2147483648, %v3101_v29  ;;  %v1537_v14 = vor.u32 4788187, %v1536_v22  ;;  %v1545_v7 = vsel %vm1460_vm0, %v1544_v19, %v4397_v3  ;;  %v1826_v58 = vsel %vm1824_vm8, %v1825_v35, %v4439_v54 }
 0x1ea   :  { %v1657_v36 = vxor.u32 2147483648, %v3103_v15  ;;  %v1827_v5 = vadd.s32 %v1826_v58, %v1822_v60  ;;  %v1679_v38 = vsub.s32 32, %v1678_v55  ;;  %v4474_v56 = vadd.f32 %v4161_v62, %v4395_v12 }
 0x1eb   :  { %v1661_v16 = vsel %vm1659_vm7, %v1660_v61, %v3103_v15  ;;  %v1538_v10 = vand.u32 2147483647, %v1537_v14  ;;  %v1540_v57 = vcvt.s32.f32 %v1533_v1  ;;  %v1672_v40 = vor.u32 8388608, %v1671_v45 }
 0x1ec   :  { %v1658_v49 = vsel %vm1656_vm5, %v3101_v29, %v1657_v36  ;;  %v1547_v11 = vsel %vm4444_vm2, 0, %v1545_v7  ;;  %v1828_v3 = vadd.s32 536870912, %v1827_v5  ;;  %v1682_v20 = vshrl.u32 %v3184_v2, %v1679_v38 }
 0x1ed   :  { %v1662_v52 = vsel %vm1655_vm4, %v1658_v49, %v1661_v16  ;;  %v1541_v27 = vmul.f32 %v1540_v57, %v1538_v10  ;;  %v1677_v37 = vshrl.u32 %v1676_v63, 5  ;;  %v1685_v62 = vshrl.u32 %v3185_v4, %v1679_v38 }
 0x1ee   :  { %v1663_v12 = vsel %vm1653_vm3, nan, %v1662_v52  ;;  %v4486_v25 = vshrl.u32 %v1828_v3, 30  ;;  %v1681_v46 = vshll.u32 %v3183_v0, %v1678_v55  ;;  %v1688_v21 = vshrl.u32 %v3186_v6, %v1679_v38 }
 0x1ef   :  { %2810 = vst [vmem:[#allocation2 + $0x68] sm:$0xff] %v1663_v12  ;;  %v1542_v18 = vxor.u32 2147483648, %v1541_v27  ;;  %v1684_v13 = vshll.u32 %v3184_v2, %v1678_v55  ;;  %v1690_v39 = vshll.u32 %v3186_v6, %v1678_v55  ;;  %v1691_v53 = vshrl.u32 %v3187_v8, %v1679_v38 }
 0x1f0   :  { %v1830_v54 = vshll.u32 %v4486_v25, 30  ;;  %v1683_v41 = vor.u32 %v1682_v20, %v1681_v46  ;;  %v1687_v44 = vshll.u32 %v3185_v4, %v1678_v55  ;;  %v1694_v50 = vshrl.u32 %v3188_v17, %v1679_v38 }
 0x1f1   :  { %v1543_v30 = vsel %vm1460_vm0, %v1542_v18, %v1541_v27  ;;  %v1686_v24 = vor.u32 %v1685_v62, %v1684_v13  ;;  %v1692_v19 = vor.u32 %v1691_v53, %v1690_v39  ;;  %v1693_v9 = vshll.u32 %v3187_v8, %v1678_v55 }
 0x1f2   :  { %v1546_v42 = vsel %vm4444_vm2, %v4240_v32, %v1543_v30  ;;  %v4502_v47 = vsub.s32 %v1827_v5, %v1830_v54  ;;  %v1689_v33 = vor.u32 %v1688_v21, %v1687_v44  ;;  %v4504_v34 = vand.u32 3, %v1547_v11 }
 0x1f3   :  { %3104 = vcosq.f32 %v1546_v42  ;;  %v1695_v48 = vor.u32 %v1694_v50, %v1693_v9  ;;  %v1976_v35 = vand.u32 2139095040, %v4474_v56  ;;  %vm1696_vm9 = vcmp.lt.s32.totalorder %v1677_v37, 1 }
 0x1f4   :  { %3106 = vsinq.f32 %v1546_v42  ;;  %v1833_v1 = vsub.s32 0, %v4502_v47  ;;  %vm1699_vm10 = vcmp.lt.s32.totalorder %v1677_v37, 4  ;;  %v1680_v22 = vshrl.u32 %v3183_v0, %v1679_v38 }
 0x1f5   :  { %v1704_v45 = vsel %vm1696_vm9, %v1683_v41, %v1686_v24  ;;  %v1705_v63 = vsel %vm1699_vm10, %v1692_v19, 920167782  ;;  %v1712_v31 = vshll.u32 %v1672_v40, 8  ;;  %vm1698_vm11 = vcmp.lt.s32.totalorder %v1677_v37, 3 }
 0x1f6   :  { %v2901_v29 = vmin.u32 %v1833_v1, %v4502_v47  ;;  %v1701_v60 = vsel %vm1699_vm10, %v1689_v33, 2102212464  ;;  %v1708_v55 = vsel %vm1696_vm9, %v1686_v24, %v1689_v33  ;;  %vm1697_vm12 = vcmp.lt.s32.totalorder %v1677_v37, 2 }
 0x1f7   :  { %v1706_v15 = vsel %vm1698_vm11, %v1689_v33, %v1705_v63  ;;  %v1709_v61 = vsel %vm1699_vm10, %v1695_v48, 1326507024  ;;  %v1977_v14 = vshrl.u32 %v1976_v35, 23  ;;  %v1700_v58 = vsel %vm1696_vm9, %v1680_v22, %v1683_v41  ;;  %v137_v48 = vpop.permute.xlu1 %136 }
 0x1f8   :  { %v1835_v7 = vclz %v2901_v29  ;;  %v1707_v36 = vsel %vm1697_vm12, %v1704_v45, %v1706_v15  ;;  %v1710_v5 = vsel %vm1698_vm11, %v1692_v19, %v1709_v61  ;;  %v1702_v16 = vsel %vm1698_vm11, %v1686_v24, %v1701_v60  ;;  %v122_v19 = vpop.permute.xlu0 %121  ;;  %v4546_v29 = vld [vmem:[%s5219_s1] ss:$0 sm:$0xff] }
 0x1f9   :  { %v1711_v38 = vsel %vm1697_vm12, %v1708_v55, %v1710_v5  ;;  %v4512_v10 = vmul.u32.u64.low %v1712_v31, %v1707_v36  ;;  %v4513_v57 = vmul.u32.u64.high %v1712_v31, %v1707_v36, %v4512_v10  ;;  %v2908_v3 = vadd.s32 4294967169, %v1977_v14 }
 0x1fa   :  { %v2902_v40 = vadd.s32 4294967294, %v1835_v7  ;;  %v4516_v49 = vmul.u32.u64.low %v1712_v31, %v1711_v38  ;;  %v4517_v11 = vmul.u32.u64.high %v1712_v31, %v1711_v38, %v4516_v49  ;;  %vm1769_vm13 = vcmp.lt.s32.totalorder %v4346_v23, 0 }
 0x1fb   :  { %v1703_v20 = vsel %vm1697_vm12, %v1700_v58, %v1702_v16  ;;  %v1983_v52 = vadd.s32 1, %v2908_v3  ;;  %vm1550_vm15 = vweird.f32 %v4240_v32  ;;  %vm1553_vm0 = vcmp.eq.s32.totalorder %v4504_v34, 0 }
 0x1fc   :  { %vm2903_vm14 = vcmp.lt.s32.totalorder %v2902_v40, 0  ;;  %v1722_v62 = vadd.s32 1, %v4513_v57  ;;  %v1973_v12 = vand.u32 2147483647, %v4474_v56  ;;  %v1823_v46 = vadd.s32 %v4438_v28, %v4454_v59 }
 0x1fd   :  { %v1838_v27 = vsel %vm2903_vm14, 0, %v2902_v40  ;;  %v1853_v13 = vsub.s32 4, %v4486_v25  ;;  %v1719_v39 = vmul.u32 %v1712_v31, %v1703_v20  ;;  %vm1721_vm1 = vc.u32 %v4517_v11, %v4512_v10 }
 0x1fe   :  { %v1839_v21 = vsub.s32 32, %v1838_v27  ;;  %v1843_v18 = vsub.s32 4294967266, %v1838_v27  ;;  %v1840_v37 = vshll.u32 %v4502_v47, %v1838_v27  ;;  %vm1984_vm2 = vcmp.gt.s32.totalorder %v1983_v52, 0 }
 0x1ff   :  { %v1723_v44 = vsel %vm1721_vm1, %v1722_v62, %v4513_v57  ;;  %v1985_v50 = vsel %vm1984_vm2, %v1983_v52, 0  ;;  %vm1556_vm3 = vcmp.eq.s32.totalorder %v4504_v34, 2  ;;  %v4536_v33 = vsel %vm1769_vm13, %v1853_v13, %v4486_v25 }
 0x200   :  { %v3105_v53 = vpop.eup %3104  ;;  %v1841_v54 = vshrl.u32 %v1823_v46, %v1839_v21  ;;  %v1844_v41 = vadd.s32 127, %v1843_v18  ;;  %v1724_v59 = vadd.s32 %v1723_v44, %v1719_v39  ;;  %v1987_v24 = vand.u32 31, %v1985_v50  ;;  %v4582_v39 = vld [vmem:[%s5219_s1 + $0x1] ss:$0 sm:$0xff] }
 0x201   :  { %v3107_v30 = vpop.eup %3106  ;;  %v1557_v28 = vxor.u32 2147483648, %v3105_v53  ;;  %v1980_v22 = vand.u32 8388607, %v1973_v12  ;;  %vm1552_vm4 = vcmp.lt.s32.totalorder %v4504_v34, 2  ;;  %v184_v25 = vmul.f32 %v4546_v29, %v122_v19 }
 0x202   :  { %v1554_v9 = vxor.u32 2147483648, %v3107_v30  ;;  %v1842_v42 = vor.u32 %v1841_v54, %v1840_v37  ;;  %v1845_v47 = vshll.u32 %v1844_v41, 23  ;;  %v1725_v1 = vadd.s32 536870912, %v1724_v59 }
 0x203   :  { %v1558_v35 = vsel %vm1556_vm3, %v1557_v28, %v3107_v30  ;;  %v1988_v45 = vsub.s32 32, %v1987_v24  ;;  %vm4551_vm5 = vcmp.le.f32.partialorder %v1767_v51, 0.7853982  ;;  %v4558_v34 = vmul.f32 %v4546_v29, %v137_v48 }
 0x204   :  { %v1555_v63 = vsel %vm1553_vm0, %v3105_v53, %v1554_v9  ;;  %v1846_v31 = vor.u32 4788187, %v1845_v47  ;;  %v4555_v15 = vshrl.u32 %v1725_v1, 30  ;;  %v1849_v7 = vcvt.s32.f32 %v1842_v42 }
 0x205   :  { %v1559_v60 = vsel %vm1552_vm4, %v1555_v63, %v1558_v35  ;;  %v1856_v58 = vsel %vm4551_vm5, 0, %v4536_v33  ;;  %v1981_v36 = vor.u32 8388608, %v1980_v22  ;;  %v1991_v5 = vshrl.u32 %v3184_v2, %v1988_v45 }
 0x206   :  { %v1560_v61 = vsel %vm1550_vm15, nan, %v1559_v60  ;;  %v1847_v14 = vand.u32 2147483647, %v1846_v31  ;;  %v1727_v51 = vshll.u32 %v4555_v15, 30  ;;  %v1994_v16 = vshrl.u32 %v3185_v4, %v1988_v45 }
 0x207   :  { %2809 = vst [vmem:[#allocation2 + $0x60] sm:$0xff] %v1560_v61  ;;  %v1986_v57 = vshrl.u32 %v1985_v50, 5  ;;  %v1997_v40 = vshrl.u32 %v3186_v6, %v1988_v45  ;;  %v2000_v32 = vshrl.u32 %v3187_v8, %v1988_v45  ;;  %v1990_v3 = vshll.u32 %v3183_v0, %v1987_v24 }
 0x208   :  { %v1850_v38 = vmul.f32 %v1849_v7, %v1847_v14  ;;  %v4570_v49 = vsub.s32 %v1724_v59, %v1727_v51  ;;  %v1993_v20 = vshll.u32 %v3184_v2, %v1987_v24  ;;  %v1996_v52 = vshll.u32 %v3185_v4, %v1987_v24 }
 0x209   :  { %v1999_v62 = vshll.u32 %v3186_v6, %v1987_v24  ;;  %v2002_v46 = vshll.u32 %v3187_v8, %v1987_v24  ;;  %v2003_v21 = vshrl.u32 %v3188_v17, %v1988_v45  ;;  %v1992_v13 = vor.u32 %v1991_v5, %v1990_v3 }
 0x20a   :  { %v1851_v27 = vxor.u32 2147483648, %v1850_v38  ;;  %v1730_v18 = vsub.s32 0, %v4570_v49  ;;  %v1995_v37 = vor.u32 %v1994_v16, %v1993_v20  ;;  %v4585_v53 = vadd.f32 %v4582_v39, %v184_v25 }
 0x20b   :  { %v1998_v41 = vor.u32 %v1997_v40, %v1996_v52  ;;  %v2001_v44 = vor.u32 %v2000_v32, %v1999_v62  ;;  %v2004_v50 = vor.u32 %v2003_v21, %v2002_v46  ;;  %v1989_v59 = vshrl.u32 %v3183_v0, %v1988_v45 }
 0x20c   :  { %v1852_v54 = vsel %vm1769_vm13, %v1851_v27, %v1850_v38  ;;  %v2897_v28 = vmin.u32 %v1730_v18, %v4570_v49  ;;  %v2021_v24 = vshll.u32 %v1981_v36, 8  ;;  %v1750_v19 = vsub.s32 4, %v4555_v15 }
 0x20d   :  { %v1855_v30 = vsel %vm4551_vm5, %v4346_v23, %v1852_v54  ;;  %vm2005_vm6 = vcmp.lt.s32.totalorder %v1986_v57, 1  ;;  %vm2007_vm7 = vcmp.lt.s32.totalorder %v1986_v57, 3  ;;  %vm1666_vm8 = vcmp.lt.s32.totalorder %v4392_v43, 0 }
 0x20e   :  { %3108 = vcosq.f32 %v1855_v30  ;;  %v1732_v9 = vclz %v2897_v28  ;;  %vm2008_vm9 = vcmp.lt.s32.totalorder %v1986_v57, 4  ;;  %v2013_v42 = vsel %vm2005_vm6, %v1992_v13, %v1995_v37 }
 0x20f   :  { %3110 = vsinq.f32 %v1855_v30  ;;  %v2010_v47 = vsel %vm2008_vm9, %v1998_v41, 2102212464  ;;  %v2014_v33 = vsel %vm2008_vm9, %v2001_v44, 920167782  ;;  %v2017_v48 = vsel %vm2005_vm6, %v1995_v37, %v1998_v41 }
 0x210   :  { %v2018_v35 = vsel %vm2008_vm9, %v2004_v50, 1326507024  ;;  %v2898_v1 = vadd.s32 4294967294, %v1732_v9  ;;  %vm2006_vm10 = vcmp.lt.s32.totalorder %v1986_v57, 2  ;;  %v2015_v22 = vsel %vm2007_vm7, %v1998_v41, %v2014_v33 }
 0x211   :  { %v2019_v45 = vsel %vm2007_vm7, %v2001_v44, %v2018_v35  ;;  %v2009_v63 = vsel %vm2005_vm6, %v1989_v59, %v1992_v13  ;;  %v2016_v31 = vsel %vm2006_vm10, %v2013_v42, %v2015_v22  ;;  %v1873_v60 = vand.u32 2139095040, %v4585_v53 }
 0x212   :  { %v2020_v25 = vsel %vm2006_vm10, %v2017_v48, %v2019_v45  ;;  %vm2899_vm11 = vcmp.lt.s32.totalorder %v2898_v1, 0  ;;  %v2011_v55 = vsel %vm2007_vm7, %v1995_v37, %v2010_v47  ;;  %v1860_v16 = vand.u32 3, %v1856_v58 }
 0x213   :  { %v4602_v61 = vmul.u32.u64.low %v2021_v24, %v2020_v25  ;;  %v4603_v14 = vmul.u32.u64.high %v2021_v24, %v2020_v25, %v4602_v61  ;;  %v1735_v7 = vsel %vm2899_vm11, 0, %v2898_v1  ;;  %v1874_v5 = vshrl.u32 %v1873_v60, 23 }
 0x214   :  { %v4605_v51 = vmul.u32.u64.low %v2021_v24, %v2016_v31  ;;  %v4606_v36 = vmul.u32.u64.high %v2021_v24, %v2016_v31, %v4605_v51  ;;  %v1720_v38 = vadd.s32 %v4512_v10, %v4517_v11  ;;  %v1736_v40 = vsub.s32 32, %v1735_v7 }
 0x215   :  { %v1740_v32 = vsub.s32 4294967266, %v1735_v7  ;;  %vm4613_vm12 = vcmp.le.f32.partialorder %v1664_v26, 0.7853982  ;;  %v2012_v20 = vsel %vm2006_vm10, %v2009_v63, %v2011_v55  ;;  %v1870_v52 = vand.u32 2147483647, %v4585_v53 }
 0x216   :  { %v2904_v27 = vadd.s32 4294967169, %v1874_v5  ;;  %v1737_v62 = vshll.u32 %v4570_v49, %v1735_v7  ;;  %v1738_v46 = vshrl.u32 %v1720_v38, %v1736_v40  ;;  %vm2030_vm13 = vc.u32 %v4603_v14, %v4605_v51 }
 0x217   :  { %v1741_v58 = vadd.s32 127, %v1740_v32  ;;  %vm1859_vm14 = vweird.f32 %v4346_v23  ;;  %v1751_v26 = vsel %vm1666_vm8, %v1750_v19, %v4555_v15  ;;  %v2031_v10 = vadd.s32 1, %v4606_v36 }
 0x218   :  { %v1880_v11 = vadd.s32 1, %v2904_v27  ;;  %v4629_v57 = vadd.f32 %v4582_v39, %v4558_v34  ;;  %vm1861_vm15 = vcmp.lt.s32.totalorder %v1860_v16, 2  ;;  %v1739_v49 = vor.u32 %v1738_v46, %v1737_v62 }
 0x219   :  { %v1742_v21 = vshll.u32 %v1741_v58, 23  ;;  %v2028_v18 = vmul.u32 %v2021_v24, %v2012_v20  ;;  %vm1862_vm0 = vcmp.eq.s32.totalorder %v1860_v16, 0  ;;  %v2032_v13 = vsel %vm2030_vm13, %v2031_v10, %v4606_v36 }
 0x21a   :  { %v1877_v37 = vand.u32 8388607, %v1870_v52  ;;  %vm1881_vm1 = vcmp.gt.s32.totalorder %v1880_v11, 0  ;;  %v1753_v41 = vsel %vm4613_vm12, 0, %v1751_v26  ;;  %vm1865_vm2 = vcmp.eq.s32.totalorder %v1860_v16, 2 }
 0x21b   :  { %v3109_v54 = vpop.eup %3108  ;;  %v1743_v15 = vor.u32 4788187, %v1742_v21  ;;  %v2033_v44 = vadd.s32 %v2032_v13, %v2028_v18  ;;  %v1882_v50 = vsel %vm1881_vm1, %v1880_v11, 0  ;;  %v2182_v59 = vand.u32 2139095040, %v4629_v57 }
 0x21c   :  { %v3111_v34 = vpop.eup %3110  ;;  %v1866_v30 = vxor.u32 2147483648, %v3109_v54  ;;  %v1884_v28 = vand.u32 31, %v1882_v50  ;;  %v1746_v9 = vcvt.s32.f32 %v1739_v49  ;;  %v4637_v33 = vand.u32 3, %v1753_v41 }
 0x21d   :  { %v1863_v24 = vxor.u32 2147483648, %v3111_v34  ;;  %v1744_v19 = vand.u32 2147483647, %v1743_v15  ;;  %v2034_v42 = vadd.s32 536870912, %v2033_v44  ;;  %v1878_v48 = vor.u32 8388608, %v1877_v37 }
 0x21e   :  { %v1867_v47 = vsel %vm1865_vm2, %v1866_v30, %v3111_v34  ;;  %v1885_v35 = vsub.s32 32, %v1884_v28  ;;  %v2179_v63 = vand.u32 2147483647, %v4629_v57  ;;  %v2183_v55 = vshrl.u32 %v2182_v59, 23 }
 0x21f   :  { %v1864_v1 = vsel %vm1862_vm0, %v3109_v54, %v1863_v24  ;;  %v1747_v22 = vmul.f32 %v1746_v9, %v1744_v19  ;;  %v4640_v45 = vshrl.u32 %v2034_v42, 30  ;;  %v1883_v5 = vshrl.u32 %v1882_v50, 5 }
 0x220   :  { %v1868_v31 = vsel %vm1861_vm15, %v1864_v1, %v1867_v47  ;;  %v1888_v25 = vshrl.u32 %v3184_v2, %v1885_v35  ;;  %v1891_v60 = vshrl.u32 %v3185_v4, %v1885_v35  ;;  %v1887_v38 = vshll.u32 %v3183_v0, %v1884_v28 }
 0x221   :  { %v1869_v61 = vsel %vm1859_vm14, nan, %v1868_v31  ;;  %v1748_v7 = vxor.u32 2147483648, %v1747_v22  ;;  %v2036_v36 = vshll.u32 %v4640_v45, 30  ;;  %v1890_v40 = vshll.u32 %v3184_v2, %v1884_v28 }
 0x222   :  { %2812 = vst [vmem:[#allocation2 + $0x78] sm:$0xff] %v1869_v61  ;;  %v1893_v16 = vshll.u32 %v3185_v4, %v1884_v28  ;;  %v1894_v32 = vshrl.u32 %v3186_v6, %v1885_v35  ;;  %v1896_v23 = vshll.u32 %v3186_v6, %v1884_v28  ;;  %v1897_v62 = vshrl.u32 %v3187_v8, %v1885_v35 }
 0x223   :  { %v1749_v20 = vsel %vm1666_vm8, %v1748_v7, %v1747_v22  ;;  %v4655_v27 = vsub.s32 %v2033_v44, %v2036_v36  ;;  %v1889_v58 = vor.u32 %v1888_v25, %v1887_v38  ;;  %v1892_v26 = vor.u32 %v1891_v60, %v1890_v40 }
 0x224   :  { %v1752_v46 = vsel %vm4613_vm12, %v4392_v43, %v1749_v20  ;;  %v4662_v10 = vshll.u32 %v1878_v48, 8  ;;  %v1895_v49 = vor.u32 %v1894_v32, %v1893_v16  ;;  %v1898_v21 = vor.u32 %v1897_v62, %v1896_v23  ;;  %v132_v48 = vpop.permute.xlu0 %131 }
 0x225   :  { %3112 = vcosq.f32 %v1752_v46  ;;  %v2039_v11 = vsub.s32 0, %v4655_v27  ;;  %v1886_v18 = vshrl.u32 %v3183_v0, %v1885_v35  ;;  %v1899_v13 = vshll.u32 %v3187_v8, %v1884_v28 }
 0x226   :  { %3114 = vsinq.f32 %v1752_v46  ;;  %v1900_v37 = vshrl.u32 %v3188_v17, %v1885_v35  ;;  %vm1902_vm3 = vcmp.lt.s32.totalorder %v1883_v5, 1  ;;  %vm1903_vm4 = vcmp.lt.s32.totalorder %v1883_v5, 2 }
 0x227   :  { %v2909_v54 = vmin.u32 %v2039_v11, %v4655_v27  ;;  %v2916_v3 = vadd.s32 4294967169, %v2183_v55  ;;  %vm1904_vm5 = vcmp.lt.s32.totalorder %v1883_v5, 3  ;;  %vm1905_vm6 = vcmp.lt.s32.totalorder %v1883_v5, 4 }
 0x228   :  { %v1901_v15 = vor.u32 %v1900_v37, %v1899_v13  ;;  %v1906_v41 = vsel %vm1902_vm3, %v1886_v18, %v1889_v58  ;;  %v1907_v50 = vsel %vm1905_vm6, %v1895_v49, 2102212464  ;;  %v1910_v34 = vsel %vm1902_vm3, %v1889_v58, %v1892_v26 }
 0x229   :  { %v2041_v44 = vclz %v2909_v54  ;;  %v1911_v30 = vsel %vm1905_vm6, %v1898_v21, 920167782  ;;  %v1908_v59 = vsel %vm1904_vm5, %v1892_v26, %v1907_v50  ;;  %v1914_v19 = vsel %vm1902_vm3, %v1892_v26, %v1895_v49 }
 0x22a   :  { %v1912_v24 = vsel %vm1904_vm5, %v1895_v49, %v1911_v30  ;;  %v1915_v9 = vsel %vm1905_vm6, %v1901_v15, 1326507024  ;;  %vm1975_vm7 = vcmp.lt.s32.totalorder %v4474_v56, 0  ;;  %v1909_v35 = vsel %vm1903_vm4, %v1906_v41, %v1908_v59 }
 0x22b   :  { %v2910_v28 = vadd.s32 4294967294, %v2041_v44  ;;  %v1913_v42 = vsel %vm1903_vm4, %v1910_v34, %v1912_v24  ;;  %v1916_v47 = vsel %vm1904_vm5, %v1898_v21, %v1915_v9  ;;  %v2189_v55 = vadd.s32 1, %v2916_v3 }
 0x22c   :  { %v1917_v1 = vsel %vm1903_vm4, %v1914_v19, %v1916_v47  ;;  %v4674_v22 = vmul.u32.u64.low %v4662_v10, %v1913_v42  ;;  %v4675_v31 = vmul.u32.u64.high %v4662_v10, %v1913_v42, %v4674_v22  ;;  %vm1758_vm9 = vcmp.lt.s32.totalorder %v4637_v33, 2 }
 0x22d   :  { %vm2911_vm8 = vcmp.lt.s32.totalorder %v2910_v28, 0  ;;  %v4679_v25 = vmul.u32.u64.low %v4662_v10, %v1917_v1  ;;  %v4680_v60 = vmul.u32.u64.high %v4662_v10, %v1917_v1, %v4679_v25  ;;  %v2186_v7 = vand.u32 8388607, %v2179_v63 }
 0x22e   :  { %v2044_v61 = vsel %vm2911_vm8, 0, %v2910_v28  ;;  %v186_v36 = vmul.f32 %v4546_v29, %v132_v48  ;;  %vm1756_vm10 = vweird.f32 %v4392_v43  ;;  %v2029_v5 = vadd.s32 %v4605_v51, %v4603_v14 }
 0x22f   :  { %v2045_v38 = vsub.s32 32, %v2044_v61  ;;  %v2049_v40 = vsub.s32 4294967266, %v2044_v61  ;;  %vm2190_vm11 = vcmp.gt.s32.totalorder %v2189_v55, 0  ;;  %v2059_v16 = vsub.s32 4, %v4640_v45 }
 0x230   :  { %v1925_v32 = vmul.u32 %v4662_v10, %v1909_v35  ;;  %v1928_v20 = vadd.s32 1, %v4675_v31  ;;  %v2191_v23 = vsel %vm2190_vm11, %v2189_v55, 0  ;;  %v2046_v62 = vshll.u32 %v4655_v27, %v2044_v61 }
 0x231   :  { %v2047_v46 = vshrl.u32 %v2029_v5, %v2045_v38  ;;  %v2050_v58 = vadd.s32 127, %v2049_v40  ;;  %vm1927_vm12 = vc.u32 %v4680_v60, %v4674_v22  ;;  %vm1759_vm13 = vcmp.eq.s32.totalorder %v4637_v33, 0 }
 0x232   :  { %v3113_v26 = vpop.eup %3112  ;;  %v1929_v14 = vsel %vm1927_vm12, %v1928_v20, %v4675_v31  ;;  %v2187_v51 = vor.u32 8388608, %v2186_v7  ;;  %v2193_v11 = vand.u32 31, %v2191_v23  ;;  %vm1762_vm14 = vcmp.eq.s32.totalorder %v4637_v33, 2 }
 0x233   :  { %v3115_v49 = vpop.eup %3114  ;;  %v1763_v21 = vxor.u32 2147483648, %v3113_v26  ;;  %v2048_v10 = vor.u32 %v2047_v46, %v2046_v62  ;;  %v2051_v18 = vshll.u32 %v2050_v58, 23  ;;  %v1930_v13 = vadd.s32 %v1929_v14, %v1925_v32 }
 0x234   :  { %v1760_v37 = vxor.u32 2147483648, %v3115_v49  ;;  %v2194_v27 = vsub.s32 32, %v2193_v11  ;;  %v4699_v54 = vadd.f32 %v4582_v39, %v186_v36  ;;  %vm4703_vm15 = vcmp.le.f32.partialorder %v1973_v12, 0.7853982 }
 0x235   :  { %v1764_v3 = vsel %vm1762_vm14, %v1763_v21, %v3115_v49  ;;  %v2052_v41 = vor.u32 4788187, %v2051_v18  ;;  %v4710_v44 = vsel %vm1975_vm7, %v2059_v16, %v4640_v45  ;;  %v1931_v50 = vadd.s32 536870912, %v1930_v13 }
 0x236   :  { %v1761_v34 = vsel %vm1759_vm13, %v3113_v26, %v1760_v37  ;;  %v2055_v30 = vcvt.s32.f32 %v2048_v10  ;;  %v2197_v59 = vshrl.u32 %v3184_v2, %v2194_v27  ;;  %v4715_v24 = vshll.u32 %v2187_v51, 8 }
 0x237   :  { %v1765_v12 = vsel %vm1758_vm9, %v1761_v34, %v1764_v3  ;;  %v2053_v19 = vand.u32 2147483647, %v2052_v41  ;;  %v4719_v9 = vshrl.u32 %v1931_v50, 30  ;;  %v2200_v28 = vshrl.u32 %v3185_v4, %v2194_v27 }
 0x238   :  { %v1766_v45 = vsel %vm1756_vm10, nan, %v1765_v12  ;;  %v2192_v42 = vshrl.u32 %v2191_v23, 5  ;;  %v2203_v47 = vshrl.u32 %v3186_v6, %v2194_v27  ;;  %v2079_v48 = vand.u32 2139095040, %v4699_v54 }
 0x239   :  { %2811 = vst [vmem:[#allocation2 + $0x70] sm:$0xff] %v1766_v45  ;;  %v2056_v35 = vmul.f32 %v2055_v30, %v2053_v19  ;;  %v1933_v1 = vshll.u32 %v4719_v9, 30  ;;  %v2196_v33 = vshll.u32 %v3183_v0, %v2193_v11  ;;  %v2199_v31 = vshll.u32 %v3184_v2, %v2193_v11 }
 0x23a   :  { %v2202_v25 = vshll.u32 %v3185_v4, %v2193_v11  ;;  %v2205_v55 = vshll.u32 %v3186_v6, %v2193_v11  ;;  %v2206_v43 = vshrl.u32 %v3187_v8, %v2194_v27  ;;  %v2209_v61 = vshrl.u32 %v3188_v17, %v2194_v27 }
 0x23b   :  { %v2057_v7 = vxor.u32 2147483648, %v2056_v35  ;;  %v4733_v36 = vsub.s32 %v1930_v13, %v1933_v1  ;;  %v2198_v5 = vor.u32 %v2197_v59, %v2196_v33  ;;  %v2201_v38 = vor.u32 %v2200_v28, %v2199_v31 }
 0x23c   :  { %v2204_v40 = vor.u32 %v2203_v47, %v2202_v25  ;;  %v2207_v16 = vor.u32 %v2206_v43, %v2205_v55  ;;  %v2208_v32 = vshll.u32 %v3187_v8, %v2193_v11  ;;  %v2076_v20 = vand.u32 2147483647, %v4699_v54  ;;  %v147_v55 = vpop.permute.xlu1 %146 }
 0x23d   :  { %v2058_v23 = vsel %vm1975_vm7, %v2057_v7, %v2056_v35  ;;  %v1936_v62 = vsub.s32 0, %v4733_v36  ;;  %v2195_v46 = vshrl.u32 %v3183_v0, %v2194_v27  ;;  %v2080_v58 = vshrl.u32 %v2079_v48, 23 }
 0x23e   :  { %v2061_v26 = vsel %vm4703_vm15, %v4474_v56, %v2058_v23  ;;  %v2210_v14 = vor.u32 %v2209_v61, %v2208_v32  ;;  %vm2211_vm0 = vcmp.lt.s32.totalorder %v2192_v42, 1  ;;  %vm2212_vm1 = vcmp.lt.s32.totalorder %v2192_v42, 2 }
 0x23f   :  { %3116 = vcosq.f32 %v2061_v26  ;;  %v2905_v51 = vmin.u32 %v1936_v62, %v4733_v36  ;;  %vm2214_vm2 = vcmp.lt.s32.totalorder %v2192_v42, 4  ;;  %v2219_v11 = vsel %vm2211_vm0, %v2198_v5, %v2201_v38 }
 0x240   :  { %3118 = vsinq.f32 %v2061_v26  ;;  %vm2213_vm3 = vcmp.lt.s32.totalorder %v2192_v42, 3  ;;  %v2216_v49 = vsel %vm2214_vm2, %v2204_v40, 2102212464  ;;  %v2220_v21 = vsel %vm2214_vm2, %v2207_v16, 920167782 }
 0x241   :  { %v1938_v10 = vclz %v2905_v51  ;;  %v2215_v18 = vsel %vm2211_vm0, %v2195_v46, %v2198_v5  ;;  %v2221_v13 = vsel %vm2213_vm3, %v2204_v40, %v2220_v21  ;;  %v2223_v37 = vsel %vm2211_vm0, %v2201_v38, %v2204_v40 }
 0x242   :  { %v2217_v27 = vsel %vm2213_vm3, %v2201_v38, %v2216_v49  ;;  %v2222_v3 = vsel %vm2212_vm1, %v2219_v11, %v2221_v13  ;;  %v2224_v41 = vsel %vm2214_vm2, %v2210_v14, 1326507024  ;;  %v2912_v50 = vadd.s32 4294967169, %v2080_v58 }
 0x243   :  { %v2906_v34 = vadd.s32 4294967294, %v1938_v10  ;;  %v2225_v30 = vsel %vm2213_vm3, %v2207_v16, %v2224_v41  ;;  %v4747_v59 = vmul.u32.u64.low %v4715_v24, %v2222_v3  ;;  %v4748_v12 = vmul.u32.u64.high %v4715_v24, %v2222_v3, %v4747_v59 }
 0x244   :  { %v2062_v19 = vsel %vm4703_vm15, 0, %v4710_v44  ;;  %v2226_v28 = vsel %vm2212_vm1, %v2223_v37, %v2225_v30  ;;  %v2086_v45 = vadd.s32 1, %v2912_v50  ;;  %v2218_v47 = vsel %vm2212_vm1, %v2215_v18, %v2217_v27 }
 0x245   :  { %vm2907_vm4 = vcmp.lt.s32.totalorder %v2906_v34, 0  ;;  %v4757_v48 = vmul.u32.u64.low %v4715_v24, %v2226_v28  ;;  %v4758_v35 = vmul.u32.u64.high %v4715_v24, %v2226_v28, %v4757_v48  ;;  %v2083_v33 = vand.u32 8388607, %v2076_v20 }
 0x246   :  { %v1941_v1 = vsel %vm2907_vm4, 0, %v2906_v34  ;;  %vm2087_vm5 = vcmp.gt.s32.totalorder %v2086_v45, 0  ;;  %v1926_v31 = vadd.s32 %v4674_v22, %v4680_v60  ;;  %v2237_v25 = vadd.s32 1, %v4748_v12 }
 0x247   :  { %v1942_v15 = vsub.s32 32, %v1941_v1  ;;  %v1946_v44 = vsub.s32 4294967266, %v1941_v1  ;;  %v2066_v43 = vand.u32 3, %v2062_v19  ;;  %v1956_v42 = vsub.s32 4, %v4719_v9 }
 0x248   :  { %v2234_v61 = vmul.u32 %v4715_v24, %v2218_v47  ;;  %v2088_v7 = vsel %vm2087_vm5, %v2086_v45, 0  ;;  %vm2065_vm6 = vweird.f32 %v4474_v56  ;;  %v1943_v5 = vshll.u32 %v4733_v36, %v1941_v1 }
 0x249   :  { %v1944_v38 = vshrl.u32 %v1926_v31, %v1942_v15  ;;  %v1947_v40 = vadd.s32 127, %v1946_v44  ;;  %vm2236_vm7 = vc.u32 %v4758_v35, %v4747_v59  ;;  %v2084_v60 = vor.u32 8388608, %v2083_v33 }
 0x24a   :  { %v2238_v22 = vsel %vm2236_vm7, %v2237_v25, %v4748_v12  ;;  %v2090_v16 = vand.u32 31, %v2088_v7  ;;  %v189_v32 = vmul.f32 %v4546_v29, %v147_v55  ;;  %vm1872_vm8 = vcmp.lt.s32.totalorder %v4585_v53, 0 }
 0x24b   :  { %v1945_v23 = vor.u32 %v1944_v38, %v1943_v5  ;;  %v1948_v24 = vshll.u32 %v1947_v40, 23  ;;  %v2239_v62 = vadd.s32 %v2238_v22, %v2234_v61  ;;  %vm2067_vm9 = vcmp.lt.s32.totalorder %v2066_v43, 2 }
 0x24c   :  { %v3117_v46 = vpop.eup %3116  ;;  %vm2068_vm10 = vcmp.eq.s32.totalorder %v2066_v43, 0  ;;  %vm2071_vm11 = vcmp.eq.s32.totalorder %v2066_v43, 2  ;;  %v2091_v36 = vsub.s32 32, %v2090_v16  ;;  %vm4776_vm12 = vcmp.le.f32.partialorder %v1870_v52, 0.7853982 }
 0x24d   :  { %v3119_v58 = vpop.eup %3118  ;;  %v2072_v26 = vxor.u32 2147483648, %v3117_v46  ;;  %v1949_v51 = vor.u32 4788187, %v1948_v24  ;;  %v4783_v11 = vsel %vm1872_vm8, %v1956_v42, %v4719_v9  ;;  %v2240_v49 = vadd.s32 536870912, %v2239_v62 }
 0x24e   :  { %v2069_v21 = vxor.u32 2147483648, %v3119_v58  ;;  %v2089_v10 = vshrl.u32 %v2088_v7, 5  ;;  %v4785_v18 = vshll.u32 %v2084_v60, 8  ;;  %v4788_v13 = vadd.f32 %v4582_v39, %v189_v32 }
 0x24f   :  { %v2073_v37 = vsel %vm2071_vm11, %v2072_v26, %v3119_v58  ;;  %v1950_v27 = vand.u32 2147483647, %v1949_v51  ;;  %v1952_v52 = vcvt.s32.f32 %v1945_v23  ;;  %v4790_v3 = vshrl.u32 %v2240_v49, 30 }
 0x250   :  { %v2070_v41 = vsel %vm2068_vm10, %v3117_v46, %v2069_v21  ;;  %v2094_v50 = vshrl.u32 %v3184_v2, %v2091_v36  ;;  %v2097_v9 = vshrl.u32 %v3185_v4, %v2091_v36  ;;  %v2100_v34 = vshrl.u32 %v3186_v6, %v2091_v36 }
 0x251   :  { %v2074_v30 = vsel %vm2067_vm9, %v2070_v41, %v2073_v37  ;;  %v1953_v12 = vmul.f32 %v1952_v52, %v1950_v27  ;;  %v2242_v19 = vshll.u32 %v4790_v3, 30  ;;  %v2093_v28 = vshll.u32 %v3183_v0, %v2090_v16 }
 0x252   :  { %v2075_v45 = vsel %vm2065_vm6, nan, %v2074_v30  ;;  %v2096_v47 = vshll.u32 %v3184_v2, %v2090_v16  ;;  %v2099_v48 = vshll.u32 %v3185_v4, %v2090_v16  ;;  %v2103_v1 = vshrl.u32 %v3187_v8, %v2091_v36 }
 0x253   :  { %2814 = vst [vmem:[#allocation2 + $0x88] sm:$0xff] %v2075_v45  ;;  %v1954_v33 = vxor.u32 2147483648, %v1953_v12  ;;  %v4804_v31 = vsub.s32 %v2239_v62, %v2242_v19  ;;  %v2102_v15 = vshll.u32 %v3186_v6, %v2090_v16  ;;  %v2106_v44 = vshrl.u32 %v3188_v17, %v2091_v36 }
 0x254   :  { %v2095_v25 = vor.u32 %v2094_v50, %v2093_v28  ;;  %v2098_v55 = vor.u32 %v2097_v9, %v2096_v47  ;;  %v2101_v43 = vor.u32 %v2100_v34, %v2099_v48  ;;  %v2105_v56 = vshll.u32 %v3187_v8, %v2090_v16 }
 0x255   :  { %v1955_v42 = vsel %vm1872_vm8, %v1954_v33, %v1953_v12  ;;  %v2245_v61 = vsub.s32 0, %v4804_v31  ;;  %v2104_v7 = vor.u32 %v2103_v1, %v2102_v15  ;;  %v2388_v5 = vand.u32 2139095040, %v4788_v13 }
 0x256   :  { %v1958_v38 = vsel %vm4776_vm12, %v4585_v53, %v1955_v42  ;;  %v2092_v40 = vshrl.u32 %v3183_v0, %v2091_v36  ;;  %v2107_v22 = vor.u32 %v2106_v44, %v2105_v56  ;;  %vm2108_vm13 = vcmp.lt.s32.totalorder %v2089_v10, 1  ;;  %v142_v42 = vpop.permute.xlu0 %141 }
 0x257   :  { %3120 = vcosq.f32 %v1958_v38  ;;  %v2917_v60 = vmin.u32 %v2245_v61, %v4804_v31  ;;  %vm2109_vm14 = vcmp.lt.s32.totalorder %v2089_v10, 2  ;;  %vm2111_vm15 = vcmp.lt.s32.totalorder %v2089_v10, 4 }
 0x258   :  { %3122 = vsinq.f32 %v1958_v38  ;;  %vm2110_vm0 = vcmp.lt.s32.totalorder %v2089_v10, 3  ;;  %v2113_v16 = vsel %vm2111_vm15, %v2101_v43, 2102212464  ;;  %v2116_v32 = vsel %vm2108_vm13, %v2095_v25, %v2098_v55 }
 0x259   :  { %v2247_v23 = vclz %v2917_v60  ;;  %v2112_v24 = vsel %vm2108_vm13, %v2092_v40, %v2095_v25  ;;  %v2117_v62 = vsel %vm2111_vm15, %v2104_v7, 920167782  ;;  %v2120_v46 = vsel %vm2108_vm13, %v2098_v55, %v2101_v43 }
 0x25a   :  { %v2114_v58 = vsel %vm2110_vm0, %v2098_v55, %v2113_v16  ;;  %v2118_v26 = vsel %vm2110_vm0, %v2101_v43, %v2117_v62  ;;  %v2121_v51 = vsel %vm2111_vm15, %v2107_v22, 1326507024  ;;  %v2389_v49 = vshrl.u32 %v2388_v5, 23 }
 0x25b   :  { %v1959_v36 = vsel %vm4776_vm12, 0, %v4783_v11  ;;  %v2918_v21 = vadd.s32 4294967294, %v2247_v23  ;;  %v2119_v37 = vsel %vm2109_vm14, %v2116_v32, %v2118_v26  ;;  %v2122_v27 = vsel %vm2110_vm0, %v2104_v7, %v2121_v51 }
 0x25c   :  { %v2123_v52 = vsel %vm2109_vm14, %v2120_v46, %v2122_v27  ;;  %v4824_v41 = vmul.u32.u64.low %v4785_v18, %v2119_v37  ;;  %v4825_v50 = vmul.u32.u64.high %v4785_v18, %v2119_v37, %v4824_v41  ;;  %v2924_v9 = vadd.s32 4294967169, %v2389_v49 }
 0x25d   :  { %vm2919_vm1 = vcmp.lt.s32.totalorder %v2918_v21, 0  ;;  %v2115_v34 = vsel %vm2109_vm14, %v2112_v24, %v2114_v58  ;;  %v4830_v30 = vmul.u32.u64.low %v4785_v18, %v2123_v52  ;;  %v4831_v12 = vmul.u32.u64.high %v4785_v18, %v2123_v52, %v4830_v30 }
 0x25e   :  { %vm2181_vm2 = vcmp.lt.s32.totalorder %v4629_v57, 0  ;;  %v2250_v14 = vsel %vm2919_vm1, 0, %v2918_v21  ;;  %v2265_v11 = vsub.s32 4, %v4790_v3  ;;  %v2395_v19 = vadd.s32 1, %v2924_v9 }
 0x25f   :  { %v1963_v28 = vand.u32 3, %v1959_v36  ;;  %v2235_v45 = vadd.s32 %v4747_v59, %v4758_v35  ;;  %v2251_v47 = vsub.s32 32, %v2250_v14  ;;  %v2255_v48 = vsub.s32 4294967266, %v2250_v14 }
 0x260   :  { %v2131_v1 = vmul.u32 %v4785_v18, %v2115_v34  ;;  %v2134_v10 = vadd.s32 1, %v4825_v50  ;;  %v2385_v33 = vand.u32 2147483647, %v4788_v13  ;;  %vm2396_vm3 = vcmp.gt.s32.totalorder %v2395_v19, 0 }
 0x261   :  { %v2252_v15 = vshll.u32 %v4804_v31, %v2250_v14  ;;  %v2253_v44 = vshrl.u32 %v2235_v45, %v2251_v47  ;;  %v2256_v25 = vadd.s32 127, %v2255_v48  ;;  %vm2133_vm4 = vc.u32 %v4831_v12, %v4824_v41 }
 0x262   :  { %vm1962_vm5 = vweird.f32 %v4585_v53  ;;  %v2266_v59 = vsel %vm2181_vm2, %v2265_v11, %v4790_v3  ;;  %v2135_v35 = vsel %vm2133_vm4, %v2134_v10, %v4825_v50  ;;  %v2397_v18 = vsel %vm2396_vm3, %v2395_v19, 0 }
 0x263   :  { %vm4850_vm6 = vcmp.le.f32.partialorder %v2179_v63, 0.7853982  ;;  %v2254_v31 = vor.u32 %v2253_v44, %v2252_v15  ;;  %v2257_v43 = vshll.u32 %v2256_v25, 23  ;;  %v2136_v56 = vadd.s32 %v2135_v35, %v2131_v1 }
 0x264   :  { %v3121_v61 = vpop.eup %3120  ;;  %vm1964_vm7 = vcmp.lt.s32.totalorder %v1963_v28, 2  ;;  %vm1965_vm8 = vcmp.eq.s32.totalorder %v1963_v28, 0  ;;  %v2392_v7 = vand.u32 8388607, %v2385_v33  ;;  %v2399_v3 = vand.u32 31, %v2397_v18 }
 0x265   :  { %v3123_v5 = vpop.eup %3122  ;;  %v1969_v38 = vxor.u32 2147483648, %v3121_v61  ;;  %v2258_v40 = vor.u32 4788187, %v2257_v43  ;;  %v2268_v63 = vsel %vm4850_vm6, 0, %v2266_v59  ;;  %v2137_v22 = vadd.s32 536870912, %v2136_v56 }
 0x266   :  { %v1966_v60 = vxor.u32 2147483648, %v3123_v5  ;;  %vm1968_vm9 = vcmp.eq.s32.totalorder %v1963_v28, 2  ;;  %v2400_v16 = vsub.s32 32, %v2399_v3  ;;  %v188_v32 = vmul.f32 %v4546_v29, %v142_v42 }
 0x267   :  { %v1970_v23 = vsel %vm1968_vm9, %v1969_v38, %v3123_v5  ;;  %v2259_v24 = vand.u32 2147483647, %v2258_v40  ;;  %v2261_v62 = vcvt.s32.f32 %v2254_v31  ;;  %v4859_v46 = vshrl.u32 %v2137_v22, 30 }
 0x268   :  { %v1967_v58 = vsel %vm1965_vm8, %v3121_v61, %v1966_v60  ;;  %v4862_v26 = vand.u32 3, %v2268_v63  ;;  %v2393_v51 = vor.u32 8388608, %v2392_v7  ;;  %v2403_v49 = vshrl.u32 %v3184_v2, %v2400_v16 }
 0x269   :  { %v1971_v36 = vsel %vm1964_vm7, %v1967_v58, %v1970_v23  ;;  %v2262_v21 = vmul.f32 %v2261_v62, %v2259_v24  ;;  %v2139_v37 = vshll.u32 %v4859_v46, 30  ;;  %v2406_v27 = vshrl.u32 %v3185_v4, %v2400_v16 }
 0x26a   :  { %v1972_v29 = vsel %vm1962_vm5, nan, %v1971_v36  ;;  %v2402_v52 = vshll.u32 %v3183_v0, %v2399_v3  ;;  %v2409_v50 = vshrl.u32 %v3186_v6, %v2400_v16  ;;  %v4873_v9 = vadd.f32 %v4582_v39, %v188_v32 }
 0x26b   :  { %2813 = vst [vmem:[#allocation2 + $0x80] sm:$0xff] %v1972_v29  ;;  %v2263_v34 = vxor.u32 2147483648, %v2262_v21  ;;  %v4875_v30 = vsub.s32 %v2136_v56, %v2139_v37  ;;  %v2398_v14 = vshrl.u32 %v2397_v18, 5  ;;  %v2405_v11 = vshll.u32 %v3184_v2, %v2399_v3 }
 0x26c   :  { %v2404_v19 = vor.u32 %v2403_v49, %v2402_v52  ;;  %v2408_v28 = vshll.u32 %v3185_v4, %v2399_v3  ;;  %v2411_v53 = vshll.u32 %v3186_v6, %v2399_v3  ;;  %v2412_v45 = vshrl.u32 %v3187_v8, %v2400_v16 }
 0x26d   :  { %v2264_v47 = vsel %vm2181_vm2, %v2263_v34, %v2262_v21  ;;  %v2142_v39 = vsub.s32 0, %v4875_v30  ;;  %v2407_v48 = vor.u32 %v2406_v27, %v2405_v11  ;;  %v2415_v1 = vshrl.u32 %v3188_v17, %v2400_v16 }
 0x26e   :  { %v2267_v10 = vsel %vm4850_vm6, %v4629_v57, %v2264_v47  ;;  %v2410_v15 = vor.u32 %v2409_v50, %v2408_v28  ;;  %v2413_v44 = vor.u32 %v2412_v45, %v2411_v53  ;;  %v2414_v25 = vshll.u32 %v3187_v8, %v2399_v3  ;;  %v157_v45 = vpop.permute.xlu1 %156 }
 0x26f   :  { %3124 = vcosq.f32 %v2267_v10  ;;  %v2913_v59 = vmin.u32 %v2142_v39, %v4875_v30  ;;  %v2433_v35 = vshll.u32 %v2393_v51, 8  ;;  %v2285_v18 = vand.u32 2139095040, %v4873_v9 }
 0x270   :  { %3126 = vsinq.f32 %v2267_v10  ;;  %v2401_v31 = vshrl.u32 %v3183_v0, %v2400_v16  ;;  %v2416_v43 = vor.u32 %v2415_v1, %v2414_v25  ;;  %vm2417_vm10 = vcmp.lt.s32.totalorder %v2398_v14, 1 }
 0x271   :  { %v2144_v56 = vclz %v2913_v59  ;;  %vm2419_vm11 = vcmp.lt.s32.totalorder %v2398_v14, 3  ;;  %vm2420_vm12 = vcmp.lt.s32.totalorder %v2398_v14, 4  ;;  %v2425_v55 = vsel %vm2417_vm10, %v2404_v19, %v2407_v48 }
 0x272   :  { %v2422_v42 = vsel %vm2420_vm12, %v2410_v15, 2102212464  ;;  %v2426_v61 = vsel %vm2420_vm12, %v2413_v44, 920167782  ;;  %v2429_v7 = vsel %vm2417_vm10, %v2407_v48, %v2410_v15  ;;  %v2430_v5 = vsel %vm2420_vm12, %v2416_v43, 1326507024 }
 0x273   :  { %v2914_v3 = vadd.s32 4294967294, %v2144_v56  ;;  %vm2418_vm13 = vcmp.lt.s32.totalorder %v2398_v14, 2  ;;  %v2427_v38 = vsel %vm2419_vm11, %v2410_v15, %v2426_v61  ;;  %v2431_v40 = vsel %vm2419_vm11, %v2413_v44, %v2430_v5 }
 0x274   :  { %v2421_v63 = vsel %vm2417_vm10, %v2401_v31, %v2404_v19  ;;  %v2428_v22 = vsel %vm2418_vm13, %v2425_v55, %v2427_v38  ;;  %v2432_v60 = vsel %vm2418_vm13, %v2429_v7, %v2431_v40  ;;  %v2286_v16 = vshrl.u32 %v2285_v18, 23  ;;  %v4933_v18 = vld [vmem:[%s5219_s1] ss:$0 sm:$0xff] }
 0x275   :  { %vm2915_vm14 = vcmp.lt.s32.totalorder %v2914_v3, 0  ;;  %v2423_v32 = vsel %vm2419_vm11, %v2407_v48, %v2422_v42  ;;  %v4897_v23 = vmul.u32.u64.low %v2433_v35, %v2432_v60  ;;  %v4898_v24 = vmul.u32.u64.high %v2433_v35, %v2432_v60, %v4897_v23 }
 0x276   :  { %v2147_v62 = vsel %vm2915_vm14, 0, %v2914_v3  ;;  %v4900_v58 = vmul.u32.u64.low %v2433_v35, %v2428_v22  ;;  %v4901_v51 = vmul.u32.u64.high %v2433_v35, %v2428_v22, %v4900_v58  ;;  %v2920_v49 = vadd.s32 4294967169, %v2286_v16 }
 0x277   :  { %vm2078_vm15 = vcmp.lt.s32.totalorder %v4699_v54, 0  ;;  %v2132_v36 = vadd.s32 %v4824_v41, %v4831_v12  ;;  %v2148_v21 = vsub.s32 32, %v2147_v62  ;;  %v2152_v37 = vsub.s32 4294967266, %v2147_v62 }
 0x278   :  { %v2162_v27 = vsub.s32 4, %v4859_v46  ;;  %v2424_v29 = vsel %vm2418_vm13, %v2421_v63, %v2423_v32  ;;  %v2282_v52 = vand.u32 2147483647, %v4873_v9  ;;  %v2292_v50 = vadd.s32 1, %v2920_v49 }
 0x279   :  { %vm2271_vm0 = vweird.f32 %v4629_v57  ;;  %v2149_v34 = vshll.u32 %v4875_v30, %v2147_v62  ;;  %v2150_v11 = vshrl.u32 %v2132_v36, %v2148_v21  ;;  %v2153_v19 = vadd.s32 127, %v2152_v37 }
 0x27a   :  { %vm2442_vm1 = vc.u32 %v4898_v24, %v4900_v58  ;;  %vm2273_vm2 = vcmp.lt.s32.totalorder %v4862_v26, 2  ;;  %vm4917_vm3 = vcmp.le.f32.partialorder %v2076_v20, 0.7853982  ;;  %v2443_v12 = vadd.s32 1, %v4901_v51 }
 0x27b   :  { %vm2293_vm4 = vcmp.gt.s32.totalorder %v2292_v50, 0  ;;  %v2151_v14 = vor.u32 %v2150_v11, %v2149_v34  ;;  %v2154_v28 = vshll.u32 %v2153_v19, 23  ;;  %v2440_v53 = vmul.u32 %v2433_v35, %v2424_v29 }
 0x27c   :  { %v2294_v30 = vsel %vm2293_vm4, %v2292_v50, 0  ;;  %v3125_v47 = vpop.eup %3124  ;;  %vm2274_vm5 = vcmp.eq.s32.totalorder %v4862_v26, 0  ;;  %v2444_v39 = vsel %vm2442_vm1, %v2443_v12, %v4901_v51  ;;  %v2289_v48 = vand.u32 8388607, %v2282_v52 }
 0x27d   :  { %v2296_v20 = vand.u32 31, %v2294_v30  ;;  %v3127_v1 = vpop.eup %3126  ;;  %v2278_v10 = vxor.u32 2147483648, %v3125_v47  ;;  %v2155_v15 = vor.u32 4788187, %v2154_v28  ;;  %v2163_v44 = vsel %vm2078_vm15, %v2162_v27, %v4859_v46 }
 0x27e   :  { %v2445_v25 = vadd.s32 %v2444_v39, %v2440_v53  ;;  %v2275_v59 = vxor.u32 2147483648, %v3127_v1  ;;  %vm2277_vm6 = vcmp.eq.s32.totalorder %v4862_v26, 2  ;;  %v191_v31 = vmul.f32 %v4933_v18, %v157_v45  ;;  %v4970_v53 = vld [vmem:[%s5219_s1 + $0x1] ss:$0 sm:$0xff]  ;;  %s3189_s1 = smov [#allocation2]  }
 0x27f   :  { %v2297_v35 = vsub.s32 32, %v2296_v20  ;;  %v2279_v43 = vsel %vm2277_vm6, %v2278_v10, %v3127_v1  ;;  %v2156_v56 = vand.u32 2147483647, %v2155_v15  ;;  %v2158_v55 = vcvt.s32.f32 %v2151_v14  ;;  %s2827_s22 = sshll.u32 %s3189_s1, 4  ;;  %s2828_s22 = int_to_ptr.vmem [resolvable:$true] %s2827_s22 }
 0x280   :  { %v2446_v42 = vadd.s32 536870912, %v2445_v25  ;;  %v2276_v61 = vsel %vm2274_vm5, %v3125_v47, %v2275_v59  ;;  %v2165_v46 = vsel %vm4917_vm3, 0, %v2163_v44  ;;  %v2290_v7 = vor.u32 8388608, %v2289_v48  ;;  %v152_v48 = vpop.permute.xlu0 %151  ;;  %s3160_s23 = scalar_lea.vmem %s2828_s22, 3200  ;;  %p3165_p1 = scmp.lt.s32.totalorder %s2828_s22, %s2828_s22 }
 0x281   :  { %v2300_v5 = vshrl.u32 %v3184_v2, %v2297_v35  ;;  %v2280_v3 = vsel %vm2273_vm2, %v2276_v61, %v2279_v43  ;;  %v2159_v38 = vmul.f32 %v2158_v55, %v2156_v56  ;;  %v2303_v63 = vshrl.u32 %v3185_v4, %v2297_v35  ;;  %p3161_p0 = scmp.ne.s32.totalorder %s2828_s22, %s3160_s23  ;;  %p3166_p2 = scmp.lt.s32.totalorder %s3160_s23, %s3160_s23 }
 0x282   :  { %v4943_v40 = vshrl.u32 %v2446_v42, 30  ;;  %v2281_v22 = vsel %vm2271_vm0, nan, %v2280_v3  ;;  %v2295_v60 = vshrl.u32 %v2294_v30, 5  ;;  %v2299_v16 = vshll.u32 %v3183_v0, %v2296_v20 }
 0x283   :  { %v2306_v32 = vshrl.u32 %v3186_v6, %v2297_v35  ;;  %2816 = vst [vmem:[#allocation2 + $0x98] sm:$0xff] %v2281_v22  ;;  %v2160_v23 = vxor.u32 2147483648, %v2159_v38  ;;  %v2302_v26 = vshll.u32 %v3184_v2, %v2296_v20  ;;  %v2305_v51 = vshll.u32 %v3185_v4, %v2296_v20  ;;  %p3167_p3 = por %p3166_p2, %p3165_p1 }
 0x284   :  { %v2448_v62 = vshll.u32 %v4943_v40, 30  ;;  %v2308_v49 = vshll.u32 %v3186_v6, %v2296_v20  ;;  %v2309_v36 = vshrl.u32 %v3187_v8, %v2297_v35  ;;  %v2311_v57 = vshll.u32 %v3187_v8, %v2296_v20 }
 0x285   :  { %v2312_v21 = vshrl.u32 %v3188_v17, %v2297_v35  ;;  %v2161_v37 = vsel %vm2078_vm15, %v2160_v23, %v2159_v38  ;;  %v2301_v29 = vor.u32 %v2300_v5, %v2299_v16  ;;  %v2304_v50 = vor.u32 %v2303_v63, %v2302_v26  ;;  %p3168_p4 = pnand %p3167_p3, %p3161_p0 }
 0x286   :  { %v4959_v27 = vsub.s32 %v2445_v25, %v2448_v62  ;;  %v2164_v34 = vsel %vm4917_vm3, %v4699_v54, %v2161_v37  ;;  %v2307_v11 = vor.u32 %v2306_v32, %v2305_v51  ;;  %v2310_v19 = vor.u32 %v2309_v36, %v2308_v49 }
 0x287   :  { %v2313_v12 = vor.u32 %v2312_v21, %v2311_v57  ;;  %3128 = vcosq.f32 %v2164_v34  ;;  %v4964_v14 = vand.u32 3, %v2165_v46  ;;  %v4973_v30 = vadd.f32 %v4970_v53, %v191_v31 }
 0x288   :  { %v2451_v28 = vsub.s32 0, %v4959_v27  ;;  %3130 = vsinq.f32 %v2164_v34  ;;  %v2298_v41 = vshrl.u32 %v3183_v0, %v2297_v35  ;;  %vm2314_vm7 = vcmp.lt.s32.totalorder %v2295_v60, 1 }
 0x289   :  { %v2330_v45 = vshll.u32 %v2290_v7, 8  ;;  %vm2316_vm8 = vcmp.lt.s32.totalorder %v2295_v60, 3  ;;  %vm2317_vm9 = vcmp.lt.s32.totalorder %v2295_v60, 4  ;;  %v2322_v39 = vsel %vm2314_vm7, %v2301_v29, %v2304_v50 }
 0x28a   :  { %v2925_v47 = vmin.u32 %v2451_v28, %v4959_v27  ;;  %v2319_v20 = vsel %vm2317_vm9, %v2307_v11, 2102212464  ;;  %v2323_v1 = vsel %vm2317_vm9, %v2310_v19, 920167782  ;;  %v2326_v10 = vsel %vm2314_vm7, %v2304_v50, %v2307_v11 }
 0x28b   :  { %v2327_v15 = vsel %vm2317_vm9, %v2313_v12, 1326507024  ;;  %vm2315_vm10 = vcmp.lt.s32.totalorder %v2295_v60, 2  ;;  %v2324_v25 = vsel %vm2316_vm8, %v2307_v11, %v2323_v1  ;;  %v2318_v31 = vsel %vm2314_vm7, %v2298_v41, %v2301_v29 }
 0x28c   :  { %v2453_v44 = vclz %v2925_v47  ;;  %v2328_v59 = vsel %vm2316_vm8, %v2310_v19, %v2327_v15  ;;  %v2325_v35 = vsel %vm2315_vm10, %v2322_v39, %v2324_v25  ;;  %v190_v56 = vmul.f32 %v4933_v18, %v152_v48 }
 0x28d   :  { %v2329_v43 = vsel %vm2315_vm10, %v2326_v10, %v2328_v59  ;;  %v2320_v42 = vsel %vm2316_vm8, %v2304_v50, %v2319_v20  ;;  %v4986_v7 = vmul.u32.u64.low %v2330_v45, %v2325_v35  ;;  %v4987_v5 = vmul.u32.u64.high %v2330_v45, %v2325_v35, %v4986_v7 }
 0x28e   :  { %v2926_v55 = vadd.s32 4294967294, %v2453_v44  ;;  %v4983_v61 = vmul.u32.u64.low %v2330_v45, %v2329_v43  ;;  %v4984_v46 = vmul.u32.u64.high %v2330_v45, %v2329_v43, %v4983_v61  ;;  %v2594_v3 = vand.u32 2139095040, %v4973_v30 }
 0x28f   :  { %vm4992_vm11 = vcmp.le.f32.partialorder %v2385_v33, 0.7853982  ;;  %vm2387_vm12 = vcmp.lt.s32.totalorder %v4788_v13, 0  ;;  %v2471_v63 = vsub.s32 4, %v4943_v40  ;;  %v2321_v16 = vsel %vm2315_vm10, %v2318_v31, %v2320_v42 }
 0x290   :  { %vm2927_vm13 = vcmp.lt.s32.totalorder %v2926_v55, 0  ;;  %v2595_v32 = vshrl.u32 %v2594_v3, 23  ;;  %v5000_v23 = vadd.f32 %v4970_v53, %v190_v56  ;;  %vm2168_vm14 = vweird.f32 %v4699_v54 }
 0x291   :  { %v2456_v22 = vsel %vm2927_vm13, 0, %v2926_v55  ;;  %vm2170_vm15 = vcmp.lt.s32.totalorder %v4964_v14, 2  ;;  %v2441_v33 = vadd.s32 %v4900_v58, %v4898_v24  ;;  %vm2339_vm0 = vc.u32 %v4984_v46, %v4986_v7 }
 0x292   :  { %v2457_v62 = vsub.s32 32, %v2456_v22  ;;  %v2461_v26 = vsub.s32 4294967266, %v2456_v22  ;;  %v2340_v51 = vadd.s32 1, %v4987_v5  ;;  %v2591_v60 = vand.u32 2147483647, %v4973_v30 }
 0x293   :  { %v2932_v49 = vadd.s32 4294967169, %v2595_v32  ;;  %v2458_v36 = vshll.u32 %v4959_v27, %v2456_v22  ;;  %v2337_v37 = vmul.u32 %v2330_v45, %v2321_v16  ;;  %v2472_v50 = vsel %vm2387_vm12, %v2471_v63, %v4943_v40 }
 0x294   :  { %v2459_v57 = vshrl.u32 %v2441_v33, %v2457_v62  ;;  %v2462_v21 = vadd.s32 127, %v2461_v26  ;;  %v3129_v29 = vpop.eup %3128  ;;  %v2341_v24 = vsel %vm2339_vm0, %v2340_v51, %v4987_v5  ;;  %v2491_v34 = vand.u32 2139095040, %v5000_v23 }
 0x295   :  { %v2601_v58 = vadd.s32 1, %v2932_v49  ;;  %v3131_v11 = vpop.eup %3130  ;;  %v2175_v19 = vxor.u32 2147483648, %v3129_v29  ;;  %v2342_v41 = vadd.s32 %v2341_v24, %v2337_v37  ;;  %vm2171_vm1 = vcmp.eq.s32.totalorder %v4964_v14, 0 }
 0x296   :  { %v2460_v12 = vor.u32 %v2459_v57, %v2458_v36  ;;  %v2463_v28 = vshll.u32 %v2462_v21, 23  ;;  %v2172_v27 = vxor.u32 2147483648, %v3131_v11  ;;  %vm2174_vm2 = vcmp.eq.s32.totalorder %v4964_v14, 2 }
 0x297   :  { %vm2602_vm3 = vcmp.gt.s32.totalorder %v2601_v58, 0  ;;  %v2176_v45 = vsel %vm2174_vm2, %v2175_v19, %v3131_v11  ;;  %v2474_v40 = vsel %vm4992_vm11, 0, %v2472_v50  ;;  %v2343_v39 = vadd.s32 536870912, %v2342_v41 }
 0x298   :  { %v2464_v47 = vor.u32 4788187, %v2463_v28  ;;  %v2173_v48 = vsel %vm2171_vm1, %v3129_v29, %v2172_v27  ;;  %v2598_v20 = vand.u32 8388607, %v2591_v60  ;;  %v2603_v1 = vsel %vm2602_vm3, %v2601_v58, 0 }
 0x299   :  { %v2492_v10 = vshrl.u32 %v2491_v34, 23  ;;  %v2177_v15 = vsel %vm2170_vm15, %v2173_v48, %v2176_v45  ;;  %v2467_v25 = vcvt.s32.f32 %v2460_v12  ;;  %v5023_v59 = vshrl.u32 %v2343_v39, 30 }
 0x29a   :  { %v2465_v44 = vand.u32 2147483647, %v2464_v47  ;;  %v2178_v31 = vsel %vm2168_vm14, nan, %v2177_v15  ;;  %v2605_v35 = vand.u32 31, %v2603_v1  ;;  %v5027_v56 = vand.u32 3, %v2474_v40 }
 0x29b   :  { %2815 = vst [vmem:[#allocation2 + $0x90] sm:$0xff] %v2178_v31  ;;  %v2345_v55 = vshll.u32 %v5023_v59, 30  ;;  %v2338_v42 = vadd.s32 %v4986_v7, %v4984_v46  ;;  %v2599_v61 = vor.u32 8388608, %v2598_v20  ;;  %v2928_v14 = vadd.s32 4294967169, %v2492_v10 }
 0x29c   :  { %v2468_v43 = vmul.f32 %v2467_v25, %v2465_v44  ;;  %v2606_v5 = vsub.s32 32, %v2605_v35  ;;  %v2604_v22 = vshrl.u32 %v2603_v1, 5  ;;  %v2608_v16 = vshll.u32 %v3183_v0, %v2605_v35 }
 0x29d   :  { %v5031_v63 = vsub.s32 %v2342_v41, %v2345_v55  ;;  %v2611_v32 = vshll.u32 %v3184_v2, %v2605_v35  ;;  %v2614_v62 = vshll.u32 %v3185_v4, %v2605_v35  ;;  %v2617_v51 = vshll.u32 %v3186_v6, %v2605_v35 }
 0x29e   :  { %v2469_v3 = vxor.u32 2147483648, %v2468_v43  ;;  %v2609_v54 = vshrl.u32 %v3184_v2, %v2606_v5  ;;  %v2612_v33 = vshrl.u32 %v3185_v4, %v2606_v5  ;;  %v2615_v26 = vshrl.u32 %v3186_v6, %v2606_v5 }
 0x29f   :  { %v2348_v7 = vsub.s32 0, %v5031_v63  ;;  %v2618_v21 = vshrl.u32 %v3187_v8, %v2606_v5  ;;  %v5048_v29 = vshll.u32 %v2599_v61, 8  ;;  %v2498_v50 = vadd.s32 1, %v2928_v14 }
 0x2a0   :  { %v2470_v46 = vsel %vm2387_vm12, %v2469_v3, %v2468_v43  ;;  %v2610_v36 = vor.u32 %v2609_v54, %v2608_v16  ;;  %v2613_v57 = vor.u32 %v2612_v33, %v2611_v32  ;;  %v2616_v24 = vor.u32 %v2615_v26, %v2614_v62  ;;  %v162_v62 = vpop.permute.xlu0 %161 }
 0x2a1   :  { %v2473_v49 = vsel %vm4992_vm11, %v4788_v13, %v2470_v46  ;;  %v2921_v37 = vmin.u32 %v2348_v7, %v5031_v63  ;;  %v2619_v58 = vor.u32 %v2618_v21, %v2617_v51  ;;  %vm2623_vm4 = vcmp.lt.s32.totalorder %v2604_v22, 1 }
 0x2a2   :  { %3132 = vcosq.f32 %v2473_v49  ;;  %v2607_v11 = vshrl.u32 %v3183_v0, %v2606_v5  ;;  %v2620_v38 = vshll.u32 %v3187_v8, %v2605_v35  ;;  %v2621_v19 = vshrl.u32 %v3188_v17, %v2606_v5 }
 0x2a3   :  { %3134 = vsinq.f32 %v2473_v49  ;;  %v2350_v34 = vclz %v2921_v37  ;;  %vm2624_vm5 = vcmp.lt.s32.totalorder %v2604_v22, 2  ;;  %vm2625_vm6 = vcmp.lt.s32.totalorder %v2604_v22, 3 }
 0x2a4   :  { %vm2626_vm7 = vcmp.lt.s32.totalorder %v2604_v22, 4  ;;  %v2631_v12 = vsel %vm2623_vm4, %v2610_v36, %v2613_v57  ;;  %v2622_v41 = vor.u32 %v2621_v19, %v2620_v38  ;;  %v2627_v47 = vsel %vm2623_vm4, %v2607_v11, %v2610_v36 }
 0x2a5   :  { %v2922_v28 = vadd.s32 4294967294, %v2350_v34  ;;  %v2628_v27 = vsel %vm2626_vm7, %v2616_v24, 2102212464  ;;  %v2632_v45 = vsel %vm2626_vm7, %v2619_v58, 920167782  ;;  %v2635_v48 = vsel %vm2623_vm4, %v2613_v57, %v2616_v24 }
 0x2a6   :  { %v2629_v40 = vsel %vm2625_vm6, %v2613_v57, %v2628_v27  ;;  %v2633_v39 = vsel %vm2625_vm6, %v2616_v24, %v2632_v45  ;;  %v2636_v1 = vsel %vm2626_vm7, %v2622_v41, 1326507024  ;;  %vm2499_vm9 = vcmp.gt.s32.totalorder %v2498_v50, 0 }
 0x2a7   :  { %vm2923_vm8 = vcmp.lt.s32.totalorder %v2922_v28, 0  ;;  %v2634_v20 = vsel %vm2624_vm5, %v2631_v12, %v2633_v39  ;;  %v2637_v15 = vsel %vm2625_vm6, %v2619_v58, %v2636_v1  ;;  %v2488_v55 = vand.u32 2147483647, %v5000_v23 }
 0x2a8   :  { %v2353_v10 = vsel %vm2923_vm8, 0, %v2922_v28  ;;  %v5061_v44 = vmul.u32.u64.low %v5048_v29, %v2634_v20  ;;  %v5062_v25 = vmul.u32.u64.high %v5048_v29, %v2634_v20, %v5061_v44  ;;  %v2638_v43 = vsel %vm2624_vm5, %v2635_v48, %v2637_v15 }
 0x2a9   :  { %v2354_v31 = vsub.s32 32, %v2353_v10  ;;  %v2358_v35 = vsub.s32 4294967266, %v2353_v10  ;;  %v2630_v61 = vsel %vm2624_vm5, %v2627_v47, %v2629_v40  ;;  %v2500_v3 = vsel %vm2499_vm9, %v2498_v50, 0 }
 0x2aa   :  { %v5069_v5 = vmul.u32.u64.low %v5048_v29, %v2638_v43  ;;  %v5070_v14 = vmul.u32.u64.high %v5048_v29, %v2638_v43, %v5069_v5  ;;  %vm2477_vm10 = vweird.f32 %v4788_v13  ;;  %v2355_v16 = vshll.u32 %v5031_v63, %v2353_v10 }
 0x2ab   :  { %v2356_v54 = vshrl.u32 %v2338_v42, %v2354_v31  ;;  %v2359_v32 = vadd.s32 127, %v2358_v35  ;;  %v2502_v33 = vand.u32 31, %v2500_v3  ;;  %vm2479_vm11 = vcmp.lt.s32.totalorder %v5027_v56, 2 }
 0x2ac   :  { %vm2284_vm12 = vcmp.lt.s32.totalorder %v4873_v9, 0  ;;  %v2368_v22 = vsub.s32 4, %v5023_v59  ;;  %v2649_v46 = vadd.s32 1, %v5062_v25  ;;  %vm2480_vm13 = vcmp.eq.s32.totalorder %v5027_v56, 0 }
 0x2ad   :  { %vm2483_vm14 = vcmp.eq.s32.totalorder %v5027_v56, 2  ;;  %v2357_v7 = vor.u32 %v2356_v54, %v2355_v16  ;;  %v2360_v26 = vshll.u32 %v2359_v32, 23  ;;  %v2646_v42 = vmul.u32 %v5048_v29, %v2630_v61 }
 0x2ae   :  { %vm2648_vm15 = vc.u32 %v5070_v14, %v5061_v44  ;;  %v2503_v63 = vsub.s32 32, %v2502_v33  ;;  %v192_v49 = vmul.f32 %v4933_v18, %v162_v62  ;;  %v2495_v50 = vand.u32 8388607, %v2488_v55 }
 0x2af   :  { %v3133_v51 = vpop.eup %3132  ;;  %v2361_v21 = vor.u32 4788187, %v2360_v26  ;;  %v2650_v37 = vsel %vm2648_vm15, %v2649_v46, %v5062_v25  ;;  %v5090_v58 = vsel %vm2284_vm12, %v2368_v22, %v5023_v59  ;;  %v5092_v34 = vshrl.u32 %v2500_v3, 5 }
 0x2b0   :  { %v3135_v36 = vpop.eup %3134  ;;  %v2484_v57 = vxor.u32 2147483648, %v3133_v51  ;;  %v2651_v29 = vadd.s32 %v2650_v37, %v2646_v42  ;;  %v2364_v38 = vcvt.s32.f32 %v2357_v7  ;;  %v2505_v19 = vshll.u32 %v3183_v0, %v2502_v33 }
 0x2b1   :  { %v2481_v24 = vxor.u32 2147483648, %v3135_v36  ;;  %v2362_v11 = vand.u32 2147483647, %v2361_v21  ;;  %v2506_v41 = vshrl.u32 %v3184_v2, %v2503_v63  ;;  %v2512_v27 = vshrl.u32 %v3186_v6, %v2503_v63 }
 0x2b2   :  { %v2485_v18 = vsel %vm2483_vm14, %v2484_v57, %v3135_v36  ;;  %v2652_v28 = vadd.s32 536870912, %v2651_v29  ;;  %v2508_v47 = vshll.u32 %v3184_v2, %v2502_v33  ;;  %v2509_v40 = vshrl.u32 %v3185_v4, %v2503_v63 }
 0x2b3   :  { %v2482_v12 = vsel %vm2480_vm13, %v3133_v51, %v2481_v24  ;;  %v2365_v45 = vmul.f32 %v2364_v38, %v2362_v11  ;;  %v2511_v20 = vshll.u32 %v3185_v4, %v2502_v33  ;;  %v2515_v1 = vshrl.u32 %v3187_v8, %v2503_v63 }
 0x2b4   :  { %v2486_v59 = vsel %vm2479_vm11, %v2482_v12, %v2485_v18  ;;  %v5107_v48 = vshrl.u32 %v2652_v28, 30  ;;  %v2514_v15 = vshll.u32 %v3186_v6, %v2502_v33  ;;  %v2517_v56 = vshll.u32 %v3187_v8, %v2502_v33 }
 0x2b5   :  { %v2487_v39 = vsel %vm2477_vm10, nan, %v2486_v59  ;;  %v2366_v10 = vxor.u32 2147483648, %v2365_v45  ;;  %v2518_v25 = vshrl.u32 %v3188_v17, %v2503_v63  ;;  %vm5116_vm0 = vcmp.le.f32.partialorder %v2282_v52, 0.7853982 }
 0x2b6   :  { %2818 = vst [vmem:[#allocation2 + $0xa8] sm:$0xff] %v2487_v39  ;;  %v2654_v13 = vshll.u32 %v5107_v48, 30  ;;  %v2507_v35 = vor.u32 %v2506_v41, %v2505_v19  ;;  %v2513_v43 = vor.u32 %v2512_v27, %v2511_v20  ;;  %v2510_v5 = vor.u32 %v2509_v40, %v2508_v47 }
 0x2b7   :  { %v2367_v61 = vsel %vm2284_vm12, %v2366_v10, %v2365_v45  ;;  %v2516_v3 = vor.u32 %v2515_v1, %v2514_v15  ;;  %v2519_v16 = vor.u32 %v2518_v25, %v2517_v56  ;;  %v2371_v52 = vsel %vm5116_vm0, 0, %v5090_v58 }
 0x2b8   :  { %v2370_v54 = vsel %vm5116_vm0, %v4873_v9, %v2367_v61  ;;  %v2655_v32 = vsub.s32 %v2651_v29, %v2654_v13  ;;  %v2496_v33 = vor.u32 8388608, %v2495_v50  ;;  %v2504_v62 = vshrl.u32 %v3183_v0, %v2503_v63 }
 0x2b9   :  { %3136 = vcosq.f32 %v2370_v54  ;;  %vm2523_vm1 = vcmp.lt.s32.totalorder %v5092_v34, 4  ;;  %v5132_v22 = vadd.f32 %v4970_v53, %v192_v49  ;;  %vm2520_vm2 = vcmp.lt.s32.totalorder %v5092_v34, 1 }
 0x2ba   :  { %3138 = vsinq.f32 %v2370_v54  ;;  %v2657_v46 = vsub.s32 0, %v2655_v32  ;;  %v2525_v7 = vsel %vm2523_vm1, %v2513_v43, 2102212464  ;;  %v2528_v26 = vsel %vm2520_vm2, %v2507_v35, %v2510_v5 }
 0x2bb   :  { %v2529_v51 = vsel %vm2523_vm1, %v2516_v3, 920167782  ;;  %v2532_v42 = vsel %vm2520_vm2, %v2510_v5, %v2513_v43  ;;  %v2533_v36 = vsel %vm2523_vm1, %v2519_v16, 1326507024  ;;  %vm2521_vm3 = vcmp.lt.s32.totalorder %v5092_v34, 2 }
 0x2bc   :  { %v2933_v57 = vmin.u32 %v2657_v46, %v2655_v32  ;;  %vm2522_vm4 = vcmp.lt.s32.totalorder %v5092_v34, 3  ;;  %v2536_v63 = vshll.u32 %v2496_v33, 8  ;;  %v2524_v21 = vsel %vm2520_vm2, %v2504_v62, %v2507_v35 }
 0x2bd   :  { %v2526_v37 = vsel %vm2522_vm4, %v2510_v5, %v2525_v7  ;;  %v2530_v50 = vsel %vm2522_vm4, %v2513_v43, %v2529_v51  ;;  %v2534_v53 = vsel %vm2522_vm4, %v2516_v3, %v2533_v36  ;;  %v2697_v29 = vand.u32 2139095040, %v5132_v22 }
 0x2be   :  { %v2659_v49 = vclz %v2933_v57  ;;  %v2531_v24 = vsel %vm2521_vm3, %v2528_v26, %v2530_v50  ;;  %v2535_v58 = vsel %vm2521_vm3, %v2532_v42, %v2534_v53  ;;  %v2527_v34 = vsel %vm2521_vm3, %v2524_v21, %v2526_v37 }
 0x2bf   :  { %v5138_v18 = vmul.u32.u64.low %v2536_v63, %v2535_v58  ;;  %v5139_v11 = vmul.u32.u64.high %v2536_v63, %v2535_v58, %v5138_v18  ;;  %v5141_v38 = vmul.u32.u64.low %v2536_v63, %v2531_v24  ;;  %v5142_v19 = vmul.u32.u64.high %v2536_v63, %v2531_v24, %v5141_v38 }
 0x2c0   :  { %v2934_v12 = vadd.s32 4294967294, %v2659_v49  ;;  %v2698_v28 = vshrl.u32 %v2697_v29, 23  ;;  %v2375_v41 = vand.u32 3, %v2371_v52  ;;  %v2647_v59 = vadd.s32 %v5061_v44, %v5070_v14 }
 0x2c1   :  { %vm2545_vm6 = vc.u32 %v5139_v11, %v5141_v38  ;;  %v2546_v47 = vadd.s32 1, %v5142_v19  ;;  %v2543_v20 = vmul.u32 %v2536_v63, %v2527_v34  ;;  %v2694_v14 = vand.u32 2147483647, %v5132_v22 }
 0x2c2   :  { %vm2935_vm5 = vcmp.lt.s32.totalorder %v2934_v12, 0  ;;  %v2936_v27 = vadd.s32 4294967169, %v2698_v28  ;;  %vm2380_vm8 = vcmp.eq.s32.totalorder %v2375_v41, 2  ;;  %vm2374_vm9 = vweird.f32 %v4873_v9 }
 0x2c3   :  { %v2662_v45 = vsel %vm2935_vm5, 0, %v2934_v12  ;;  %v2547_v15 = vsel %vm2545_vm6, %v2546_v47, %v5142_v19  ;;  %vm2377_vm10 = vcmp.eq.s32.totalorder %v2375_v41, 0  ;;  %vm2376_vm11 = vcmp.lt.s32.totalorder %v2375_v41, 2 }
 0x2c4   :  { %v2663_v40 = vsub.s32 32, %v2662_v45  ;;  %v2667_v39 = vsub.s32 4294967266, %v2662_v45  ;;  %v2704_v1 = vadd.s32 1, %v2936_v27  ;;  %v2664_v10 = vshll.u32 %v2655_v32, %v2662_v45 }
 0x2c5   :  { %v2548_v13 = vadd.s32 %v2547_v15, %v2543_v20  ;;  %vm2593_vm12 = vcmp.lt.s32.totalorder %v4973_v30, 0  ;;  %v2701_v7 = vand.u32 8388607, %v2694_v14  ;;  %v2677_v57 = vsub.s32 4, %v5107_v48 }
 0x2c6   :  { %v3137_v56 = vpop.eup %3136  ;;  %v2665_v25 = vshrl.u32 %v2647_v59, %v2663_v40  ;;  %v2668_v31 = vadd.s32 127, %v2667_v39  ;;  %vm2705_vm7 = vcmp.gt.s32.totalorder %v2704_v1, 0  ;;  %vm5167_vm13 = vcmp.le.f32.partialorder %v2591_v60, 0.7853982 }
 0x2c7   :  { %v3139_v35 = vpop.eup %3138  ;;  %v2381_v44 = vxor.u32 2147483648, %v3137_v56  ;;  %v2706_v43 = vsel %vm2705_vm7, %v2704_v1, 0  ;;  %v2549_v16 = vadd.s32 536870912, %v2548_v13  ;;  %v2702_v29 = vor.u32 8388608, %v2701_v7 }
 0x2c8   :  { %v2378_v61 = vxor.u32 2147483648, %v3139_v35  ;;  %v2666_v5 = vor.u32 %v2665_v25, %v2664_v10  ;;  %v2669_v3 = vshll.u32 %v2668_v31, 23  ;;  %v2708_v52 = vand.u32 31, %v2706_v43 }
 0x2c9   :  { %v2382_v54 = vsel %vm2380_vm8, %v2381_v44, %v3139_v35  ;;  %v5153_v62 = vshrl.u32 %v2549_v16, 30  ;;  %v2707_v18 = vshrl.u32 %v2706_v43, 5  ;;  %v2678_v47 = vsel %vm2593_vm12, %v2677_v57, %v5107_v48 }
 0x2ca   :  { %v2379_v32 = vsel %vm2377_vm10, %v3137_v56, %v2378_v61  ;;  %v2670_v33 = vor.u32 4788187, %v2669_v3  ;;  %v2709_v26 = vsub.s32 32, %v2708_v52  ;;  %v2673_v36 = vcvt.s32.f32 %v2666_v5 }
 0x2cb   :  { %v2383_v46 = vsel %vm2376_vm11, %v2379_v32, %v2382_v54  ;;  %v2551_v9 = vshll.u32 %v5153_v62, 30  ;;  %v2711_v63 = vshll.u32 %v3183_v0, %v2708_v52  ;;  %v2714_v49 = vshll.u32 %v3184_v2, %v2708_v52 }
 0x2cc   :  { %v2384_v51 = vsel %vm2374_vm9, nan, %v2383_v46  ;;  %v2671_v42 = vand.u32 2147483647, %v2670_v33  ;;  %v2712_v21 = vshrl.u32 %v3184_v2, %v2709_v26  ;;  %v2715_v37 = vshrl.u32 %v3185_v4, %v2709_v26 }
 0x2cd   :  { %2817 = vst [vmem:[#allocation2 + $0xa0] sm:$0xff] %v2384_v51  ;;  %v2552_v53 = vsub.s32 %v2548_v13, %v2551_v9  ;;  %v2718_v24 = vshrl.u32 %v3186_v6, %v2709_v26  ;;  %v2717_v19 = vshll.u32 %v3185_v4, %v2708_v52  ;;  %v2720_v27 = vshll.u32 %v3186_v6, %v2708_v52 }
 0x2ce   :  { %v2674_v50 = vmul.f32 %v2673_v36, %v2671_v42  ;;  %v2713_v34 = vor.u32 %v2712_v21, %v2711_v63  ;;  %v2716_v41 = vor.u32 %v2715_v37, %v2714_v49  ;;  %v2721_v2 = vshrl.u32 %v3187_v8, %v2709_v26 }
 0x2cf   :  { %v2554_v28 = vsub.s32 0, %v2552_v53  ;;  %v2723_v59 = vshll.u32 %v3187_v8, %v2708_v52  ;;  %v2724_v45 = vshrl.u32 %v3188_v17, %v2709_v26  ;;  %v2719_v40 = vor.u32 %v2718_v24, %v2717_v19 }
 0x2d0   :  { %v2675_v12 = vxor.u32 2147483648, %v2674_v50  ;;  %v2722_v6 = vor.u32 %v2721_v2, %v2720_v27  ;;  %v2742_v1 = vshll.u32 %v2702_v29, 8  ;;  %v2710_v17 = vshrl.u32 %v3183_v0, %v2709_v26 }
 0x2d1   :  { %v2929_v4 = vmin.u32 %v2554_v28, %v2552_v53  ;;  %v2725_v20 = vor.u32 %v2724_v45, %v2723_v59  ;;  %vm2726_vm14 = vcmp.lt.s32.totalorder %v2707_v18, 1  ;;  %vm2728_vm15 = vcmp.lt.s32.totalorder %v2707_v18, 3 }
 0x2d2   :  { %v2676_v60 = vsel %vm2593_vm12, %v2675_v12, %v2674_v50  ;;  %vm2729_vm0 = vcmp.lt.s32.totalorder %v2707_v18, 4  ;;  %v2734_v10 = vsel %vm2726_vm14, %v2713_v34, %v2716_v41  ;;  %v2738_v25 = vsel %vm2726_vm14, %v2716_v41, %v2719_v40 }
 0x2d3   :  { %v2679_v39 = vsel %vm5167_vm13, %v4973_v30, %v2676_v60  ;;  %v2556_v8 = vclz %v2929_v4  ;;  %v2731_v48 = vsel %vm2729_vm0, %v2719_v40, 2102212464  ;;  %v2735_v56 = vsel %vm2729_vm0, %v2722_v6, 920167782 }
 0x2d4   :  { %3140 = vcosq.f32 %v2679_v39  ;;  %vm2727_vm1 = vcmp.lt.s32.totalorder %v2707_v18, 2  ;;  %v2730_v31 = vsel %vm2726_vm14, %v2710_v17, %v2713_v34  ;;  %v2736_v13 = vsel %vm2728_vm15, %v2719_v40, %v2735_v56 }
 0x2d5   :  { %3142 = vsinq.f32 %v2679_v39  ;;  %v2930_v15 = vadd.s32 4294967294, %v2556_v8  ;;  %v2739_v35 = vsel %vm2729_vm0, %v2725_v20, 1326507024  ;;  %v2732_v44 = vsel %vm2728_vm15, %v2716_v41, %v2731_v48 }
 0x2d6   :  { %v2737_v43 = vsel %vm2727_vm1, %v2734_v10, %v2736_v13  ;;  %v2740_v61 = vsel %vm2728_vm15, %v2722_v6, %v2739_v35  ;;  %v2544_v54 = vadd.s32 %v5141_v38, %v5139_v11  ;;  %v2680_v33 = vsel %vm5167_vm13, 0, %v2678_v47 }
 0x2d7   :  { %vm2931_vm2 = vcmp.lt.s32.totalorder %v2930_v15, 0  ;;  %v2741_v0 = vsel %vm2727_vm1, %v2738_v25, %v2740_v61  ;;  %v5187_v3 = vmul.u32.u64.low %v2742_v1, %v2737_v43  ;;  %v5188_v16 = vmul.u32.u64.high %v2742_v1, %v2737_v43, %v5187_v3 }
 0x2d8   :  { %v2559_v5 = vsel %vm2931_vm2, 0, %v2930_v15  ;;  %v5194_v46 = vmul.u32.u64.low %v2742_v1, %v2741_v0  ;;  %v5195_v7 = vmul.u32.u64.high %v2742_v1, %v2741_v0, %v5194_v46  ;;  %v2733_v36 = vsel %vm2727_vm1, %v2730_v31, %v2732_v44 }
 0x2d9   :  { %v2560_v52 = vsub.s32 32, %v2559_v5  ;;  %v2564_v32 = vsub.s32 4294967266, %v2559_v5  ;;  %v2561_v26 = vshll.u32 %v2552_v53, %v2559_v5  ;;  %v2752_v9 = vadd.s32 1, %v5188_v16 }
 0x2da   :  { %v2684_v21 = vand.u32 3, %v2680_v33  ;;  %v2749_v37 = vmul.u32 %v2742_v1, %v2733_v36  ;;  %vm2751_vm3 = vc.u32 %v5195_v7, %v5187_v3  ;;  %vm2683_vm7 = vweird.f32 %v4973_v30 }
 0x2db   :  { %v2562_v51 = vshrl.u32 %v2544_v54, %v2560_v52  ;;  %v2565_v42 = vadd.s32 127, %v2564_v32  ;;  %v2753_v38 = vsel %vm2751_vm3, %v2752_v9, %v5188_v16  ;;  %vm2490_vm8 = vcmp.lt.s32.totalorder %v5000_v23, 0 }
 0x2dc   :  { %v2754_v49 = vadd.s32 %v2753_v38, %v2749_v37  ;;  %vm2689_vm4 = vcmp.eq.s32.totalorder %v2684_v21, 2  ;;  %vm2686_vm5 = vcmp.eq.s32.totalorder %v2684_v21, 0  ;;  %vm2685_vm6 = vcmp.lt.s32.totalorder %v2684_v21, 2 }
 0x2dd   :  { %v2563_v57 = vor.u32 %v2562_v51, %v2561_v26  ;;  %v2566_v63 = vshll.u32 %v2565_v42, 23  ;;  %vm2489_vm9 = vcmp.le.f32.partialorder %v2488_v55, 0.7853982  ;;  %v2574_v40 = vsub.s32 4, %v5153_v62 }
 0x2de   :  { %v2755_v18 = vadd.s32 536870912, %v2754_v49  ;;  %v2750_v55 = vadd.s32 %v5187_v3, %v5195_v7  ;;  %vm2580_vm14 = vweird.f32 %v5000_v23  ;;  %vm2696_vm15 = vcmp.lt.s32.totalorder %v5132_v22, 0 }
 0x2df   :  { %v2567_v11 = vor.u32 4788187, %v2566_v63  ;;  %v2570_v29 = vcvt.s32.f32 %v2563_v57  ;;  %v2575_v6 = vsel %vm2490_vm8, %v2574_v40, %v5153_v62  ;;  %vm2695_vm0 = vcmp.le.f32.partialorder %v2694_v14, 0.7853982 }
 0x2e0   :  { %v2756_v41 = vshrl.u32 %v2755_v18, 30  ;;  %v2577_v8 = vsel %vm2489_vm9, 0, %v2575_v6 }
 0x2e1   :  { %v3141_v50 = vpop.eup %3140  ;;  %v2568_v53 = vand.u32 2147483647, %v2567_v11  ;;  %v2581_v10 = vand.u32 3, %v2577_v8 }
 0x2e2   :  { %v3143_v24 = vpop.eup %3142  ;;  %v2690_v58 = vxor.u32 2147483648, %v3141_v50  ;;  %v2757_v45 = vshll.u32 %v2756_v41, 30  ;;  %v2780_v51 = vsub.s32 4, %v2756_v41 }
 0x2e3   :  { %v2687_v19 = vxor.u32 2147483648, %v3143_v24  ;;  %v2571_v28 = vmul.f32 %v2570_v29, %v2568_v53  ;;  %vm2586_vm11 = vcmp.eq.s32.totalorder %v2581_v10, 2  ;;  %vm2583_vm12 = vcmp.eq.s32.totalorder %v2581_v10, 0 }
 0x2e4   :  { %v2691_v12 = vsel %vm2689_vm4, %v2690_v58, %v3143_v24  ;;  %v2758_v4 = vsub.s32 %v2754_v49, %v2757_v45  ;;  %vm2582_vm13 = vcmp.lt.s32.totalorder %v2581_v10, 2  ;;  %v2781_v42 = vsel %vm2696_vm15, %v2780_v51, %v2756_v41 }
 0x2e5   :  { %v2688_v34 = vsel %vm2686_vm5, %v3141_v50, %v2687_v19  ;;  %v2572_v2 = vxor.u32 2147483648, %v2571_v28  ;;  %vm2786_vm4 = vweird.f32 %v5132_v22 }
 0x2e6   :  { %v2692_v27 = vsel %vm2685_vm6, %v2688_v34, %v2691_v12  ;;  %v2760_v39 = vsub.s32 0, %v2758_v4 }
 0x2e7   :  { %v2693_v59 = vsel %vm2683_vm7, nan, %v2692_v27  ;;  %v2573_v60 = vsel %vm2490_vm8, %v2572_v2, %v2571_v28 }
 0x2e8   :  { %2820 = vst [vmem:[#allocation2 + $0xb8] sm:$0xff] %v2693_v59  ;;  %v2576_v47 = vsel %vm2489_vm9, %v5000_v23, %v2573_v60  ;;  %v2937_v30 = vmin.u32 %v2760_v39, %v2758_v4  ;;  %v2783_v23 = vsel %vm2695_vm0, 0, %v2781_v42 }
 0x2e9   :  { %3144 = vcosq.f32 %v2576_v47  ;;  %v2787_v36 = vand.u32 3, %v2783_v23 }
 0x2ea   :  { %3146 = vsinq.f32 %v2576_v47  ;;  %v2762_v20 = vclz %v2937_v30 }
 0x2eb   :  { %vm2792_vm1 = vcmp.eq.s32.totalorder %v2787_v36, 2  ;;  %vm2789_vm2 = vcmp.eq.s32.totalorder %v2787_v36, 0  ;;  %vm2788_vm3 = vcmp.lt.s32.totalorder %v2787_v36, 2 }
 0x2ec   :  { %v2938_v1 = vadd.s32 4294967294, %v2762_v20 }
 0x2ee   :  { %vm2939_vm10 = vcmp.lt.s32.totalorder %v2938_v1, 0 }
 0x2ef   :  { %v2765_v17 = vsel %vm2939_vm10, 0, %v2938_v1 }
 0x2f0   :  { %v2766_v15 = vsub.s32 32, %v2765_v17  ;;  %v2770_v48 = vsub.s32 4294967266, %v2765_v17  ;;  %v2767_v25 = vshll.u32 %v2758_v4, %v2765_v17 }
 0x2f2   :  { %v2768_v31 = vshrl.u32 %v2750_v55, %v2766_v15  ;;  %v2771_v13 = vadd.s32 127, %v2770_v48 }
 0x2f4   :  { %v2769_v61 = vor.u32 %v2768_v31, %v2767_v25  ;;  %v2772_v62 = vshll.u32 %v2771_v13, 23 }
 0x2f6   :  { %v3145_v56 = vpop.eup %3144  ;;  %v2773_v16 = vor.u32 4788187, %v2772_v62  ;;  %v2776_v32 = vcvt.s32.f32 %v2769_v61 }
 0x2f7   :  { %v3147_v35 = vpop.eup %3146  ;;  %v2587_v44 = vxor.u32 2147483648, %v3145_v56 }
 0x2f8   :  { %v2584_v43 = vxor.u32 2147483648, %v3147_v35  ;;  %v2774_v52 = vand.u32 2147483647, %v2773_v16 }
 0x2f9   :  { %v2588_v5 = vsel %vm2586_vm11, %v2587_v44, %v3147_v35 }
 0x2fa   :  { %v2585_v0 = vsel %vm2583_vm12, %v3145_v56, %v2584_v43  ;;  %v2777_v33 = vmul.f32 %v2776_v32, %v2774_v52 }
 0x2fb   :  { %v2589_v3 = vsel %vm2582_vm13, %v2585_v0, %v2588_v5 }
 0x2fc   :  { %v2590_v54 = vsel %vm2580_vm14, nan, %v2589_v3  ;;  %v2778_v46 = vxor.u32 2147483648, %v2777_v33 }
 0x2fd   :  { %2819 = vst [vmem:[#allocation2 + $0xb0] sm:$0xff] %v2590_v54 }
 0x2fe   :  { %v2779_v7 = vsel %vm2696_vm15, %v2778_v46, %v2777_v33 }
 0x2ff   :  { %v2782_v26 = vsel %vm2695_vm0, %v5132_v22, %v2779_v7 }
 0x300   :  { %3148 = vcosq.f32 %v2782_v26 }
 0x301   :  { %3150 = vsinq.f32 %v2782_v26 }
 0x30d   :  { %v3149_v9 = vpop.eup %3148 }
 0x30e   :  { %v3151_v57 = vpop.eup %3150  ;;  %v2793_v63 = vxor.u32 2147483648, %v3149_v9 }
 0x30f   :  { %v2790_v21 = vxor.u32 2147483648, %v3151_v57 }
 0x310   :  { %v2794_v37 = vsel %vm2792_vm1, %v2793_v63, %v3151_v57 }
 0x311   :  { %v2791_v14 = vsel %vm2789_vm2, %v3149_v9, %v2790_v21 }
 0x312   :  { %v2795_v11 = vsel %vm2788_vm3, %v2791_v14, %v2794_v37 }
 0x313   :  { %v2796_v38 = vsel %vm2786_vm4, nan, %v2795_v11 }
 0x314   :  { %2821 = vst [vmem:[#allocation2 + $0xc0] sm:$0xff] %v2796_v38 }
 0x315   :  { %3171 = shalt.err (!%p3168_p4)
}
 0x316   :  { %s3190_s24 = smov 128   ;;  %s3191_s25 = smov 8  }
 0x317   :  { %2833 = dma.vmem_to_hbm [thread:$0]  %s2828_s22, 3200, %s5220_s2, [#allocation3], %s3190_s24, %s3190_s24, %s3191_s25  }
 0x318   :  { %3180 = dma.done.wait [#allocation3], 3200  }
 0x319   :  { %3181 = vsyncadd [#allocation3], 4294964096 }
 0x31a   :  { %2837 = vsyncpa [#allocation3], 1 }

</bundles_post_ra>
